<compile_context>
chip_gen: v6e
topology: v6e:2x2x1
jax: 0.10.0
libtpu: 0.0.40
codegen_flags: <defaults>
</compile_context>

<pallas_src>
import math

import jax
import jax.numpy as jnp
from jax.experimental import pallas as pl
from jax.experimental.pallas import tpu as pltpu


# ---------------------------------------------------------------------------
# Model hyper-parameters (module defaults, small example shapes)
# ---------------------------------------------------------------------------
FEATURE_SIZE = 24          # feature_size
D_MODEL = 128              # d_model
D_FF = D_MODEL * 4         # d_ff
NUM_LAYERS = 3             # num_layers
N_CLASSES = 2
PAD_CLASSES = 128          # lane-dense padded classifier width
BATCH = 2
SEQ = 8                    # sequence length

LN_EPS = 1e-5
NEG_INF = -1e30

# Row layout of the packed per-layer f32 bias/LayerNorm slab (L, BIAS_ROWS, D_FF).
# 128-wide vectors live in lanes [0:D_MODEL] of their row; b1 spans all D_FF lanes.
ROW_B1 = 0
ROW_BQ, ROW_BK, ROW_BV, ROW_BO = 1, 2, 3, 4
ROW_LN1_G, ROW_LN1_B = 5, 6
ROW_B2 = 7
ROW_LN2_G, ROW_LN2_B = 8, 9
ROW_BC = 10                # padded classifier bias (stored in the layer-0 slab)
BIAS_ROWS = 16             # padded to a multiple of 8 sublanes


# ---------------------------------------------------------------------------
# Pallas kernel: forward pass for ONE batch element (grid over batch)
# ---------------------------------------------------------------------------
def _vad_kernel(
    x_ref,        # (T, F)                   f32   this example's features
    pe_ref,       # (T, D)                   f32   positional encoding + input bias
    w_in_ref,     # (F, D)                   bf16
    w_big_ref,    # (L, D, 3D | D | D_FF)    bf16  [Wq*scale | Wk | Wv | Wo | W1]
    w2_ref,       # (L, D_FF, D)             bf16
    wc_ref,       # (D, PAD_CLASSES)         bf16  zero-padded classifier weight
    bias_ref,     # (L, BIAS_ROWS, D_FF)     f32   packed bias / LayerNorm slab
    out_ref,      # (T, PAD_CLASSES)         f32
):
    D = w_in_ref.shape[1]
    DFF = w2_ref.shape[1]
    L = w_big_ref.shape[0]
    BF16 = jnp.bfloat16

    def bias_row(l, row, width):
        return bias_ref[l, row:row + 1, 0:width]           # (1, width) f32

    def layer_norm(x, gamma, beta):
        mu = jnp.mean(x, axis=-1, keepdims=True)
        var = jnp.mean(jnp.square(x - mu), axis=-1, keepdims=True)
        return (x - mu) * jax.lax.rsqrt(var + LN_EPS) * gamma + beta

    # --- input layer: Linear; (b_in + PE) folded into pe_ref; Dropout = identity ----
    h = jnp.dot(x_ref[...].astype(BF16), w_in_ref[...],
                preferred_element_type=jnp.float32) + pe_ref[...]          # (T, D) f32

    # --- transformer encoder layers (post-LN, single head) --------------------------
    for l in range(L):
        hb = h.astype(BF16)

        # fused QKV: one (T,D)x(D,3D) matmul, then static lane slices
        qkv = jnp.dot(hb, w_big_ref[l, :, 0:3 * D],
                      preferred_element_type=jnp.float32)                  # (T, 3D)
        q = qkv[:, 0:D] + bias_row(l, ROW_BQ, D)        # 1/sqrt(D) folded into Wq/bq
        k = qkv[:, D:2 * D] + bias_row(l, ROW_BK, D)
        v = qkv[:, 2 * D:3 * D] + bias_row(l, ROW_BV, D)

        # per-example attention -> no cross-batch mask needed
        s = jax.lax.dot_general(
            q.astype(BF16), k.astype(BF16),
            dimension_numbers=(((1,), (1,)), ((), ())),
            preferred_element_type=jnp.float32)                            # (T, T)
        s = s - jnp.max(s, axis=-1, keepdims=True)
        p = jnp.exp(s)
        p = p * pl.reciprocal(jnp.sum(p, axis=-1, keepdims=True), approx=True)

        ctx = jnp.dot(p.astype(BF16), v.astype(BF16),
                      preferred_element_type=jnp.float32)                  # (T, D)
        o = jnp.dot(ctx.astype(BF16), w_big_ref[l, :, 3 * D:4 * D],
                    preferred_element_type=jnp.float32) + bias_row(l, ROW_BO, D)

        h = layer_norm(h + o, bias_row(l, ROW_LN1_G, D), bias_row(l, ROW_LN1_B, D))

        # position-wise feed-forward
        ff = jnp.dot(h.astype(BF16), w_big_ref[l, :, 4 * D:4 * D + DFF],
                     preferred_element_type=jnp.float32) + bias_row(l, ROW_B1, DFF)
        ff = jnp.maximum(ff, 0.0)
        ff = jnp.dot(ff.astype(BF16), w2_ref[l],
                     preferred_element_type=jnp.float32) + bias_row(l, ROW_B2, D)

        h = layer_norm(h + ff, bias_row(l, ROW_LN2_G, D), bias_row(l, ROW_LN2_B, D))

    # --- classifier (lane-dense padded) + log_softmax --------------------------------
    logits = jnp.dot(h.astype(BF16), wc_ref[...],
                     preferred_element_type=jnp.float32) \
             + bias_row(0, ROW_BC, PAD_CLASSES)                            # (T, PAD)
    m = jnp.max(logits, axis=-1, keepdims=True)
    lse = m + jnp.log(jnp.sum(jnp.exp(logits - m), axis=-1, keepdims=True))
    out_ref[...] = (logits - lse).astype(out_ref.dtype)


# ---------------------------------------------------------------------------
# One-time host-side parameter packing (call once, cache & reuse)
# ---------------------------------------------------------------------------
def sinusoidal_pe(seq_len, d_model):
    pos = jnp.arange(seq_len, dtype=jnp.float32)[:, None]            # (T, 1)
    div = jnp.exp(jnp.arange(0, d_model, 2, dtype=jnp.float32)
                  * (-math.log(10000.0) / d_model))                  # (D/2,)
    pe = jnp.zeros((seq_len, d_model), jnp.float32)
    pe = pe.at[:, 0::2].set(jnp.sin(pos * div))
    pe = pe.at[:, 1::2].set(jnp.cos(pos * div))
    return pe


def prepare_params(params, seq_len):
    """Pack module parameters into the kernel's slabs. Do this ONCE per model."""
    F, D = params["w_in"].shape
    L = params["wq"].shape[0]
    DFF = params["w1"].shape[2]
    scale = 1.0 / math.sqrt(D)
    bf16 = lambda w: w.astype(jnp.bfloat16)

    # PE regenerated for the actual sequence length; input-layer bias folded in.
    pe_bias = (sinusoidal_pe(seq_len, D) + params["b_in"]).astype(jnp.float32)

    w_in = bf16(params["w_in"])

    # fused per-layer weight slab: [ Wq*scale | Wk | Wv | Wo | W1 ] -> (L, D, 4D+DFF)
    w_big = bf16(jnp.concatenate(
        [params["wq"] * scale, params["wk"], params["wv"], params["wo"], params["w1"]],
        axis=2))
    w2 = bf16(params["w2"])

    # lane-dense padded classifier: zero weight columns, -1e30 bias for pad classes
    wc = bf16(jnp.zeros((D, PAD_CLASSES), jnp.float32)
              .at[:, :N_CLASSES].set(params["wc"]))
    bc = jnp.full((PAD_CLASSES,), NEG_INF, jnp.float32) \
            .at[:N_CLASSES].set(params["bc"].reshape(-1))

    # packed per-layer f32 bias / LayerNorm slab: (L, BIAS_ROWS, DFF)
    bias = jnp.zeros((L, BIAS_ROWS, DFF), jnp.float32)
    bias = bias.at[:, ROW_B1, :].set(params["b1"])
    bias = bias.at[:, ROW_BQ, :D].set(params["bq"] * scale)
    bias = bias.at[:, ROW_BK, :D].set(params["bk"])
    bias = bias.at[:, ROW_BV, :D].set(params["bv"])
    bias = bias.at[:, ROW_BO, :D].set(params["bo"])
    bias = bias.at[:, ROW_LN1_G, :D].set(params["ln1_g"])
    bias = bias.at[:, ROW_LN1_B, :D].set(params["ln1_b"])
    bias = bias.at[:, ROW_B2, :D].set(params["b2"])
    bias = bias.at[:, ROW_LN2_G, :D].set(params["ln2_g"])
    bias = bias.at[:, ROW_LN2_B, :D].set(params["ln2_b"])
    bias = bias.at[0, ROW_BC, :PAD_CLASSES].set(bc)

    return dict(pe_bias=pe_bias, w_in=w_in, w_big=w_big, w2=w2, wc=wc, bias=bias)


# ---------------------------------------------------------------------------
# Per-call wrapper: grid over batch, weights resident across grid steps
# ---------------------------------------------------------------------------
@jax.jit
def self_attentive_vad(features, prepped):
    B, T, F = features.shape
    D = prepped["w_in"].shape[1]
    L = prepped["w_big"].shape[0]
    DFF = prepped["w2"].shape[1]

    out_padded = pl.pallas_call(
        _vad_kernel,
        out_shape=jax.ShapeDtypeStruct((B, T, PAD_CLASSES), jnp.float32),
        grid=(B,),
        in_specs=[
            pl.BlockSpec((None, T, F), lambda b: (b, 0, 0)),            # features
            pl.BlockSpec((T, D), lambda b: (0, 0)),                     # PE + b_in
            pl.BlockSpec((F, D), lambda b: (0, 0)),                     # W_in
            pl.BlockSpec((L, D, 4 * D + DFF), lambda b: (0, 0, 0)),     # Wqkv|Wo|W1
            pl.BlockSpec((L, DFF, D), lambda b: (0, 0, 0)),             # W2
            pl.BlockSpec((D, PAD_CLASSES), lambda b: (0, 0)),           # classifier W
            pl.BlockSpec((L, BIAS_ROWS, DFF), lambda b: (0, 0, 0)),     # bias/LN slab
        ],
        out_specs=pl.BlockSpec((None, T, PAD_CLASSES), lambda b: (b, 0, 0)),
        compiler_params=pltpu.CompilerParams(
            dimension_semantics=("parallel",),   # split over both TCs on v7x
            vmem_limit_bytes=16 << 20,           # honest footprint; fits v7x 64 MiB
        ),
    )(features.astype(jnp.float32), prepped["pe_bias"], prepped["w_in"],
      prepped["w_big"], prepped["w2"], prepped["wc"], prepped["bias"])

    return out_padded[:, :, :N_CLASSES]


# ---------------------------------------------------------------------------
# Deterministic parameter construction (module-like f32 params)
# ---------------------------------------------------------------------------
def make_params(key):
    D, DFF, F, L = D_MODEL, D_FF, FEATURE_SIZE, NUM_LAYERS
    ks = jax.random.split(key, 16)
    s = 0.02  # small deterministic init scale

    return {
        "w_in": s * jax.random.normal(ks[0], (F, D), jnp.float32),
        "b_in": jnp.zeros((1, D), jnp.float32),
        "wq": s * jax.random.normal(ks[1], (L, D, D), jnp.float32),
        "bq": jnp.zeros((L, D), jnp.float32),
        "wk": s * jax.random.normal(ks[2], (L, D, D), jnp.float32),
        "bk": jnp.zeros((L, D), jnp.float32),
        "wv": s * jax.random.normal(ks[3], (L, D, D), jnp.float32),
        "bv": jnp.zeros((L, D), jnp.float32),
        "wo": s * jax.random.normal(ks[4], (L, D, D), jnp.float32),
        "bo": jnp.zeros((L, D), jnp.float32),
        "ln1_g": jnp.ones((L, D), jnp.float32),
        "ln1_b": jnp.zeros((L, D), jnp.float32),
        "w1": s * jax.random.normal(ks[5], (L, D, DFF), jnp.float32),
        "b1": jnp.zeros((L, DFF), jnp.float32),
        "w2": s * jax.random.normal(ks[6], (L, DFF, D), jnp.float32),
        "b2": jnp.zeros((L, D), jnp.float32),
        "ln2_g": jnp.ones((L, D), jnp.float32),
        "ln2_b": jnp.zeros((L, D), jnp.float32),
        "wc": s * jax.random.normal(ks[7], (D, N_CLASSES), jnp.float32),
        "bc": jnp.zeros((1, N_CLASSES), jnp.float32),
    }


if __name__ == "__main__":
    key = jax.random.PRNGKey(0)
    k_feat, k_par = jax.random.split(key)

    features = jax.random.normal(k_feat, (BATCH, SEQ, FEATURE_SIZE), jnp.float32)
    params = make_params(k_par)

    # One-time packing of the parameters (cache and reuse across inference calls).
    prepped = prepare_params(params, SEQ)
    prepped = jax.tree_util.tree_map(jax.block_until_ready, prepped)

    out = self_attentive_vad(features, prepped)
    out = jax.block_until_ready(out)

    assert out.shape == (BATCH, SEQ, N_CLASSES)
    assert bool(jnp.all(jnp.isfinite(out)))
    # log_softmax rows must sum (in prob space) to ~1
    assert bool(jnp.allclose(jnp.sum(jnp.exp(out), axis=-1), 1.0, atol=1e-4))
    print("KERNEL_OK")
</pallas_src>

<mosaic_0001>
module attributes {stable_mosaic.version = 11 : i64} {
  func.func @_vad_kernel(%arg0: i32, %arg1: memref<1x8x24xf32, #tpu.memory_space<vmem>>, %arg2: memref<8x128xf32, #tpu.memory_space<vmem>>, %arg3: memref<24x128xbf16, #tpu.memory_space<vmem>>, %arg4: memref<3x128x1024xbf16, #tpu.memory_space<vmem>>, %arg5: memref<3x512x128xbf16, #tpu.memory_space<vmem>>, %arg6: memref<128x128xbf16, #tpu.memory_space<vmem>>, %arg7: memref<3x16x512xf32, #tpu.memory_space<vmem>>, %arg8: memref<1x8x128xf32, #tpu.memory_space<vmem>>) attributes {dimension_semantics = [#tpu.dimension_semantics<parallel>], iteration_bounds = array<i64: 2>, scalar_prefetch = 0 : i64, scratch_operands = 0 : i64, tpu.core_type = #tpu.core_type<tc>, window_params = [{transform_indices = @transform_0, window_bounds = array<i64: 1, 8, 24>}, {pipeline_mode = #tpu.pipeline_mode<synchronous>, transform_indices = @transform_1, window_bounds = array<i64: 8, 128>}, {pipeline_mode = #tpu.pipeline_mode<synchronous>, transform_indices = @transform_2, window_bounds = array<i64: 24, 128>}, {pipeline_mode = #tpu.pipeline_mode<synchronous>, transform_indices = @transform_3, window_bounds = array<i64: 3, 128, 1024>}, {pipeline_mode = #tpu.pipeline_mode<synchronous>, transform_indices = @transform_4, window_bounds = array<i64: 3, 512, 128>}, {pipeline_mode = #tpu.pipeline_mode<synchronous>, transform_indices = @transform_5, window_bounds = array<i64: 128, 128>}, {pipeline_mode = #tpu.pipeline_mode<synchronous>, transform_indices = @transform_6, window_bounds = array<i64: 3, 16, 512>}, {transform_indices = @transform_7, window_bounds = array<i64: 1, 8, 128>}]} {
    %c0 = arith.constant 0 : index
    %c0_0 = arith.constant 0 : index
    %c0_1 = arith.constant 0 : index
    %0 = vector.load %arg1[%c0, %c0_0, %c0_1] : memref<1x8x24xf32, #tpu.memory_space<vmem>>, vector<1x8x24xf32>
    %1 = vector.shape_cast %0 : vector<1x8x24xf32> to vector<8x24xf32>
    %2 = arith.truncf %1 : vector<8x24xf32> to vector<8x24xbf16>
    %c0_2 = arith.constant 0 : index
    %c0_3 = arith.constant 0 : index
    %3 = vector.load %arg3[%c0_2, %c0_3] : memref<24x128xbf16, #tpu.memory_space<vmem>>, vector<24x128xbf16>
    %cst = arith.constant dense<0.000000e+00> : vector<8x128xf32>
    %4 = tpu.matmul %2, %3, %cst {dimension_numbers = #tpu.dot_dimension_numbers<[1], [0], [0], [1], [0, 0, 1, 1], [], []>} : vector<8x24xbf16>, vector<24x128xbf16>, vector<8x128xf32> -> vector<8x128xf32>
    %c0_4 = arith.constant 0 : index
    %c0_5 = arith.constant 0 : index
    %5 = vector.load %arg2[%c0_4, %c0_5] : memref<8x128xf32, #tpu.memory_space<vmem>>, vector<8x128xf32>
    %6 = arith.addf %4, %5 : vector<8x128xf32>
    %7 = arith.truncf %6 : vector<8x128xf32> to vector<8x128xbf16>
    %c0_6 = arith.constant 0 : index
    %c0_7 = arith.constant 0 : index
    %c0_8 = arith.constant 0 : index
    %8 = vector.load %arg4[%c0_6, %c0_7, %c0_8] : memref<3x128x1024xbf16, #tpu.memory_space<vmem>>, vector<1x128x384xbf16>
    %9 = vector.shape_cast %8 : vector<1x128x384xbf16> to vector<128x384xbf16>
    %cst_9 = arith.constant dense<0.000000e+00> : vector<8x384xf32>
    %10 = tpu.matmul %7, %9, %cst_9 {dimension_numbers = #tpu.dot_dimension_numbers<[1], [0], [0], [1], [0, 0, 1, 1], [], []>} : vector<8x128xbf16>, vector<128x384xbf16>, vector<8x384xf32> -> vector<8x384xf32>
    %11 = vector.extract_strided_slice %10 {offsets = [0, 0], sizes = [8, 128], strides = [1, 1]} : vector<8x384xf32> to vector<8x128xf32>
    %c0_10 = arith.constant 0 : index
    %c1 = arith.constant 1 : index
    %c0_11 = arith.constant 0 : index
    %12 = vector.load %arg7[%c0_10, %c1, %c0_11] : memref<3x16x512xf32, #tpu.memory_space<vmem>>, vector<1x1x128xf32>
    %13 = vector.shape_cast %12 : vector<1x1x128xf32> to vector<1x128xf32>
    %14 = vector.broadcast %13 : vector<1x128xf32> to vector<8x128xf32>
    %15 = arith.addf %11, %14 : vector<8x128xf32>
    %16 = vector.extract_strided_slice %10 {offsets = [0, 128], sizes = [8, 128], strides = [1, 1]} : vector<8x384xf32> to vector<8x128xf32>
    %c0_12 = arith.constant 0 : index
    %c2 = arith.constant 2 : index
    %c0_13 = arith.constant 0 : index
    %17 = vector.load %arg7[%c0_12, %c2, %c0_13] : memref<3x16x512xf32, #tpu.memory_space<vmem>>, vector<1x1x128xf32>
    %18 = vector.shape_cast %17 : vector<1x1x128xf32> to vector<1x128xf32>
    %19 = vector.broadcast %18 : vector<1x128xf32> to vector<8x128xf32>
    %20 = arith.addf %16, %19 : vector<8x128xf32>
    %21 = vector.extract_strided_slice %10 {offsets = [0, 256], sizes = [8, 128], strides = [1, 1]} : vector<8x384xf32> to vector<8x128xf32>
    %c0_14 = arith.constant 0 : index
    %c3 = arith.constant 3 : index
    %c0_15 = arith.constant 0 : index
    %22 = vector.load %arg7[%c0_14, %c3, %c0_15] : memref<3x16x512xf32, #tpu.memory_space<vmem>>, vector<1x1x128xf32>
    %23 = vector.shape_cast %22 : vector<1x1x128xf32> to vector<1x128xf32>
    %24 = vector.broadcast %23 : vector<1x128xf32> to vector<8x128xf32>
    %25 = arith.addf %21, %24 : vector<8x128xf32>
    %26 = arith.truncf %15 : vector<8x128xf32> to vector<8x128xbf16>
    %27 = arith.truncf %20 : vector<8x128xf32> to vector<8x128xbf16>
    %cst_16 = arith.constant dense<0.000000e+00> : vector<8x8xf32>
    %28 = tpu.matmul %26, %27, %cst_16 {dimension_numbers = #tpu.dot_dimension_numbers<[1], [1], [0], [0], [0, 0, 1, 0], [], []>} : vector<8x128xbf16>, vector<8x128xbf16>, vector<8x8xf32> -> vector<8x8xf32>
    %cst_17 = arith.constant dense<0xFF800000> : vector<8xf32>
    %29 = vector.multi_reduction <maximumf>, %28, %cst_17 [1] : vector<8x8xf32> to vector<8xf32>
    %30 = vector.shape_cast %29 : vector<8xf32> to vector<8x1xf32>
    %31 = vector.broadcast %30 : vector<8x1xf32> to vector<8x8xf32>
    %32 = arith.subf %28, %31 : vector<8x8xf32>
    %33 = math.exp %32 : vector<8x8xf32>
    %cst_18 = arith.constant dense<0.000000e+00> : vector<8xf32>
    %34 = vector.multi_reduction <add>, %33, %cst_18 [1] : vector<8x8xf32> to vector<8xf32>
    %35 = vector.shape_cast %34 : vector<8xf32> to vector<8x1xf32>
    %36 = tpu.reciprocal %35 {approx = true} : vector<8x1xf32> -> vector<8x1xf32>
    %37 = vector.broadcast %36 : vector<8x1xf32> to vector<8x8xf32>
    %38 = arith.mulf %33, %37 : vector<8x8xf32>
    %39 = arith.truncf %38 : vector<8x8xf32> to vector<8x8xbf16>
    %40 = arith.truncf %25 : vector<8x128xf32> to vector<8x128xbf16>
    %cst_19 = arith.constant dense<0.000000e+00> : vector<8x128xf32>
    %41 = tpu.matmul %39, %40, %cst_19 {dimension_numbers = #tpu.dot_dimension_numbers<[1], [0], [0], [1], [0, 0, 1, 1], [], []>} : vector<8x8xbf16>, vector<8x128xbf16>, vector<8x128xf32> -> vector<8x128xf32>
    %42 = arith.truncf %41 : vector<8x128xf32> to vector<8x128xbf16>
    %c0_20 = arith.constant 0 : index
    %c0_21 = arith.constant 0 : index
    %c384 = arith.constant 384 : index
    %43 = vector.load %arg4[%c0_20, %c0_21, %c384] : memref<3x128x1024xbf16, #tpu.memory_space<vmem>>, vector<1x128x128xbf16>
    %44 = vector.shape_cast %43 : vector<1x128x128xbf16> to vector<128x128xbf16>
    %cst_22 = arith.constant dense<0.000000e+00> : vector<8x128xf32>
    %45 = tpu.matmul %42, %44, %cst_22 {dimension_numbers = #tpu.dot_dimension_numbers<[1], [0], [0], [1], [0, 0, 1, 1], [], []>} : vector<8x128xbf16>, vector<128x128xbf16>, vector<8x128xf32> -> vector<8x128xf32>
    %c0_23 = arith.constant 0 : index
    %c4 = arith.constant 4 : index
    %c0_24 = arith.constant 0 : index
    %46 = vector.load %arg7[%c0_23, %c4, %c0_24] : memref<3x16x512xf32, #tpu.memory_space<vmem>>, vector<1x1x128xf32>
    %47 = vector.shape_cast %46 : vector<1x1x128xf32> to vector<1x128xf32>
    %48 = vector.broadcast %47 : vector<1x128xf32> to vector<8x128xf32>
    %49 = arith.addf %45, %48 : vector<8x128xf32>
    %50 = arith.addf %6, %49 : vector<8x128xf32>
    %c0_25 = arith.constant 0 : index
    %c5 = arith.constant 5 : index
    %c0_26 = arith.constant 0 : index
    %51 = vector.load %arg7[%c0_25, %c5, %c0_26] : memref<3x16x512xf32, #tpu.memory_space<vmem>>, vector<1x1x128xf32>
    %52 = vector.shape_cast %51 : vector<1x1x128xf32> to vector<1x128xf32>
    %c0_27 = arith.constant 0 : index
    %c6 = arith.constant 6 : index
    %c0_28 = arith.constant 0 : index
    %53 = vector.load %arg7[%c0_27, %c6, %c0_28] : memref<3x16x512xf32, #tpu.memory_space<vmem>>, vector<1x1x128xf32>
    %54 = vector.shape_cast %53 : vector<1x1x128xf32> to vector<1x128xf32>
    %cst_29 = arith.constant dense<0.000000e+00> : vector<8xf32>
    %55 = vector.multi_reduction <add>, %50, %cst_29 [1] : vector<8x128xf32> to vector<8xf32>
    %56 = vector.shape_cast %55 : vector<8xf32> to vector<8x1xf32>
    %cst_30 = arith.constant 1.280000e+02 : f32
    %57 = vector.broadcast %cst_30 : f32 to vector<8x1xf32>
    %58 = arith.divf %56, %57 : vector<8x1xf32>
    %59 = vector.broadcast %58 : vector<8x1xf32> to vector<8x128xf32>
    %60 = arith.subf %50, %59 : vector<8x128xf32>
    %61 = arith.mulf %60, %60 : vector<8x128xf32>
    %cst_31 = arith.constant dense<0.000000e+00> : vector<8xf32>
    %62 = vector.multi_reduction <add>, %61, %cst_31 [1] : vector<8x128xf32> to vector<8xf32>
    %63 = vector.shape_cast %62 : vector<8xf32> to vector<8x1xf32>
    %cst_32 = arith.constant 1.280000e+02 : f32
    %64 = vector.broadcast %cst_32 : f32 to vector<8x1xf32>
    %65 = arith.divf %63, %64 : vector<8x1xf32>
    %66 = vector.broadcast %58 : vector<8x1xf32> to vector<8x128xf32>
    %67 = arith.subf %50, %66 : vector<8x128xf32>
    %cst_33 = arith.constant 9.99999974E-6 : f32
    %68 = vector.broadcast %cst_33 : f32 to vector<8x1xf32>
    %69 = arith.addf %65, %68 : vector<8x1xf32>
    %70 = math.rsqrt %69 : vector<8x1xf32>
    %71 = vector.broadcast %70 : vector<8x1xf32> to vector<8x128xf32>
    %72 = arith.mulf %67, %71 : vector<8x128xf32>
    %73 = vector.broadcast %52 : vector<1x128xf32> to vector<8x128xf32>
    %74 = arith.mulf %72, %73 : vector<8x128xf32>
    %75 = vector.broadcast %54 : vector<1x128xf32> to vector<8x128xf32>
    %76 = arith.addf %74, %75 : vector<8x128xf32>
    %77 = arith.truncf %76 : vector<8x128xf32> to vector<8x128xbf16>
    %c0_34 = arith.constant 0 : index
    %c0_35 = arith.constant 0 : index
    %c512 = arith.constant 512 : index
    %78 = vector.load %arg4[%c0_34, %c0_35, %c512] : memref<3x128x1024xbf16, #tpu.memory_space<vmem>>, vector<1x128x512xbf16>
    %79 = vector.shape_cast %78 : vector<1x128x512xbf16> to vector<128x512xbf16>
    %cst_36 = arith.constant dense<0.000000e+00> : vector<8x512xf32>
    %80 = tpu.matmul %77, %79, %cst_36 {dimension_numbers = #tpu.dot_dimension_numbers<[1], [0], [0], [1], [0, 0, 1, 1], [], []>} : vector<8x128xbf16>, vector<128x512xbf16>, vector<8x512xf32> -> vector<8x512xf32>
    %c0_37 = arith.constant 0 : index
    %c0_38 = arith.constant 0 : index
    %c0_39 = arith.constant 0 : index
    %81 = vector.load %arg7[%c0_37, %c0_38, %c0_39] : memref<3x16x512xf32, #tpu.memory_space<vmem>>, vector<1x1x512xf32>
    %82 = vector.shape_cast %81 : vector<1x1x512xf32> to vector<1x512xf32>
    %83 = vector.broadcast %82 : vector<1x512xf32> to vector<8x512xf32>
    %84 = arith.addf %80, %83 : vector<8x512xf32>
    %cst_40 = arith.constant 0.000000e+00 : f32
    %85 = vector.broadcast %cst_40 : f32 to vector<8x512xf32>
    %86 = arith.maximumf %84, %85 : vector<8x512xf32>
    %87 = arith.truncf %86 : vector<8x512xf32> to vector<8x512xbf16>
    %c0_41 = arith.constant 0 : index
    %c0_42 = arith.constant 0 : index
    %c0_43 = arith.constant 0 : index
    %88 = vector.load %arg5[%c0_41, %c0_42, %c0_43] : memref<3x512x128xbf16, #tpu.memory_space<vmem>>, vector<1x512x128xbf16>
    %89 = vector.shape_cast %88 : vector<1x512x128xbf16> to vector<512x128xbf16>
    %cst_44 = arith.constant dense<0.000000e+00> : vector<8x128xf32>
    %90 = tpu.matmul %87, %89, %cst_44 {dimension_numbers = #tpu.dot_dimension_numbers<[1], [0], [0], [1], [0, 0, 1, 1], [], []>} : vector<8x512xbf16>, vector<512x128xbf16>, vector<8x128xf32> -> vector<8x128xf32>
    %c0_45 = arith.constant 0 : index
    %c7 = arith.constant 7 : index
    %c0_46 = arith.constant 0 : index
    %91 = vector.load %arg7[%c0_45, %c7, %c0_46] : memref<3x16x512xf32, #tpu.memory_space<vmem>>, vector<1x1x128xf32>
    %92 = vector.shape_cast %91 : vector<1x1x128xf32> to vector<1x128xf32>
    %93 = vector.broadcast %92 : vector<1x128xf32> to vector<8x128xf32>
    %94 = arith.addf %90, %93 : vector<8x128xf32>
    %95 = arith.addf %76, %94 : vector<8x128xf32>
    %c0_47 = arith.constant 0 : index
    %c8 = arith.constant 8 : index
    %c0_48 = arith.constant 0 : index
    %96 = vector.load %arg7[%c0_47, %c8, %c0_48] : memref<3x16x512xf32, #tpu.memory_space<vmem>>, vector<1x1x128xf32>
    %97 = vector.shape_cast %96 : vector<1x1x128xf32> to vector<1x128xf32>
    %c0_49 = arith.constant 0 : index
    %c9 = arith.constant 9 : index
    %c0_50 = arith.constant 0 : index
    %98 = vector.load %arg7[%c0_49, %c9, %c0_50] : memref<3x16x512xf32, #tpu.memory_space<vmem>>, vector<1x1x128xf32>
    %99 = vector.shape_cast %98 : vector<1x1x128xf32> to vector<1x128xf32>
    %cst_51 = arith.constant dense<0.000000e+00> : vector<8xf32>
    %100 = vector.multi_reduction <add>, %95, %cst_51 [1] : vector<8x128xf32> to vector<8xf32>
    %101 = vector.shape_cast %100 : vector<8xf32> to vector<8x1xf32>
    %cst_52 = arith.constant 1.280000e+02 : f32
    %102 = vector.broadcast %cst_52 : f32 to vector<8x1xf32>
    %103 = arith.divf %101, %102 : vector<8x1xf32>
    %104 = vector.broadcast %103 : vector<8x1xf32> to vector<8x128xf32>
    %105 = arith.subf %95, %104 : vector<8x128xf32>
    %106 = arith.mulf %105, %105 : vector<8x128xf32>
    %cst_53 = arith.constant dense<0.000000e+00> : vector<8xf32>
    %107 = vector.multi_reduction <add>, %106, %cst_53 [1] : vector<8x128xf32> to vector<8xf32>
    %108 = vector.shape_cast %107 : vector<8xf32> to vector<8x1xf32>
    %cst_54 = arith.constant 1.280000e+02 : f32
    %109 = vector.broadcast %cst_54 : f32 to vector<8x1xf32>
    %110 = arith.divf %108, %109 : vector<8x1xf32>
    %111 = vector.broadcast %103 : vector<8x1xf32> to vector<8x128xf32>
    %112 = arith.subf %95, %111 : vector<8x128xf32>
    %cst_55 = arith.constant 9.99999974E-6 : f32
    %113 = vector.broadcast %cst_55 : f32 to vector<8x1xf32>
    %114 = arith.addf %110, %113 : vector<8x1xf32>
    %115 = math.rsqrt %114 : vector<8x1xf32>
    %116 = vector.broadcast %115 : vector<8x1xf32> to vector<8x128xf32>
    %117 = arith.mulf %112, %116 : vector<8x128xf32>
    %118 = vector.broadcast %97 : vector<1x128xf32> to vector<8x128xf32>
    %119 = arith.mulf %117, %118 : vector<8x128xf32>
    %120 = vector.broadcast %99 : vector<1x128xf32> to vector<8x128xf32>
    %121 = arith.addf %119, %120 : vector<8x128xf32>
    %122 = arith.truncf %121 : vector<8x128xf32> to vector<8x128xbf16>
    %c1_56 = arith.constant 1 : index
    %c0_57 = arith.constant 0 : index
    %c0_58 = arith.constant 0 : index
    %123 = vector.load %arg4[%c1_56, %c0_57, %c0_58] : memref<3x128x1024xbf16, #tpu.memory_space<vmem>>, vector<1x128x384xbf16>
    %124 = vector.shape_cast %123 : vector<1x128x384xbf16> to vector<128x384xbf16>
    %cst_59 = arith.constant dense<0.000000e+00> : vector<8x384xf32>
    %125 = tpu.matmul %122, %124, %cst_59 {dimension_numbers = #tpu.dot_dimension_numbers<[1], [0], [0], [1], [0, 0, 1, 1], [], []>} : vector<8x128xbf16>, vector<128x384xbf16>, vector<8x384xf32> -> vector<8x384xf32>
    %126 = vector.extract_strided_slice %125 {offsets = [0, 0], sizes = [8, 128], strides = [1, 1]} : vector<8x384xf32> to vector<8x128xf32>
    %c1_60 = arith.constant 1 : index
    %c1_61 = arith.constant 1 : index
    %c0_62 = arith.constant 0 : index
    %127 = vector.load %arg7[%c1_60, %c1_61, %c0_62] : memref<3x16x512xf32, #tpu.memory_space<vmem>>, vector<1x1x128xf32>
    %128 = vector.shape_cast %127 : vector<1x1x128xf32> to vector<1x128xf32>
    %129 = vector.broadcast %128 : vector<1x128xf32> to vector<8x128xf32>
    %130 = arith.addf %126, %129 : vector<8x128xf32>
    %131 = vector.extract_strided_slice %125 {offsets = [0, 128], sizes = [8, 128], strides = [1, 1]} : vector<8x384xf32> to vector<8x128xf32>
    %c1_63 = arith.constant 1 : index
    %c2_64 = arith.constant 2 : index
    %c0_65 = arith.constant 0 : index
    %132 = vector.load %arg7[%c1_63, %c2_64, %c0_65] : memref<3x16x512xf32, #tpu.memory_space<vmem>>, vector<1x1x128xf32>
    %133 = vector.shape_cast %132 : vector<1x1x128xf32> to vector<1x128xf32>
    %134 = vector.broadcast %133 : vector<1x128xf32> to vector<8x128xf32>
    %135 = arith.addf %131, %134 : vector<8x128xf32>
    %136 = vector.extract_strided_slice %125 {offsets = [0, 256], sizes = [8, 128], strides = [1, 1]} : vector<8x384xf32> to vector<8x128xf32>
    %c1_66 = arith.constant 1 : index
    %c3_67 = arith.constant 3 : index
    %c0_68 = arith.constant 0 : index
    %137 = vector.load %arg7[%c1_66, %c3_67, %c0_68] : memref<3x16x512xf32, #tpu.memory_space<vmem>>, vector<1x1x128xf32>
    %138 = vector.shape_cast %137 : vector<1x1x128xf32> to vector<1x128xf32>
    %139 = vector.broadcast %138 : vector<1x128xf32> to vector<8x128xf32>
    %140 = arith.addf %136, %139 : vector<8x128xf32>
    %141 = arith.truncf %130 : vector<8x128xf32> to vector<8x128xbf16>
    %142 = arith.truncf %135 : vector<8x128xf32> to vector<8x128xbf16>
    %cst_69 = arith.constant dense<0.000000e+00> : vector<8x8xf32>
    %143 = tpu.matmul %141, %142, %cst_69 {dimension_numbers = #tpu.dot_dimension_numbers<[1], [1], [0], [0], [0, 0, 1, 0], [], []>} : vector<8x128xbf16>, vector<8x128xbf16>, vector<8x8xf32> -> vector<8x8xf32>
    %cst_70 = arith.constant dense<0xFF800000> : vector<8xf32>
    %144 = vector.multi_reduction <maximumf>, %143, %cst_70 [1] : vector<8x8xf32> to vector<8xf32>
    %145 = vector.shape_cast %144 : vector<8xf32> to vector<8x1xf32>
    %146 = vector.broadcast %145 : vector<8x1xf32> to vector<8x8xf32>
    %147 = arith.subf %143, %146 : vector<8x8xf32>
    %148 = math.exp %147 : vector<8x8xf32>
    %cst_71 = arith.constant dense<0.000000e+00> : vector<8xf32>
    %149 = vector.multi_reduction <add>, %148, %cst_71 [1] : vector<8x8xf32> to vector<8xf32>
    %150 = vector.shape_cast %149 : vector<8xf32> to vector<8x1xf32>
    %151 = tpu.reciprocal %150 {approx = true} : vector<8x1xf32> -> vector<8x1xf32>
    %152 = vector.broadcast %151 : vector<8x1xf32> to vector<8x8xf32>
    %153 = arith.mulf %148, %152 : vector<8x8xf32>
    %154 = arith.truncf %153 : vector<8x8xf32> to vector<8x8xbf16>
    %155 = arith.truncf %140 : vector<8x128xf32> to vector<8x128xbf16>
    %cst_72 = arith.constant dense<0.000000e+00> : vector<8x128xf32>
    %156 = tpu.matmul %154, %155, %cst_72 {dimension_numbers = #tpu.dot_dimension_numbers<[1], [0], [0], [1], [0, 0, 1, 1], [], []>} : vector<8x8xbf16>, vector<8x128xbf16>, vector<8x128xf32> -> vector<8x128xf32>
    %157 = arith.truncf %156 : vector<8x128xf32> to vector<8x128xbf16>
    %c1_73 = arith.constant 1 : index
    %c0_74 = arith.constant 0 : index
    %c384_75 = arith.constant 384 : index
    %158 = vector.load %arg4[%c1_73, %c0_74, %c384_75] : memref<3x128x1024xbf16, #tpu.memory_space<vmem>>, vector<1x128x128xbf16>
    %159 = vector.shape_cast %158 : vector<1x128x128xbf16> to vector<128x128xbf16>
    %cst_76 = arith.constant dense<0.000000e+00> : vector<8x128xf32>
    %160 = tpu.matmul %157, %159, %cst_76 {dimension_numbers = #tpu.dot_dimension_numbers<[1], [0], [0], [1], [0, 0, 1, 1], [], []>} : vector<8x128xbf16>, vector<128x128xbf16>, vector<8x128xf32> -> vector<8x128xf32>
    %c1_77 = arith.constant 1 : index
    %c4_78 = arith.constant 4 : index
    %c0_79 = arith.constant 0 : index
    %161 = vector.load %arg7[%c1_77, %c4_78, %c0_79] : memref<3x16x512xf32, #tpu.memory_space<vmem>>, vector<1x1x128xf32>
    %162 = vector.shape_cast %161 : vector<1x1x128xf32> to vector<1x128xf32>
    %163 = vector.broadcast %162 : vector<1x128xf32> to vector<8x128xf32>
    %164 = arith.addf %160, %163 : vector<8x128xf32>
    %165 = arith.addf %121, %164 : vector<8x128xf32>
    %c1_80 = arith.constant 1 : index
    %c5_81 = arith.constant 5 : index
    %c0_82 = arith.constant 0 : index
    %166 = vector.load %arg7[%c1_80, %c5_81, %c0_82] : memref<3x16x512xf32, #tpu.memory_space<vmem>>, vector<1x1x128xf32>
    %167 = vector.shape_cast %166 : vector<1x1x128xf32> to vector<1x128xf32>
    %c1_83 = arith.constant 1 : index
    %c6_84 = arith.constant 6 : index
    %c0_85 = arith.constant 0 : index
    %168 = vector.load %arg7[%c1_83, %c6_84, %c0_85] : memref<3x16x512xf32, #tpu.memory_space<vmem>>, vector<1x1x128xf32>
    %169 = vector.shape_cast %168 : vector<1x1x128xf32> to vector<1x128xf32>
    %cst_86 = arith.constant dense<0.000000e+00> : vector<8xf32>
    %170 = vector.multi_reduction <add>, %165, %cst_86 [1] : vector<8x128xf32> to vector<8xf32>
    %171 = vector.shape_cast %170 : vector<8xf32> to vector<8x1xf32>
    %cst_87 = arith.constant 1.280000e+02 : f32
    %172 = vector.broadcast %cst_87 : f32 to vector<8x1xf32>
    %173 = arith.divf %171, %172 : vector<8x1xf32>
    %174 = vector.broadcast %173 : vector<8x1xf32> to vector<8x128xf32>
    %175 = arith.subf %165, %174 : vector<8x128xf32>
    %176 = arith.mulf %175, %175 : vector<8x128xf32>
    %cst_88 = arith.constant dense<0.000000e+00> : vector<8xf32>
    %177 = vector.multi_reduction <add>, %176, %cst_88 [1] : vector<8x128xf32> to vector<8xf32>
    %178 = vector.shape_cast %177 : vector<8xf32> to vector<8x1xf32>
    %cst_89 = arith.constant 1.280000e+02 : f32
    %179 = vector.broadcast %cst_89 : f32 to vector<8x1xf32>
    %180 = arith.divf %178, %179 : vector<8x1xf32>
    %181 = vector.broadcast %173 : vector<8x1xf32> to vector<8x128xf32>
    %182 = arith.subf %165, %181 : vector<8x128xf32>
    %cst_90 = arith.constant 9.99999974E-6 : f32
    %183 = vector.broadcast %cst_90 : f32 to vector<8x1xf32>
    %184 = arith.addf %180, %183 : vector<8x1xf32>
    %185 = math.rsqrt %184 : vector<8x1xf32>
    %186 = vector.broadcast %185 : vector<8x1xf32> to vector<8x128xf32>
    %187 = arith.mulf %182, %186 : vector<8x128xf32>
    %188 = vector.broadcast %167 : vector<1x128xf32> to vector<8x128xf32>
    %189 = arith.mulf %187, %188 : vector<8x128xf32>
    %190 = vector.broadcast %169 : vector<1x128xf32> to vector<8x128xf32>
    %191 = arith.addf %189, %190 : vector<8x128xf32>
    %192 = arith.truncf %191 : vector<8x128xf32> to vector<8x128xbf16>
    %c1_91 = arith.constant 1 : index
    %c0_92 = arith.constant 0 : index
    %c512_93 = arith.constant 512 : index
    %193 = vector.load %arg4[%c1_91, %c0_92, %c512_93] : memref<3x128x1024xbf16, #tpu.memory_space<vmem>>, vector<1x128x512xbf16>
    %194 = vector.shape_cast %193 : vector<1x128x512xbf16> to vector<128x512xbf16>
    %cst_94 = arith.constant dense<0.000000e+00> : vector<8x512xf32>
    %195 = tpu.matmul %192, %194, %cst_94 {dimension_numbers = #tpu.dot_dimension_numbers<[1], [0], [0], [1], [0, 0, 1, 1], [], []>} : vector<8x128xbf16>, vector<128x512xbf16>, vector<8x512xf32> -> vector<8x512xf32>
    %c1_95 = arith.constant 1 : index
    %c0_96 = arith.constant 0 : index
    %c0_97 = arith.constant 0 : index
    %196 = vector.load %arg7[%c1_95, %c0_96, %c0_97] : memref<3x16x512xf32, #tpu.memory_space<vmem>>, vector<1x1x512xf32>
    %197 = vector.shape_cast %196 : vector<1x1x512xf32> to vector<1x512xf32>
    %198 = vector.broadcast %197 : vector<1x512xf32> to vector<8x512xf32>
    %199 = arith.addf %195, %198 : vector<8x512xf32>
    %cst_98 = arith.constant 0.000000e+00 : f32
    %200 = vector.broadcast %cst_98 : f32 to vector<8x512xf32>
    %201 = arith.maximumf %199, %200 : vector<8x512xf32>
    %202 = arith.truncf %201 : vector<8x512xf32> to vector<8x512xbf16>
    %c1_99 = arith.constant 1 : index
    %c0_100 = arith.constant 0 : index
    %c0_101 = arith.constant 0 : index
    %203 = vector.load %arg5[%c1_99, %c0_100, %c0_101] : memref<3x512x128xbf16, #tpu.memory_space<vmem>>, vector<1x512x128xbf16>
    %204 = vector.shape_cast %203 : vector<1x512x128xbf16> to vector<512x128xbf16>
    %cst_102 = arith.constant dense<0.000000e+00> : vector<8x128xf32>
    %205 = tpu.matmul %202, %204, %cst_102 {dimension_numbers = #tpu.dot_dimension_numbers<[1], [0], [0], [1], [0, 0, 1, 1], [], []>} : vector<8x512xbf16>, vector<512x128xbf16>, vector<8x128xf32> -> vector<8x128xf32>
    %c1_103 = arith.constant 1 : index
    %c7_104 = arith.constant 7 : index
    %c0_105 = arith.constant 0 : index
    %206 = vector.load %arg7[%c1_103, %c7_104, %c0_105] : memref<3x16x512xf32, #tpu.memory_space<vmem>>, vector<1x1x128xf32>
    %207 = vector.shape_cast %206 : vector<1x1x128xf32> to vector<1x128xf32>
    %208 = vector.broadcast %207 : vector<1x128xf32> to vector<8x128xf32>
    %209 = arith.addf %205, %208 : vector<8x128xf32>
    %210 = arith.addf %191, %209 : vector<8x128xf32>
    %c1_106 = arith.constant 1 : index
    %c8_107 = arith.constant 8 : index
    %c0_108 = arith.constant 0 : index
    %211 = vector.load %arg7[%c1_106, %c8_107, %c0_108] : memref<3x16x512xf32, #tpu.memory_space<vmem>>, vector<1x1x128xf32>
    %212 = vector.shape_cast %211 : vector<1x1x128xf32> to vector<1x128xf32>
    %c1_109 = arith.constant 1 : index
    %c9_110 = arith.constant 9 : index
    %c0_111 = arith.constant 0 : index
    %213 = vector.load %arg7[%c1_109, %c9_110, %c0_111] : memref<3x16x512xf32, #tpu.memory_space<vmem>>, vector<1x1x128xf32>
    %214 = vector.shape_cast %213 : vector<1x1x128xf32> to vector<1x128xf32>
    %cst_112 = arith.constant dense<0.000000e+00> : vector<8xf32>
    %215 = vector.multi_reduction <add>, %210, %cst_112 [1] : vector<8x128xf32> to vector<8xf32>
    %216 = vector.shape_cast %215 : vector<8xf32> to vector<8x1xf32>
    %cst_113 = arith.constant 1.280000e+02 : f32
    %217 = vector.broadcast %cst_113 : f32 to vector<8x1xf32>
    %218 = arith.divf %216, %217 : vector<8x1xf32>
    %219 = vector.broadcast %218 : vector<8x1xf32> to vector<8x128xf32>
    %220 = arith.subf %210, %219 : vector<8x128xf32>
    %221 = arith.mulf %220, %220 : vector<8x128xf32>
    %cst_114 = arith.constant dense<0.000000e+00> : vector<8xf32>
    %222 = vector.multi_reduction <add>, %221, %cst_114 [1] : vector<8x128xf32> to vector<8xf32>
    %223 = vector.shape_cast %222 : vector<8xf32> to vector<8x1xf32>
    %cst_115 = arith.constant 1.280000e+02 : f32
    %224 = vector.broadcast %cst_115 : f32 to vector<8x1xf32>
    %225 = arith.divf %223, %224 : vector<8x1xf32>
    %226 = vector.broadcast %218 : vector<8x1xf32> to vector<8x128xf32>
    %227 = arith.subf %210, %226 : vector<8x128xf32>
    %cst_116 = arith.constant 9.99999974E-6 : f32
    %228 = vector.broadcast %cst_116 : f32 to vector<8x1xf32>
    %229 = arith.addf %225, %228 : vector<8x1xf32>
    %230 = math.rsqrt %229 : vector<8x1xf32>
    %231 = vector.broadcast %230 : vector<8x1xf32> to vector<8x128xf32>
    %232 = arith.mulf %227, %231 : vector<8x128xf32>
    %233 = vector.broadcast %212 : vector<1x128xf32> to vector<8x128xf32>
    %234 = arith.mulf %232, %233 : vector<8x128xf32>
    %235 = vector.broadcast %214 : vector<1x128xf32> to vector<8x128xf32>
    %236 = arith.addf %234, %235 : vector<8x128xf32>
    %237 = arith.truncf %236 : vector<8x128xf32> to vector<8x128xbf16>
    %c2_117 = arith.constant 2 : index
    %c0_118 = arith.constant 0 : index
    %c0_119 = arith.constant 0 : index
    %238 = vector.load %arg4[%c2_117, %c0_118, %c0_119] : memref<3x128x1024xbf16, #tpu.memory_space<vmem>>, vector<1x128x384xbf16>
    %239 = vector.shape_cast %238 : vector<1x128x384xbf16> to vector<128x384xbf16>
    %cst_120 = arith.constant dense<0.000000e+00> : vector<8x384xf32>
    %240 = tpu.matmul %237, %239, %cst_120 {dimension_numbers = #tpu.dot_dimension_numbers<[1], [0], [0], [1], [0, 0, 1, 1], [], []>} : vector<8x128xbf16>, vector<128x384xbf16>, vector<8x384xf32> -> vector<8x384xf32>
    %241 = vector.extract_strided_slice %240 {offsets = [0, 0], sizes = [8, 128], strides = [1, 1]} : vector<8x384xf32> to vector<8x128xf32>
    %c2_121 = arith.constant 2 : index
    %c1_122 = arith.constant 1 : index
    %c0_123 = arith.constant 0 : index
    %242 = vector.load %arg7[%c2_121, %c1_122, %c0_123] : memref<3x16x512xf32, #tpu.memory_space<vmem>>, vector<1x1x128xf32>
    %243 = vector.shape_cast %242 : vector<1x1x128xf32> to vector<1x128xf32>
    %244 = vector.broadcast %243 : vector<1x128xf32> to vector<8x128xf32>
    %245 = arith.addf %241, %244 : vector<8x128xf32>
    %246 = vector.extract_strided_slice %240 {offsets = [0, 128], sizes = [8, 128], strides = [1, 1]} : vector<8x384xf32> to vector<8x128xf32>
    %c2_124 = arith.constant 2 : index
    %c2_125 = arith.constant 2 : index
    %c0_126 = arith.constant 0 : index
    %247 = vector.load %arg7[%c2_124, %c2_125, %c0_126] : memref<3x16x512xf32, #tpu.memory_space<vmem>>, vector<1x1x128xf32>
    %248 = vector.shape_cast %247 : vector<1x1x128xf32> to vector<1x128xf32>
    %249 = vector.broadcast %248 : vector<1x128xf32> to vector<8x128xf32>
    %250 = arith.addf %246, %249 : vector<8x128xf32>
    %251 = vector.extract_strided_slice %240 {offsets = [0, 256], sizes = [8, 128], strides = [1, 1]} : vector<8x384xf32> to vector<8x128xf32>
    %c2_127 = arith.constant 2 : index
    %c3_128 = arith.constant 3 : index
    %c0_129 = arith.constant 0 : index
    %252 = vector.load %arg7[%c2_127, %c3_128, %c0_129] : memref<3x16x512xf32, #tpu.memory_space<vmem>>, vector<1x1x128xf32>
    %253 = vector.shape_cast %252 : vector<1x1x128xf32> to vector<1x128xf32>
    %254 = vector.broadcast %253 : vector<1x128xf32> to vector<8x128xf32>
    %255 = arith.addf %251, %254 : vector<8x128xf32>
    %256 = arith.truncf %245 : vector<8x128xf32> to vector<8x128xbf16>
    %257 = arith.truncf %250 : vector<8x128xf32> to vector<8x128xbf16>
    %cst_130 = arith.constant dense<0.000000e+00> : vector<8x8xf32>
    %258 = tpu.matmul %256, %257, %cst_130 {dimension_numbers = #tpu.dot_dimension_numbers<[1], [1], [0], [0], [0, 0, 1, 0], [], []>} : vector<8x128xbf16>, vector<8x128xbf16>, vector<8x8xf32> -> vector<8x8xf32>
    %cst_131 = arith.constant dense<0xFF800000> : vector<8xf32>
    %259 = vector.multi_reduction <maximumf>, %258, %cst_131 [1] : vector<8x8xf32> to vector<8xf32>
    %260 = vector.shape_cast %259 : vector<8xf32> to vector<8x1xf32>
    %261 = vector.broadcast %260 : vector<8x1xf32> to vector<8x8xf32>
    %262 = arith.subf %258, %261 : vector<8x8xf32>
    %263 = math.exp %262 : vector<8x8xf32>
    %cst_132 = arith.constant dense<0.000000e+00> : vector<8xf32>
    %264 = vector.multi_reduction <add>, %263, %cst_132 [1] : vector<8x8xf32> to vector<8xf32>
    %265 = vector.shape_cast %264 : vector<8xf32> to vector<8x1xf32>
    %266 = tpu.reciprocal %265 {approx = true} : vector<8x1xf32> -> vector<8x1xf32>
    %267 = vector.broadcast %266 : vector<8x1xf32> to vector<8x8xf32>
    %268 = arith.mulf %263, %267 : vector<8x8xf32>
    %269 = arith.truncf %268 : vector<8x8xf32> to vector<8x8xbf16>
    %270 = arith.truncf %255 : vector<8x128xf32> to vector<8x128xbf16>
    %cst_133 = arith.constant dense<0.000000e+00> : vector<8x128xf32>
    %271 = tpu.matmul %269, %270, %cst_133 {dimension_numbers = #tpu.dot_dimension_numbers<[1], [0], [0], [1], [0, 0, 1, 1], [], []>} : vector<8x8xbf16>, vector<8x128xbf16>, vector<8x128xf32> -> vector<8x128xf32>
    %272 = arith.truncf %271 : vector<8x128xf32> to vector<8x128xbf16>
    %c2_134 = arith.constant 2 : index
    %c0_135 = arith.constant 0 : index
    %c384_136 = arith.constant 384 : index
    %273 = vector.load %arg4[%c2_134, %c0_135, %c384_136] : memref<3x128x1024xbf16, #tpu.memory_space<vmem>>, vector<1x128x128xbf16>
    %274 = vector.shape_cast %273 : vector<1x128x128xbf16> to vector<128x128xbf16>
    %cst_137 = arith.constant dense<0.000000e+00> : vector<8x128xf32>
    %275 = tpu.matmul %272, %274, %cst_137 {dimension_numbers = #tpu.dot_dimension_numbers<[1], [0], [0], [1], [0, 0, 1, 1], [], []>} : vector<8x128xbf16>, vector<128x128xbf16>, vector<8x128xf32> -> vector<8x128xf32>
    %c2_138 = arith.constant 2 : index
    %c4_139 = arith.constant 4 : index
    %c0_140 = arith.constant 0 : index
    %276 = vector.load %arg7[%c2_138, %c4_139, %c0_140] : memref<3x16x512xf32, #tpu.memory_space<vmem>>, vector<1x1x128xf32>
    %277 = vector.shape_cast %276 : vector<1x1x128xf32> to vector<1x128xf32>
    %278 = vector.broadcast %277 : vector<1x128xf32> to vector<8x128xf32>
    %279 = arith.addf %275, %278 : vector<8x128xf32>
    %280 = arith.addf %236, %279 : vector<8x128xf32>
    %c2_141 = arith.constant 2 : index
    %c5_142 = arith.constant 5 : index
    %c0_143 = arith.constant 0 : index
    %281 = vector.load %arg7[%c2_141, %c5_142, %c0_143] : memref<3x16x512xf32, #tpu.memory_space<vmem>>, vector<1x1x128xf32>
    %282 = vector.shape_cast %281 : vector<1x1x128xf32> to vector<1x128xf32>
    %c2_144 = arith.constant 2 : index
    %c6_145 = arith.constant 6 : index
    %c0_146 = arith.constant 0 : index
    %283 = vector.load %arg7[%c2_144, %c6_145, %c0_146] : memref<3x16x512xf32, #tpu.memory_space<vmem>>, vector<1x1x128xf32>
    %284 = vector.shape_cast %283 : vector<1x1x128xf32> to vector<1x128xf32>
    %cst_147 = arith.constant dense<0.000000e+00> : vector<8xf32>
    %285 = vector.multi_reduction <add>, %280, %cst_147 [1] : vector<8x128xf32> to vector<8xf32>
    %286 = vector.shape_cast %285 : vector<8xf32> to vector<8x1xf32>
    %cst_148 = arith.constant 1.280000e+02 : f32
    %287 = vector.broadcast %cst_148 : f32 to vector<8x1xf32>
    %288 = arith.divf %286, %287 : vector<8x1xf32>
    %289 = vector.broadcast %288 : vector<8x1xf32> to vector<8x128xf32>
    %290 = arith.subf %280, %289 : vector<8x128xf32>
    %291 = arith.mulf %290, %290 : vector<8x128xf32>
    %cst_149 = arith.constant dense<0.000000e+00> : vector<8xf32>
    %292 = vector.multi_reduction <add>, %291, %cst_149 [1] : vector<8x128xf32> to vector<8xf32>
    %293 = vector.shape_cast %292 : vector<8xf32> to vector<8x1xf32>
    %cst_150 = arith.constant 1.280000e+02 : f32
    %294 = vector.broadcast %cst_150 : f32 to vector<8x1xf32>
    %295 = arith.divf %293, %294 : vector<8x1xf32>
    %296 = vector.broadcast %288 : vector<8x1xf32> to vector<8x128xf32>
    %297 = arith.subf %280, %296 : vector<8x128xf32>
    %cst_151 = arith.constant 9.99999974E-6 : f32
    %298 = vector.broadcast %cst_151 : f32 to vector<8x1xf32>
    %299 = arith.addf %295, %298 : vector<8x1xf32>
    %300 = math.rsqrt %299 : vector<8x1xf32>
    %301 = vector.broadcast %300 : vector<8x1xf32> to vector<8x128xf32>
    %302 = arith.mulf %297, %301 : vector<8x128xf32>
    %303 = vector.broadcast %282 : vector<1x128xf32> to vector<8x128xf32>
    %304 = arith.mulf %302, %303 : vector<8x128xf32>
    %305 = vector.broadcast %284 : vector<1x128xf32> to vector<8x128xf32>
    %306 = arith.addf %304, %305 : vector<8x128xf32>
    %307 = arith.truncf %306 : vector<8x128xf32> to vector<8x128xbf16>
    %c2_152 = arith.constant 2 : index
    %c0_153 = arith.constant 0 : index
    %c512_154 = arith.constant 512 : index
    %308 = vector.load %arg4[%c2_152, %c0_153, %c512_154] : memref<3x128x1024xbf16, #tpu.memory_space<vmem>>, vector<1x128x512xbf16>
    %309 = vector.shape_cast %308 : vector<1x128x512xbf16> to vector<128x512xbf16>
    %cst_155 = arith.constant dense<0.000000e+00> : vector<8x512xf32>
    %310 = tpu.matmul %307, %309, %cst_155 {dimension_numbers = #tpu.dot_dimension_numbers<[1], [0], [0], [1], [0, 0, 1, 1], [], []>} : vector<8x128xbf16>, vector<128x512xbf16>, vector<8x512xf32> -> vector<8x512xf32>
    %c2_156 = arith.constant 2 : index
    %c0_157 = arith.constant 0 : index
    %c0_158 = arith.constant 0 : index
    %311 = vector.load %arg7[%c2_156, %c0_157, %c0_158] : memref<3x16x512xf32, #tpu.memory_space<vmem>>, vector<1x1x512xf32>
    %312 = vector.shape_cast %311 : vector<1x1x512xf32> to vector<1x512xf32>
    %313 = vector.broadcast %312 : vector<1x512xf32> to vector<8x512xf32>
    %314 = arith.addf %310, %313 : vector<8x512xf32>
    %cst_159 = arith.constant 0.000000e+00 : f32
    %315 = vector.broadcast %cst_159 : f32 to vector<8x512xf32>
    %316 = arith.maximumf %314, %315 : vector<8x512xf32>
    %317 = arith.truncf %316 : vector<8x512xf32> to vector<8x512xbf16>
    %c2_160 = arith.constant 2 : index
    %c0_161 = arith.constant 0 : index
    %c0_162 = arith.constant 0 : index
    %318 = vector.load %arg5[%c2_160, %c0_161, %c0_162] : memref<3x512x128xbf16, #tpu.memory_space<vmem>>, vector<1x512x128xbf16>
    %319 = vector.shape_cast %318 : vector<1x512x128xbf16> to vector<512x128xbf16>
    %cst_163 = arith.constant dense<0.000000e+00> : vector<8x128xf32>
    %320 = tpu.matmul %317, %319, %cst_163 {dimension_numbers = #tpu.dot_dimension_numbers<[1], [0], [0], [1], [0, 0, 1, 1], [], []>} : vector<8x512xbf16>, vector<512x128xbf16>, vector<8x128xf32> -> vector<8x128xf32>
    %c2_164 = arith.constant 2 : index
    %c7_165 = arith.constant 7 : index
    %c0_166 = arith.constant 0 : index
    %321 = vector.load %arg7[%c2_164, %c7_165, %c0_166] : memref<3x16x512xf32, #tpu.memory_space<vmem>>, vector<1x1x128xf32>
    %322 = vector.shape_cast %321 : vector<1x1x128xf32> to vector<1x128xf32>
    %323 = vector.broadcast %322 : vector<1x128xf32> to vector<8x128xf32>
    %324 = arith.addf %320, %323 : vector<8x128xf32>
    %325 = arith.addf %306, %324 : vector<8x128xf32>
    %c2_167 = arith.constant 2 : index
    %c8_168 = arith.constant 8 : index
    %c0_169 = arith.constant 0 : index
    %326 = vector.load %arg7[%c2_167, %c8_168, %c0_169] : memref<3x16x512xf32, #tpu.memory_space<vmem>>, vector<1x1x128xf32>
    %327 = vector.shape_cast %326 : vector<1x1x128xf32> to vector<1x128xf32>
    %c2_170 = arith.constant 2 : index
    %c9_171 = arith.constant 9 : index
    %c0_172 = arith.constant 0 : index
    %328 = vector.load %arg7[%c2_170, %c9_171, %c0_172] : memref<3x16x512xf32, #tpu.memory_space<vmem>>, vector<1x1x128xf32>
    %329 = vector.shape_cast %328 : vector<1x1x128xf32> to vector<1x128xf32>
    %cst_173 = arith.constant dense<0.000000e+00> : vector<8xf32>
    %330 = vector.multi_reduction <add>, %325, %cst_173 [1] : vector<8x128xf32> to vector<8xf32>
    %331 = vector.shape_cast %330 : vector<8xf32> to vector<8x1xf32>
    %cst_174 = arith.constant 1.280000e+02 : f32
    %332 = vector.broadcast %cst_174 : f32 to vector<8x1xf32>
    %333 = arith.divf %331, %332 : vector<8x1xf32>
    %334 = vector.broadcast %333 : vector<8x1xf32> to vector<8x128xf32>
    %335 = arith.subf %325, %334 : vector<8x128xf32>
    %336 = arith.mulf %335, %335 : vector<8x128xf32>
    %cst_175 = arith.constant dense<0.000000e+00> : vector<8xf32>
    %337 = vector.multi_reduction <add>, %336, %cst_175 [1] : vector<8x128xf32> to vector<8xf32>
    %338 = vector.shape_cast %337 : vector<8xf32> to vector<8x1xf32>
    %cst_176 = arith.constant 1.280000e+02 : f32
    %339 = vector.broadcast %cst_176 : f32 to vector<8x1xf32>
    %340 = arith.divf %338, %339 : vector<8x1xf32>
    %341 = vector.broadcast %333 : vector<8x1xf32> to vector<8x128xf32>
    %342 = arith.subf %325, %341 : vector<8x128xf32>
    %cst_177 = arith.constant 9.99999974E-6 : f32
    %343 = vector.broadcast %cst_177 : f32 to vector<8x1xf32>
    %344 = arith.addf %340, %343 : vector<8x1xf32>
    %345 = math.rsqrt %344 : vector<8x1xf32>
    %346 = vector.broadcast %345 : vector<8x1xf32> to vector<8x128xf32>
    %347 = arith.mulf %342, %346 : vector<8x128xf32>
    %348 = vector.broadcast %327 : vector<1x128xf32> to vector<8x128xf32>
    %349 = arith.mulf %347, %348 : vector<8x128xf32>
    %350 = vector.broadcast %329 : vector<1x128xf32> to vector<8x128xf32>
    %351 = arith.addf %349, %350 : vector<8x128xf32>
    %352 = arith.truncf %351 : vector<8x128xf32> to vector<8x128xbf16>
    %c0_178 = arith.constant 0 : index
    %c0_179 = arith.constant 0 : index
    %353 = vector.load %arg6[%c0_178, %c0_179] : memref<128x128xbf16, #tpu.memory_space<vmem>>, vector<128x128xbf16>
    %cst_180 = arith.constant dense<0.000000e+00> : vector<8x128xf32>
    %354 = tpu.matmul %352, %353, %cst_180 {dimension_numbers = #tpu.dot_dimension_numbers<[1], [0], [0], [1], [0, 0, 1, 1], [], []>} : vector<8x128xbf16>, vector<128x128xbf16>, vector<8x128xf32> -> vector<8x128xf32>
    %c0_181 = arith.constant 0 : index
    %c10 = arith.constant 10 : index
    %c0_182 = arith.constant 0 : index
    %355 = vector.load %arg7[%c0_181, %c10, %c0_182] : memref<3x16x512xf32, #tpu.memory_space<vmem>>, vector<1x1x128xf32>
    %356 = vector.shape_cast %355 : vector<1x1x128xf32> to vector<1x128xf32>
    %357 = vector.broadcast %356 : vector<1x128xf32> to vector<8x128xf32>
    %358 = arith.addf %354, %357 : vector<8x128xf32>
    %cst_183 = arith.constant dense<0xFF800000> : vector<8xf32>
    %359 = vector.multi_reduction <maximumf>, %358, %cst_183 [1] : vector<8x128xf32> to vector<8xf32>
    %360 = vector.shape_cast %359 : vector<8xf32> to vector<8x1xf32>
    %361 = vector.broadcast %360 : vector<8x1xf32> to vector<8x128xf32>
    %362 = arith.subf %358, %361 : vector<8x128xf32>
    %363 = math.exp %362 : vector<8x128xf32>
    %cst_184 = arith.constant dense<0.000000e+00> : vector<8xf32>
    %364 = vector.multi_reduction <add>, %363, %cst_184 [1] : vector<8x128xf32> to vector<8xf32>
    %365 = vector.shape_cast %364 : vector<8xf32> to vector<8x1xf32>
    %366 = math.log %365 : vector<8x1xf32>
    %367 = arith.addf %360, %366 : vector<8x1xf32>
    %368 = vector.broadcast %367 : vector<8x1xf32> to vector<8x128xf32>
    %369 = arith.subf %358, %368 : vector<8x128xf32>
    %c0_185 = arith.constant 0 : index
    %c0_186 = arith.constant 0 : index
    %c0_187 = arith.constant 0 : index
    %370 = vector.load %arg8[%c0_185, %c0_186, %c0_187] : memref<1x8x128xf32, #tpu.memory_space<vmem>>, vector<1x8x128xf32>
    %371 = vector.shape_cast %370 : vector<1x8x128xf32> to vector<8x128xf32>
    %372 = vector.shape_cast %369 : vector<8x128xf32> to vector<1x8x128xf32>
    tpu.vector_store %arg8[%c0_185, %c0_186, %c0_187], %372 {strides = array<i32>} : memref<1x8x128xf32, #tpu.memory_space<vmem>>, vector<1x8x128xf32>,
    return
  }
  func.func @transform_0(%arg0: i32) -> (i32, i32, i32) {
    %c0_i32 = arith.constant 0 : i32
    %c0_i32_0 = arith.constant 0 : i32
    %c0_i32_1 = arith.constant 0 : i32
    return %arg0, %c0_i32, %c0_i32_0 : i32, i32, i32
  }
  func.func @transform_1(%arg0: i32) -> (i32, i32) {
    %c0_i32 = arith.constant 0 : i32
    %c0_i32_0 = arith.constant 0 : i32
    %c0_i32_1 = arith.constant 0 : i32
    return %c0_i32, %c0_i32_0 : i32, i32
  }
  func.func @transform_2(%arg0: i32) -> (i32, i32) {
    %c0_i32 = arith.constant 0 : i32
    %c0_i32_0 = arith.constant 0 : i32
    %c0_i32_1 = arith.constant 0 : i32
    return %c0_i32, %c0_i32_0 : i32, i32
  }
  func.func @transform_3(%arg0: i32) -> (i32, i32, i32) {
    %c0_i32 = arith.constant 0 : i32
    %c0_i32_0 = arith.constant 0 : i32
    %c0_i32_1 = arith.constant 0 : i32
    %c0_i32_2 = arith.constant 0 : i32
    return %c0_i32, %c0_i32_0, %c0_i32_1 : i32, i32, i32
  }
  func.func @transform_4(%arg0: i32) -> (i32, i32, i32) {
    %c0_i32 = arith.constant 0 : i32
    %c0_i32_0 = arith.constant 0 : i32
    %c0_i32_1 = arith.constant 0 : i32
    %c0_i32_2 = arith.constant 0 : i32
    return %c0_i32, %c0_i32_0, %c0_i32_1 : i32, i32, i32
  }
  func.func @transform_5(%arg0: i32) -> (i32, i32) {
    %c0_i32 = arith.constant 0 : i32
    %c0_i32_0 = arith.constant 0 : i32
    %c0_i32_1 = arith.constant 0 : i32
    return %c0_i32, %c0_i32_0 : i32, i32
  }
  func.func @transform_6(%arg0: i32) -> (i32, i32, i32) {
    %c0_i32 = arith.constant 0 : i32
    %c0_i32_0 = arith.constant 0 : i32
    %c0_i32_1 = arith.constant 0 : i32
    %c0_i32_2 = arith.constant 0 : i32
    return %c0_i32, %c0_i32_0, %c0_i32_1 : i32, i32, i32
  }
  func.func @transform_7(%arg0: i32) -> (i32, i32, i32) {
    %c0_i32 = arith.constant 0 : i32
    %c0_i32_0 = arith.constant 0 : i32
    %c0_i32_1 = arith.constant 0 : i32
    return %arg0, %c0_i32, %c0_i32_0 : i32, i32, i32
  }
}

</mosaic_0001>

<bundles_post_ra>
// kernel: self_attentive_vad.1
= control target key start
LH: loop header
LB: loop body
LE: loop exit
PB: predicated region body
PF: predicated region fallthrough
CT: control target
= control target key end

     0   :  { %12 = vsyncpa [#allocation3], 0  ;;  %s5703_s0 = inlined_call_operand.hbm [shape: f32[2,8,24], index: 0, kind: input, shape index: {}]   ;;  %s5704_s1 = inlined_call_operand.hbm [shape: f32[8,128], index: 1, kind: input, shape index: {}]   ;;  %s5705_s2 = inlined_call_operand.hbm [shape: bf16[24,128], index: 2, kind: input, shape index: {}]   ;;  %s5706_s3 = inlined_call_operand.hbm [shape: bf16[3,128,1024], index: 3, kind: input, shape index: {}]   ;;  %s5707_s4 = inlined_call_operand.hbm [shape: bf16[3,512,128], index: 4, kind: input, shape index: {}]   ;;  %s5708_s5 = inlined_call_operand.hbm [shape: bf16[128,128], index: 5, kind: input, shape index: {}]   ;;  %s5709_s6 = inlined_call_operand.hbm [shape: f32[3,16,512], index: 6, kind: input, shape index: {}]   ;;  %s5710_s7 = inlined_call_operand.vmem [shape: f32[2,8,128], index: 7, kind: output, shape index: {}]  }
   0x1   :  { %14 = vsyncpa [#allocation3 + $0x1], 0 }
   0x2   :  { %15 = vsyncpa [#allocation5], 0 }
   0x3   :  { %16 = vsyncpa [#allocation8], 0 }
   0x4   :  { %17 = vsyncpa [#allocation11], 0  ;;  %s5323_s24 = smov 0   ;;  %s5325_s25 = smov 0  }
   0x5   :  { %s5327_s26 = smov 0   ;;  %s5329_s27 = smov 0  }
   0x6 LB: > { %s5269_s28 = smov [#allocation4]   ;;  %s5344_s30 = sadd.s32 4294967295, %s5267_s27   ;;  %s5267_s27 = sphi %s5329_s27, %s5730_s27   ;;  %s5263_s26 = sphi %s5327_s26, %s5729_s26   ;;  %s5259_s25 = sphi %s5325_s25, %s5728_s25   ;;  %s5255_s24 = sphi %s5323_s24, %s5727_s24  }
   0x7   : > { %s219_s29 = sshll.u32 %s5269_s28, 4  ;;  %p4079_p0 = scmp.ge.s32.totalorder %s5267_s27, 1  ;;  %s220_s29 = int_to_ptr.vmem [resolvable:$true] %s219_s29 }
   0x8   : > { %p5711_p1 = scmp.eq.s32.totalorder %s5344_s30, 0  ;;  %p206_p2 = scmp.lt.s32.totalorder %s5267_s27, 3 }
   0x9   : > { %s5270_s9 = smov [#allocation7]   ;;  %s5271_s12 = smov [#allocation10]  }
   0xa   : > { %p5349_p3 = pnand %p4079_p0, %p206_p2  ;;  %s242_s10 = sshll.u32 %s5270_s9, 4  ;;  %s5355_s10 = int_to_ptr.vmem [resolvable:$true] %s242_s10 }
   0xb   : > { %s268_s13 = sshll.u32 %s5271_s12, 4  ;;  %s5048_s15 = scalar_lea.vmem %s220_s29, 128  ;;  %s269_s13 = int_to_ptr.vmem [resolvable:$true] %s268_s13 }
   0xc   : > { %s5714_s8 = scalar_select %p5349_p3, 1, 0 }
   0xd   : > { %p4822_p4 = pneg %p5349_p3  ;;  %p5049_p7 = scmp.ne.s32.totalorder %s220_s29, %s5048_s15 }
   0xe   : > { %p5056_p10 = scmp.lt.s32.totalorder %s220_s29, %s220_s29  ;;  %p5057_p11 = scmp.lt.s32.totalorder %s5048_s15, %s5048_s15 }
   0xf   : > { %p5359_p5 = pnand %p4822_p4, %p5711_p1 }
  0x10   : > { %p5058_p12 = por %p5057_p11, %p5056_p10 }
  0x11   : > { %p5365_p6 = pneg %p5359_p5 }
  0x13   : > { %p5051_p8 = pnand %p5049_p7, %p5365_p6 }
  0x15   : > { %p5052_p9 = pneg %p5051_p8 }
  0x17   : > { %p5059_p13 = pnand %p5058_p12, %p5052_p9 }
  0x19   : > { %5062 = shalt.err (!%p5059_p13)
}
  0x1a   : > { %4825 = dma.hbm_to_vmem [thread:$0]  (!%p5359_p5), %s5704_s1, 128, %s220_s29, [#allocation5]  }
  0x1b   : > { %s5074_s18 = scalar_lea.vmem %s5355_s10, 24576  ;;  %p5082_p7 = scmp.lt.s32.totalorder %s5355_s10, %s5355_s10 }
  0x1c   : > { %p5075_p0 = scmp.ne.s32.totalorder %s5355_s10, %s5074_s18  ;;  %p5083_p8 = scmp.lt.s32.totalorder %s5074_s18, %s5074_s18 }
  0x1e   : > { %p5077_p2 = pnand %p5075_p0, %p5365_p6  ;;  %p5084_p9 = por %p5083_p8, %p5082_p7 }
  0x20   : > { %p5078_p4 = pneg %p5077_p2 }
  0x22   : > { %p5085_p10 = pnand %p5084_p9, %p5078_p4 }
  0x24   : > { %5088 = shalt.err (!%p5085_p10)
}
  0x25   : > { %s5272_s19 = smov 512   ;;  %s5273_s20 = smov 32  }
  0x26   : > { %4831 = dma.hbm_to_vmem [thread:$0]  (!%p5359_p5), %s5706_s3, 24576, %s5355_s10, [#allocation8], %s5272_s19, %s5272_s19, %s5273_s20  }
  0x27   : > { %s5100_s23 = scalar_lea.vmem %s269_s13, 1024  ;;  %p5108_p0 = scmp.lt.s32.totalorder %s269_s13, %s269_s13 }
  0x28   : > { %p5101_p11 = scmp.ne.s32.totalorder %s269_s13, %s5100_s23  ;;  %p5109_p2 = scmp.lt.s32.totalorder %s5100_s23, %s5100_s23 }
  0x2a   : > { %p5103_p12 = pnand %p5101_p11, %p5365_p6  ;;  %p5110_p4 = por %p5109_p2, %p5108_p0 }
  0x2c   : > { %p5104_p13 = pneg %p5103_p12 }
  0x2e   : > { %p5111_p7 = pnand %p5110_p4, %p5104_p13 }
  0x30   : > { %5114 = shalt.err (!%p5111_p7)
}
  0x31   : > { %s5274_s28 = smov 64   ;;  %s5275_s29 = smov 4  }
  0x32   : > { %4837 = dma.hbm_to_vmem [thread:$0]  (!%p5359_p5), %s5708_s5, 1024, %s269_s13, [#allocation11], %s5274_s28, %s5274_s28, %s5275_s29  }
  0x33   : > { %s5276_s12 = smov [#allocation6]   ;;  %s5277_s16 = smov [#allocation9]  }
  0x34   : > { %s229_s15 = sshll.u32 %s5276_s12, 4  ;;  %s255_s17 = sshll.u32 %s5277_s16, 4  ;;  %s230_s15 = int_to_ptr.vmem [resolvable:$true] %s229_s15  ;;  %s256_s17 = int_to_ptr.vmem [resolvable:$true] %s255_s17 }
  0x35   : > { %s5126_s18 = scalar_lea.vmem %s230_s15, 192  ;;  %p5134_p11 = scmp.lt.s32.totalorder %s230_s15, %s230_s15 }
  0x36   : > { %p5127_p8 = scmp.ne.s32.totalorder %s230_s15, %s5126_s18  ;;  %p5135_p12 = scmp.lt.s32.totalorder %s5126_s18, %s5126_s18 }
  0x38   : > { %p5129_p9 = pnand %p5127_p8, %p5365_p6  ;;  %p5136_p13 = por %p5135_p12, %p5134_p11 }
  0x3a   : > { %p5130_p10 = pneg %p5129_p9 }
  0x3c   : > { %p5137_p0 = pnand %p5136_p13, %p5130_p10 }
  0x3e   : > { %5140 = shalt.err (!%p5137_p0)
}
  0x3f   : > { %4828 = dma.hbm_to_vmem [thread:$0]  (!%p5359_p5), %s5705_s2, 192, %s230_s15, [#allocation5], %s5274_s28, %s5274_s28, %s5275_s29  }
  0x40   : > { %s5152_s22 = scalar_lea.vmem %s256_s17, 12288  ;;  %p5160_p8 = scmp.lt.s32.totalorder %s256_s17, %s256_s17 }
  0x41   : > { %p5153_p2 = scmp.ne.s32.totalorder %s256_s17, %s5152_s22  ;;  %p5161_p9 = scmp.lt.s32.totalorder %s5152_s22, %s5152_s22 }
  0x43   : > { %p5155_p4 = pnand %p5153_p2, %p5365_p6  ;;  %p5162_p10 = por %p5161_p9, %p5160_p8 }
  0x45   : > { %p5156_p7 = pneg %p5155_p4 }
  0x47   : > { %p5163_p11 = pnand %p5162_p10, %p5156_p7 }
  0x49   : > { %5166 = shalt.err (!%p5163_p11)
}
  0x4a   : > { %4834 = dma.hbm_to_vmem [thread:$0]  (!%p5359_p5), %s5707_s4, 12288, %s256_s17, [#allocation8], %s5274_s28, %s5274_s28, %s5275_s29  }
  0x4b   : > { %s5278_s10 = smov [#allocation12]  }
  0x4c   : > { %s281_s12 = sshll.u32 %s5278_s10, 4  ;;  %s282_s12 = int_to_ptr.vmem [resolvable:$true] %s281_s12 }
  0x4d   : > { %s5178_s15 = scalar_lea.vmem %s282_s12, 3072  ;;  %p5186_p2 = scmp.lt.s32.totalorder %s282_s12, %s282_s12 }
  0x4e   : > { %p5179_p12 = scmp.ne.s32.totalorder %s282_s12, %s5178_s15  ;;  %p5187_p4 = scmp.lt.s32.totalorder %s5178_s15, %s5178_s15 }
  0x50   : > { %p5181_p13 = pnand %p5179_p12, %p5365_p6  ;;  %p5188_p7 = por %p5187_p4, %p5186_p2 }
  0x52   : > { %p5182_p0 = pneg %p5181_p13 }
  0x54   : > { %p5189_p8 = pnand %p5188_p7, %p5182_p0 }
  0x56   : > { %5192 = shalt.err (!%p5189_p8)
}
  0x57   : > { %4840 = dma.hbm_to_vmem [thread:$0]  (!%p5359_p5), %s5709_s6, 3072, %s282_s12, [#allocation11], %s5272_s19, %s5272_s19, %s5273_s20  }
  0x58   : > { %s5432_s11 = sadd.s32 1, %s5267_s27   ;;  %s30_s14 = sadd.s32 1, %s5263_s26 }
  0x59   : > { %s27_s29 = ssub.s32 %s5267_s27, %s5432_s11  ;;  %p37_p6 = scmp.ne.s32.totalorder %s5263_s26, %s5259_s25 }
  0x5a   : > { %p28_p9 = scmp.eq.s32.totalorder %s27_s29, 0  ;;  %p38_p10 = scmp.eq.s32.totalorder %s5267_s27, 0 }
  0x5b   : > { %p43_p11 = scmp.ne.s32.totalorder %s5259_s25, %s5255_s24  ;;  %p4851_p12 = scmp.lt.s32.totalorder %s5267_s27, 2 }
  0x5c   : > { %s5444_s17 = scalar_select %p28_p9, %s5263_s26, %s30_s14  }
  0x5d   : > { %p39_p13 = por %p38_p10, %p37_p6  ;;  %p5448_p0 = por %p5711_p1, %p43_p11 }
  0x5e   : > { %s295_s13 = sand.u32 1, %s5263_s26   ;;  %s4088_s19 = sshll.u32 %s5267_s27, 7 }
  0x5f   : > { %s5717_s18 = scalar_select %p5448_p0, 1, 0 }
  0x60   : > { %s4087_s20 = sshll.u32 %s295_s13, 3  ;;  %s5457_s23 = scalar_lea.hbm %s5703_s0, %s4088_s19 }
  0x61   : > { %s299_s24 = scalar_lea.vmem [#allocation2], %s4087_s20  ;;  %p5459_p5 = pnand %p4851_p12, %p39_p13 }
  0x62   : > { %s306_s9 = sshll.u32 %s299_s24, 4  ;;  %s296_s12 = scalar_lea.sflag [#allocation3], %s295_s13  ;;  %s307_s9 = int_to_ptr.vmem [resolvable:$true] %s306_s9 }
  0x63   : > { %s5193_s15 = scalar_lea.hbm %s5457_s23, 128  ;;  %p5195_p4 = pneg %p5459_p5 }
  0x64   : > { %p5194_p2 = scmp.ne.s32.totalorder %s5457_s23, %s5193_s15  ;;  %s5198_s28 = scalar_lea.hbm %s5703_s0, 256 }
  0x65   : > { %p5199_p6 = scmp.lt.s32.totalorder %s5457_s23, %s5703_s0  ;;  %p5200_p9 = scmp.lt.s32.totalorder %s5198_s28, %s5193_s15 }
  0x66   : > { %p5196_p7 = pnand %p5195_p4, %p5194_p2 }
  0x67   : > { %p5201_p10 = por %p5200_p9, %p5199_p6 }
  0x68   : > { %p5197_p8 = pneg %p5196_p7 }
  0x6a   : > { %p5202_p11 = pnand %p5201_p10, %p5197_p8 }
  0x6c   : > { %5205 = shalt.err (!%p5202_p11)
}
  0x6d   : > { %s5206_s19 = scalar_lea.vmem %s307_s9, 128  ;;  %s5279_s13 = smov [#allocation2]  }
  0x6e   : > { %p5207_p12 = scmp.ne.s32.totalorder %s307_s9, %s5206_s19  ;;  %s5211_s20 = sshll.u32 %s5279_s13, 4  ;;  %s5212_s20 = int_to_ptr.vmem [resolvable:$false] %s5211_s20 }
  0x6f   : > { %s5213_s21 = scalar_lea.vmem %s5212_s20, 256  ;;  %p5214_p2 = scmp.lt.s32.totalorder %s307_s9, %s5212_s20 }
  0x70   : > { %p5209_p13 = pnand %p5207_p12, %p5195_p4  ;;  %p5215_p7 = scmp.lt.s32.totalorder %s5213_s21, %s5206_s19 }
  0x72   : > { %p5210_p1 = pneg %p5209_p13  ;;  %p5216_p0 = por %p5215_p7, %p5214_p2 }
  0x74   : > { %p5217_p3 = pnand %p5216_p0, %p5210_p1 }
  0x76   : > { %5220 = shalt.err (!%p5217_p3)
}
  0x77   : > { %4844 = dma.hbm_to_vmem [thread:$0]  (!%p5459_p5), %s5457_s23, 128, %s307_s9, %s296_s12  }
  0x78   : > { %p5719_p8 = scmp.ne.s32.totalorder %s5714_s8, 0 }
  0x79   : > { %s317_s22 = sand.u32 (!%p5719_p8), 1, %s5259_s25   ;;  %p5720_p4 = scmp.ne.s32.totalorder (!%p5719_p8), %s5717_s18, 0 }
  0x7a   : > { %315 = sbr.rel (%p5719_p8) target bundleno = 7231 (0x1c3f), region = 48  ;;  %s4090_s24 = sshll.u32 (!%p5719_p8), %s317_s22, 3 }
  0x7b   : > { %s318_s15 = scalar_lea.sflag (!%p5719_p8), [#allocation3], %s317_s22  ;;  %s321_s27 = scalar_lea.vmem (!%p5719_p8), [#allocation2], %s4090_s24 }
  0x7f   : > { %5238 = dma.done.wait (%p5720_p4), %s318_s15, 128  }
  0x80   : > { %5240 = vsyncadd (%p5720_p4), %s318_s15, 4294967168  ;;  %p5721_p1 = scmp.eq.s32.totalorder %s5344_s30, 0 }
  0x82   : > { %5242 = dma.done.wait (%p5721_p1), [#allocation5], 320   ;;  %p5722_p3 = pmov %p5721_p1 }
  0x83   : > { %p5723_p0 = pmov %p5721_p1 }
  0x84   : > { %5244 = vsyncadd (%p5722_p3), [#allocation5], 4294966976 }
  0x85   : > { %5246 = dma.done.wait (%p5723_p0), [#allocation8], 36864   ;;  %p5724_p5 = pmov %p5723_p0 }
  0x86   : > { %p5725_p6 = pmov %p5723_p0 }
  0x87   : > { %5248 = vsyncadd (%p5724_p5), [#allocation8], 4294930432 }
  0x88   : > { %5250 = dma.done.wait (%p5725_p6), [#allocation11], 4096   ;;  %p5726_p9 = pmov %p5723_p0 }
  0x89   : > { %v5280_v0 = vmov 0.0   ;;  %vm5281_vm0 = vmmov 0   ;;  %vm399_vm1 = vcmask 1043456   ;;  %v4903_v1 = vld [vmem:[#allocation6 + $0x8] ss:$0 sps:$4 sm:$0xff]   ;;  %v4904_v3 = vld [vmem:[#allocation6] sm:$0xff]  }
  0x8a   : > { %5252 = vsyncadd (%p5726_p9), [#allocation11], 4294963200  ;;  %4612 = vmatprep.subr.bf16.mxu0 %v5280_v0  ;;  %4616 = vmatprep.mubr.msk.bf16.mxu0 %vm5281_vm0, %v5280_v0  ;;  %v401_v2 = vsel %vm399_vm1, %v4903_v1, 0  ;;  %v472_v4 = vld [vmem:[#allocation7 + $0x1c0] sm:$0xff]  ;;  %v473_v11 = vld [vmem:[#allocation7 + $0x1c8] sm:$0xf] }
  0x8b   : > { %v474_v5 = vld [vmem:[#allocation7 + $0x1e0] sm:$0xff]  ;;  %4613 = vmatpush3.bf16.msra.mxu0 %v401_v2  ;;  %v475_v12 = vld [vmem:[#allocation7 + $0x1e8] sm:$0xf]  ;;  %vm395_vm2 = vcmask 195584   ;;  %v5282_v62 = vmov 0   ;;  %v385_v63 = vld [vmem:[#allocation4] sm:$0xff] }
  0x8c   : > { %v380_v6 = vld [vmem:[%s321_s27] sm:$0xff]  ;;  %v4123_v7 = vcombine.high %v472_v4, %v474_v5  ;;  %v4122_v8 = vcombine.low %v472_v4, %v474_v5  ;;  %4614 = vmatprep.subr.bf16.mxu0 %v5280_v0  ;;  %v4124_v18 = vcombine.low %v473_v11, %v475_v12  ;;  %636 = vmatprep.mubr.bf16.mxu1 %v5282_v62  ;;  %vm733_vm3 = vcmask 64512   ;;  %p375_p10 = scmp.lt.s32.totalorder %s5344_s30, 1 }
  0x8d   : > { %v468_v9 = vld [vmem:[#allocation7 + $0x180] sm:$0xff]  ;;  %v381_v16 = vpack.c.bf16 %v380_v6, %v380_v6  ;;  %v469_v19 = vld [vmem:[#allocation7 + $0x188] sm:$0xf] }
  0x8e   : > { %v470_v10 = vld [vmem:[#allocation7 + $0x1a0] sm:$0xff]  ;;  %604 = vmatprep.subr.bf16.mxu1 %v4123_v7  ;;  %v471_v21 = vld [vmem:[#allocation7 + $0x1a8] sm:$0xf]  ;;  %s5732_s30 = smov (!%p375_p10, %s5344_s30), 1 }
  0x8f   : > { %v4120_v13 = vcombine.high %v468_v9, %v470_v10  ;;  %v464_v14 = vld [vmem:[#allocation7 + $0x140] sm:$0xff]  ;;  %605 = vmatpush1.bf16.msra.mxu1 %v4122_v8  ;;  %v4119_v17 = vcombine.low %v468_v9, %v470_v10  ;;  %4615 = vmatpush3.bf16.msra.mxu0 %v4904_v3  ;;  %v465_v25 = vld [vmem:[#allocation7 + $0x148] sm:$0xf]  ;;  %v4121_v27 = vcombine.low %v469_v19, %v471_v21  ;;  %s4097_s8 = sshll.u32 %s5732_s30, 3 }
  0x90   : > { %v466_v15 = vld [vmem:[#allocation7 + $0x160] sm:$0xff]  ;;  %4620 = vmatprep.subr.bf16.mxu0 %v5280_v0  ;;  %v467_v26 = vld [vmem:[#allocation7 + $0x168] sm:$0xf]  ;;  %s378_s9 = scalar_lea.vmem %s5710_s7, %s4097_s8 }
  0x91   : > { %606 = vmatprep.subr.bf16.mxu1 %v4120_v13  ;;  %v4117_v20 = vcombine.high %v464_v14, %v466_v15  ;;  %v460_v22 = vld [vmem:[#allocation7 + $0x100] sm:$0xff]  ;;  %v4116_v24 = vcombine.low %v464_v14, %v466_v15  ;;  %v461_v32 = vld [vmem:[#allocation7 + $0x108] sm:$0xf]  ;;  %v4118_v36 = vcombine.low %v465_v25, %v467_v26 }
  0x92   : > { %v462_v23 = vld [vmem:[#allocation7 + $0x120] sm:$0xff]  ;;  %4617 = vmatmul.mubr.msk.bf16.vlgmr.msra.gmra.mxu0 %vm395_vm2, %v381_v16  ;;  %v463_v33 = vld [vmem:[#allocation7 + $0x128] sm:$0xf] }
  0x93   : > { %607 = vmatpush1.bf16.msra.mxu1 %v4119_v17  ;;  %4621 = vmatpush3.bf16.msra.mxu0 %v4124_v18  ;;  %v4114_v28 = vcombine.high %v460_v22, %v462_v23  ;;  %v456_v29 = vld [vmem:[#allocation7 + $0xc0] sm:$0xff]  ;;  %v4113_v31 = vcombine.low %v460_v22, %v462_v23  ;;  %v457_v39 = vld [vmem:[#allocation7 + $0xc8] sm:$0xf]  ;;  %v4115_v43 = vcombine.low %v461_v32, %v463_v33 }
  0x94   : > { %608 = vmatprep.subr.bf16.mxu1 %v4117_v20  ;;  %v458_v30 = vld [vmem:[#allocation7 + $0xe0] sm:$0xff]  ;;  %4622 = vmatprep.subr.bf16.mxu0 %v5280_v0  ;;  %v459_v40 = vld [vmem:[#allocation7 + $0xe8] sm:$0xf] }
  0x95   : > { %4636 = vmatprep.mubr.msk.bf16.mxu0 %vm5281_vm0, %v5280_v0  ;;  %v452_v34 = vld [vmem:[#allocation7 + $0x80] sm:$0xff]  ;;  %v4111_v37 = vcombine.high %v456_v29, %v458_v30  ;;  %v4110_v38 = vcombine.low %v456_v29, %v458_v30  ;;  %v453_v46 = vld [vmem:[#allocation7 + $0x88] sm:$0xf]  ;;  %v4112_v48 = vcombine.low %v457_v39, %v459_v40  ;;  %v807_v39 = vld [vmem:[#allocation7 + $0x1ac] sm:$0xf] }
  0x96   : > { %v454_v35 = vld [vmem:[#allocation7 + $0xa0] sm:$0xff]  ;;  %v455_v47 = vld [vmem:[#allocation7 + $0xa8] sm:$0xf] }
  0x97   : > { %609 = vmatpush1.bf16.msra.mxu1 %v4116_v24  ;;  %4623 = vmatpush3.bf16.msra.mxu0 %v4121_v27  ;;  %v448_v41 = vld [vmem:[#allocation7 + $0x40] sm:$0xff]  ;;  %v4108_v44 = vcombine.high %v452_v34, %v454_v35  ;;  %v4107_v45 = vcombine.low %v452_v34, %v454_v35  ;;  %v449_v51 = vld [vmem:[#allocation7 + $0x48] sm:$0xf]  ;;  %v4109_v53 = vcombine.low %v453_v46, %v455_v47  ;;  %v808_v35 = vld [vmem:[#allocation7 + $0x1cc] sm:$0xf] }
  0x98   : > { %610 = vmatprep.subr.bf16.mxu1 %v4114_v28  ;;  %4624 = vmatprep.subr.bf16.mxu0 %v5280_v0  ;;  %v450_v42 = vld [vmem:[#allocation7 + $0x60] sm:$0xff]  ;;  %v451_v52 = vld [vmem:[#allocation7 + $0x68] sm:$0xf]  ;;  %v800_v47 = vld [vmem:[#allocation7 + $0xcc] sm:$0xf] }
  0x99   : > { %v4105_v49 = vcombine.high %v448_v41, %v450_v42  ;;  %v4104_v50 = vcombine.low %v448_v41, %v450_v42  ;;  %v4106_v54 = vcombine.low %v449_v51, %v451_v52  ;;  %v444_v55 = vld [vmem:[#allocation7] sm:$0xff]  ;;  %v445_v58 = vld [vmem:[#allocation7 + $0x8] sm:$0xf]  ;;  %v804_v41 = vld [vmem:[#allocation7 + $0x14c] sm:$0xf] }
  0x9a   : > { %v446_v56 = vld [vmem:[#allocation7 + $0x20] sm:$0xff]  ;;  %v447_v59 = vld [vmem:[#allocation7 + $0x28] sm:$0xf]  ;;  %v805_v42 = vld [vmem:[#allocation7 + $0x16c] sm:$0xf] }
  0x9b   : > { %611 = vmatpush1.bf16.msra.mxu1 %v4113_v31  ;;  %4625 = vmatpush3.bf16.msra.mxu0 %v4118_v36  ;;  %v4102_v57 = vcombine.high %v444_v55, %v446_v56  ;;  %v4101_v60 = vcombine.low %v444_v55, %v446_v56  ;;  %v4103_v61 = vcombine.low %v445_v58, %v447_v59  ;;  %v689_v7 = vld [vmem:[#allocation12 + $0x3] ss:$0 sm:$0xff]  ;;  %v687_v10 = vld [vmem:[#allocation12 + $0x2] ss:$0 sm:$0xff]  ;;  %v685_v18 = vld [vmem:[#allocation12 + $0x1] ss:$0 sm:$0xff] }
  0x9c   : > { %612 = vmatprep.subr.bf16.mxu1 %v4111_v37  ;;  %4626 = vmatprep.subr.bf16.mxu0 %v5280_v0  ;;  %v809_v36 = vld [vmem:[#allocation7 + $0x1ec] sm:$0xf] }
  0x9d   : > { %v806_v37 = vld [vmem:[#allocation7 + $0x18c] sm:$0xf] }
  0x9e   : > { %v4132_v40 = vcombine.low %v806_v37, %v807_v39  ;;  %v799_v51 = vld [vmem:[#allocation7 + $0xac] sm:$0xf]  ;;  %v940_v37 = vld [vmem:[#allocation7 + $0x178] sm:$0xff] }
  0x9f   : > { %613 = vmatpush1.bf16.msra.mxu1 %v4110_v38  ;;  %4627 = vmatpush3.bf16.msra.mxu0 %v4115_v43  ;;  %v4133_v38 = vcombine.low %v808_v35, %v809_v36  ;;  %v4131_v43 = vcombine.low %v804_v41, %v805_v42  ;;  %v938_v35 = vld [vmem:[#allocation7 + $0x158] sm:$0xff]  ;;  %v933_v41 = vld [vmem:[#allocation7 + $0x110] sm:$0xff] }
  0xa0   : > { %614 = vmatprep.subr.bf16.mxu1 %v4108_v44  ;;  %4628 = vmatprep.subr.bf16.mxu0 %v5280_v0  ;;  %v802_v44 = vld [vmem:[#allocation7 + $0x10c] sm:$0xf]  ;;  %v4156_v39 = vcombine.low %v938_v35, %v940_v37  ;;  %v935_v42 = vld [vmem:[#allocation7 + $0x130] sm:$0xff] }
  0xa3   : > { %615 = vmatpush1.bf16.msra.mxu1 %v4107_v45  ;;  %4629 = vmatpush3.bf16.msra.mxu0 %v4112_v48  ;;  %v803_v45 = vld [vmem:[#allocation7 + $0x12c] sm:$0xf] }
  0xa4   : > { %616 = vmatprep.subr.bf16.mxu1 %v4105_v49  ;;  %4630 = vmatprep.subr.bf16.mxu0 %v5280_v0  ;;  %v4130_v46 = vcombine.low %v802_v44, %v803_v45  ;;  %v801_v48 = vld [vmem:[#allocation7 + $0xec] sm:$0xf]  ;;  %v4150_v44 = vcombine.low %v933_v41, %v935_v42  ;;  %v4151_v45 = vcombine.high %v933_v41, %v935_v42  ;;  %v4917_v41 = vld [vmem:[#allocation9 + $0x60] sm:$0xff]  }
  0xa5   : > { %v4129_v49 = vcombine.low %v800_v47, %v801_v48  ;;  %v929_v47 = vld [vmem:[#allocation7 + $0xd0] sm:$0xff]  ;;  %v4918_v42 = vld [vmem:[#allocation9 + $0xe0] sm:$0xff]  }
  0xa6   : > { %v931_v48 = vld [vmem:[#allocation7 + $0xf0] sm:$0xff] }
  0xa7   : > { %617 = vmatpush1.bf16.msra.mxu1 %v4104_v50  ;;  %4631 = vmatpush3.bf16.msra.mxu0 %v4109_v53  ;;  %v798_v50 = vld [vmem:[#allocation7 + $0x8c] sm:$0xf] }
  0xa8   : > { %4632 = vmatprep.subr.bf16.mxu0 %v5280_v0  ;;  %618 = vmatprep.subr.bf16.mxu1 %v4102_v57  ;;  %v4128_v52 = vcombine.low %v798_v50, %v799_v51  ;;  %v796_v53 = vld [vmem:[#allocation7 + $0x4c] sm:$0xf]  ;;  %v4147_v51 = vcombine.high %v929_v47, %v931_v48 }
  0xab   : > { %4633 = vmatpush3.bf16.msra.mxu0 %v4106_v54  ;;  %619 = vmatpush1.bf16.msra.mxu1 %v4101_v60  ;;  %v797_v54 = vld [vmem:[#allocation7 + $0x6c] sm:$0xf] }
  0xac   : > { %4634 = vmatprep.subr.bf16.mxu0 %v5280_v0  ;;  %4640 = vmatprep.subr.bf16.mxu1 %v5280_v0  ;;  %v4127_v55 = vcombine.low %v796_v53, %v797_v54  ;;  %v794_v60 = vld [vmem:[#allocation7 + $0xc] sm:$0xf]  ;;  %v932_v53 = vld [vmem:[#allocation7 + $0xf8] sm:$0xff]  ;;  %v925_v54 = vld [vmem:[#allocation7 + $0x90] sm:$0xff] }
  0xaf   : > { %4635 = vmatpush3.bf16.msra.mxu0 %v4103_v61  ;;  %v795_v61 = vld [vmem:[#allocation7 + $0x2c] sm:$0xf] }
  0xb0   : > { %4646 = vmatprep.subr.bf16.mxu0 %v5280_v0 }
 0x152   : > { %v437_v1 = vpop.f32.mrf.mxu0 }
 0x153   : > { %v5514_v2 = vadd.f32 %v437_v1, %v385_v63  ;;  %v4126_v63 = vcombine.low %v794_v60, %v795_v61 }
 0x154   : > { %v4618_v3 = vpop.f32.mrf.mxu0 }
 0x155   : > { %v443_v4 = vpack.c.bf16 %v5514_v2, %v5514_v2 }
 0x156   : > { %v440_v5 = vpop.f32.mrf.mxu0 }
 0x157   : > { %637 = vmatmul.mubr.bf16.vlgmr.msra.gmra.mxu1 %v443_v4  ;;  %4637 = vmatmul.mubr.bf16.vlgmr.msra.gmra.mxu0 %v443_v4 }
 0x158   : > { %v4619_v6 = vpop.f32.mrf.mxu0  ;;  %4642 = vmatprep.mubr.msk.bf16.mxu1 %vm5281_vm0, %v5280_v0  ;;  %4648 = vmatprep.mubr.msk.bf16.mxu0 %vm5281_vm0, %v5280_v0 }
 0x217   : > { %v638_v8 = vpop.f32.mrf.mxu1  ;;  %v679_v9 = vpop.f32.mrf.mxu0 }
 0x218   : > { %v690_v11 = vadd.f32 %v689_v7, %v679_v9  ;;  %v686_v23 = vadd.f32 %v685_v18, %v638_v8  ;;  %v810_v7 = vld [vmem:[#allocation12 + $0x4] ss:$0 sm:$0xff] }
 0x219   : > { %v640_v12 = vpop.f32.mrf.mxu1  ;;  %v4638_v13 = vpop.f32.mrf.mxu0 }
 0x21a   : > { %v746_v14 = vpack.c.bf16 %v690_v11, %v690_v11  ;;  %v688_v15 = vadd.f32 %v687_v10, %v640_v12  ;;  %v691_v24 = vpack.c.bf16 %v686_v23, %v686_v23 }
 0x21b   : > { %v642_v16 = vpop.f32.mrf.mxu1  ;;  %v682_v17 = vpop.f32.mrf.mxu0 }
 0x21c   : > { %v751_v19 = vsel %vm399_vm1, %v746_v14, 0  ;;  %v692_v20 = vpack.c.bf16 %v688_v15, %v688_v15  ;;  %v945_v14 = vld [vmem:[#allocation7 + $0x1d0] sm:$0xff]  ;;  %v946_v16 = vld [vmem:[#allocation7 + $0x1d8] sm:$0xff] }
 0x21d   : > { %v643_v21 = vpop.f32.mrf.mxu1  ;;  %v4639_v22 = vpop.f32.mrf.mxu0  ;;  %4647 = vmatpush3.bf16.msra.mxu0 %v751_v19  ;;  %v947_v15 = vld [vmem:[#allocation7 + $0x1f0] sm:$0xff]  ;;  %v948_v19 = vld [vmem:[#allocation7 + $0x1f8] sm:$0xff] }
 0x21e   : > { %4641 = vmatpush3.bf16.xpose.msra.mxu1 %v692_v20  ;;  %v4162_v17 = vcombine.low %v945_v14, %v947_v15  ;;  %v4163_v18 = vcombine.high %v945_v14, %v947_v15  ;;  %v941_v20 = vld [vmem:[#allocation7 + $0x190] sm:$0xff]  ;;  %v4164_v22 = vcombine.low %v946_v16, %v948_v19  ;;  %v4165_v23 = vcombine.high %v946_v16, %v948_v19 }
 0x21f   : > { %4652 = vmatprep.subr.bf16.mxu1 %v5280_v0  ;;  %v943_v21 = vld [vmem:[#allocation7 + $0x1b0] sm:$0xff] }
 0x220   : > { %1131 = vmatprep.subr.bf16.mxu0 %v4163_v18 }
 0x225   : > { %4643 = vmatmul.mubr.bf16.vlgmr.msra.gmra.mxu1 %v691_v24  ;;  %v4159_v24 = vcombine.high %v941_v20, %v943_v21 }
 0x226   : > { %4668 = vmatprep.mubr.msk.bf16.mxu1 %vm5281_vm0, %v5280_v0  ;;  %4653 = vmatpush3.bf16.msra.mxu1 %v4133_v38 }
 0x227   : > { %4654 = vmatprep.subr.bf16.mxu1 %v5280_v0 }
 0x22a   : > { %4655 = vmatpush3.bf16.msra.mxu1 %v4132_v40  ;;  %v4157_v40 = vcombine.high %v938_v35, %v940_v37  ;;  %v4910_v35 = vld [vmem:[#allocation9 + $0xf0] sm:$0xff]  }
 0x22b   : > { %4656 = vmatprep.subr.bf16.mxu1 %v5280_v0  ;;  %v4912_v37 = vld [vmem:[#allocation9 + $0xb0] sm:$0xff]  }
 0x22e   : > { %4657 = vmatpush3.bf16.msra.mxu1 %v4131_v43  ;;  %v934_v43 = vld [vmem:[#allocation7 + $0x118] sm:$0xff] }
 0x22f   : > { %4658 = vmatprep.subr.bf16.mxu1 %v5280_v0 }
 0x232   : > { %4659 = vmatpush3.bf16.msra.mxu1 %v4130_v46  ;;  %v936_v46 = vld [vmem:[#allocation7 + $0x138] sm:$0xff] }
 0x233   : > { %4660 = vmatprep.subr.bf16.mxu1 %v5280_v0  ;;  %v4153_v50 = vcombine.high %v934_v43, %v936_v46 }
 0x236   : > { %4661 = vmatpush3.bf16.msra.mxu1 %v4129_v49  ;;  %v4152_v49 = vcombine.low %v934_v43, %v936_v46  ;;  %v4919_v43 = vld [vmem:[#allocation9 + $0x20] sm:$0xff]   ;;  %v4922_v46 = vld [vmem:[#allocation9 + $0xd8] sm:$0xff]  }
 0x237   : > { %4662 = vmatprep.subr.bf16.mxu1 %v5280_v0 }
 0x23a   : > { %4663 = vmatpush3.bf16.msra.mxu1 %v4128_v52  ;;  %v930_v52 = vld [vmem:[#allocation7 + $0xd8] sm:$0xff] }
 0x23b   : > { %4664 = vmatprep.subr.bf16.mxu1 %v5280_v0  ;;  %v4148_v60 = vcombine.low %v930_v52, %v932_v53 }
 0x23e   : > { %4665 = vmatpush3.bf16.msra.mxu1 %v4127_v55  ;;  %v4149_v55 = vcombine.high %v930_v52, %v932_v53  ;;  %v4928_v52 = vld [vmem:[#allocation9 + $0x90] sm:$0xff]   ;;  %v4929_v53 = vld [vmem:[#allocation9 + $0x48] sm:$0xff]  }
 0x23f   : > { %4666 = vmatprep.subr.bf16.mxu1 %v5280_v0 }
 0x242   : > { %4667 = vmatpush3.bf16.msra.mxu1 %v4126_v63 }
 0x243   : > { %1172 = vmatprep.subr.bf16.mxu1 %v4165_v23 }
 0x2e5   : > { %v727_v25 = vpop.f32.mrf.mxu1 }
 0x2e6   : > { %v734_v26 = vsel %vm733_vm3, %v727_v25, -inf }
 0x2e7   : > { %735 = vmax.xlane.f32.xlu0 %v734_v26  ;;  %v4644_v27 = vpop.f32.mrf.mxu1  ;;  %v944_v26 = vld [vmem:[#allocation7 + $0x1b8] sm:$0xff] }
 0x2e9   : > { %v730_v28 = vpop.f32.mrf.mxu1 }
 0x2eb   : > { %v4645_v29 = vpop.f32.mrf.mxu1 }
 0x370   : > { %v736_v30 = vpop.xlane.xlu0 %735 }
 0x371   : > { %v737_v31 = vsub.f32 %v727_v25, %v736_v30  ;;  %v942_v25 = vld [vmem:[#allocation7 + $0x198] sm:$0xff] }
 0x372   : > { %v4161_v27 = vcombine.high %v942_v25, %v944_v26  ;;  %v4160_v28 = vcombine.low %v942_v25, %v944_v26  ;;  %v900_v26 = vld [vmem:[#allocation12 + $0x5] ss:$0 sm:$0xff] }
 0x373   : > { %v738_v32 = vmul.f32 1.442695, %v737_v31 }
 0x375   : > { %5009 = vpow2.f32 %v738_v32 }
 0x382   : > { %v5010_v33 = vpop.eup %5009 }
 0x383   : > { %v740_v34 = vsel %vm733_vm3, %v5010_v33, 0.0 }
 0x384   : > { %741 = vadd.xlane.f32.xlu0 %v740_v34  ;;  %v939_v34 = vld [vmem:[#allocation7 + $0x170] sm:$0xff] }
 0x40d   : > { %v742_v56 = vpop.xlane.xlu0 %741 }
 0x40e   : > { %5011 = vrcp.f32 %v742_v56  ;;  %v927_v56 = vld [vmem:[#allocation7 + $0xb0] sm:$0xff] }
 0x40f   : > { %v4143_v61 = vcombine.high %v925_v54, %v927_v56 }
 0x41b   : > { %v5012_v57 = vpop.eup %5011 }
 0x41c   : > { %v744_v58 = vmul.f32 %v5012_v57, %v5010_v33  ;;  %v937_v33 = vld [vmem:[#allocation7 + $0x150] sm:$0xff]  ;;  %v926_v57 = vld [vmem:[#allocation7 + $0x98] sm:$0xff] }
 0x41d   : > { %v4155_v36 = vcombine.high %v937_v33, %v939_v34  ;;  %v4154_v38 = vcombine.low %v937_v33, %v939_v34  ;;  %v4909_v34 = vld [vmem:[#allocation9 + $0x70] sm:$0xff]  }
 0x41e   : > { %v745_v59 = vpack.c.bf16 %v744_v58, %v744_v58  ;;  %v928_v58 = vld [vmem:[#allocation7 + $0xb8] sm:$0xff] }
 0x41f   : > { %v4145_v63 = vcombine.high %v926_v57, %v928_v58 }
 0x420   : > { %4649 = vmatmul.mubr.msk.bf16.vlgmr.msra.gmra.mxu0 %vm733_vm3, %v745_v59  ;;  %v4146_v59 = vcombine.low %v929_v47, %v931_v48  ;;  %v4923_v47 = vld [vmem:[#allocation9 + $0x18] sm:$0xff]  }
 0x421   : > { %1163 = vmatprep.mubr.bf16.mxu0 %v5282_v62  ;;  %1132 = vmatpush1.bf16.msra.mxu0 %v4162_v17  ;;  %v4924_v48 = vld [vmem:[#allocation9 + $0x98] sm:$0xff]  }
 0x422   : > { %1133 = vmatprep.subr.bf16.mxu0 %v4159_v24 }
 0x4e0   : > { %v787_v1 = vpop.f32.mrf.mxu0 }
 0x4e1   : > { %v793_v3 = vpack.c.bf16 %v787_v1, %v787_v1  ;;  %v921_v1 = vld [vmem:[#allocation7 + $0x50] sm:$0xff] }
 0x4e2   : > { %v4650_v4 = vpop.f32.mrf.mxu0 }
 0x4e3   : > { %4669 = vmatmul.mubr.bf16.vlgmr.msra.gmra.mxu1 %v793_v3  ;;  %v923_v3 = vld [vmem:[#allocation7 + $0x70] sm:$0xff]  ;;  %v922_v4 = vld [vmem:[#allocation7 + $0x58] sm:$0xff] }
 0x4e4   : > { %v790_v5 = vpop.f32.mrf.mxu0  ;;  %1204 = vmatprep.mubr.bf16.mxu1 %v5282_v62  ;;  %1173 = vmatpush1.bf16.msra.mxu1 %v4164_v22  ;;  %v4138_v14 = vcombine.low %v921_v1, %v923_v3 }
 0x4e5   : > { %1174 = vmatprep.subr.bf16.mxu1 %v4161_v27  ;;  %v924_v5 = vld [vmem:[#allocation7 + $0x78] sm:$0xff] }
 0x4e6   : > { %v4651_v6 = vpop.f32.mrf.mxu0  ;;  %v4140_v15 = vcombine.low %v922_v4, %v924_v5 }
 0x4e7   : > { %v4142_v6 = vcombine.low %v925_v54, %v927_v56  ;;  %v4930_v54 = vld [vmem:[#allocation9 + $0xc8] sm:$0xff]  }
 0x4e8   : > { %1175 = vmatpush1.bf16.msra.mxu1 %v4160_v28  ;;  %v4932_v56 = vld [vmem:[#allocation9 + $0x88] sm:$0xff]  }
 0x4e9   : > { %1176 = vmatprep.subr.bf16.mxu1 %v4157_v40  ;;  %v4916_v40 = vld [vmem:[#allocation9 + $0xa8] sm:$0xff]  }
 0x4ec   : > { %1177 = vmatpush1.bf16.msra.mxu1 %v4156_v39  ;;  %v4915_v39 = vld [vmem:[#allocation9 + $0x28] sm:$0xff]  }
 0x4ed   : > { %1178 = vmatprep.subr.bf16.mxu1 %v4153_v50  ;;  %v4926_v50 = vld [vmem:[#allocation9 + $0xd0] sm:$0xff]  }
 0x4f0   : > { %1179 = vmatpush1.bf16.msra.mxu1 %v4152_v49  ;;  %v4925_v49 = vld [vmem:[#allocation9 + $0x50] sm:$0xff]  }
 0x4f1   : > { %1180 = vmatprep.subr.bf16.mxu1 %v4149_v55  ;;  %v4931_v55 = vld [vmem:[#allocation9 + $0x8] sm:$0xff]  }
 0x4f4   : > { %1181 = vmatpush1.bf16.msra.mxu1 %v4148_v60  ;;  %v4936_v60 = vld [vmem:[#allocation9 + $0x80] sm:$0xff]  }
 0x4f5   : > { %1182 = vmatprep.subr.bf16.mxu1 %v4145_v63 }
 0x5a3   : > { %v893_v8 = vpop.f32.mrf.mxu1 }
 0x5a4   : > { %v894_v9 = vadd.f32 %v893_v8, %v810_v7  ;;  %v4144_v7 = vcombine.low %v926_v57, %v928_v58  ;;  %v4139_v8 = vcombine.high %v921_v1, %v923_v3  ;;  %v4933_v57 = vld [vmem:[#allocation9 + $0x40] sm:$0xff]  }
 0x5a5   : > { %v4670_v10 = vpop.f32.mrf.mxu1  ;;  %v4934_v58 = vld [vmem:[#allocation9 + $0xc0] sm:$0xff]  }
 0x5a6   : > { %v899_v11 = vadd.f32 %v894_v9, %v5514_v2  ;;  %v4158_v2 = vcombine.low %v941_v20, %v943_v21  ;;  %v4141_v9 = vcombine.high %v922_v4, %v924_v5  ;;  %v917_v10 = vld [vmem:[#allocation7 + $0x10] sm:$0xff]  ;;  %1183 = vmatpush1.bf16.msra.mxu1 %v4144_v7  ;;  %v4905_v20 = vld [vmem:[#allocation9 + $0x78] sm:$0xff]  }
 0x5a7   : > { %v896_v12 = vpop.f32.mrf.mxu1  ;;  %v4906_v21 = vld [vmem:[#allocation9 + $0xf8] sm:$0xff]  }
 0x5a8   : > { %902 = vadd.xlane.f32.xlu1 %v899_v11  ;;  %1134 = vmatpush1.bf16.msra.mxu0 %v4158_v2  ;;  %v918_v12 = vld [vmem:[#allocation7 + $0x18] sm:$0xff]  ;;  %v901_v2 = vld [vmem:[#allocation12 + $0x6] ss:$0 sm:$0xff] }
 0x5a9   : > { %v4671_v13 = vpop.f32.mrf.mxu1  ;;  %1135 = vmatprep.subr.bf16.mxu0 %v4155_v36  ;;  %1184 = vmatprep.subr.bf16.mxu1 %v4141_v9  ;;  %v4911_v36 = vld [vmem:[#allocation9 + $0x30] sm:$0xff]  }
 0x5aa   : > { %v920_v13 = vld [vmem:[#allocation7 + $0x38] sm:$0xff]  ;;  %1185 = vmatpush1.bf16.msra.mxu1 %v4140_v15 }
 0x5ab   : > { %v4137_v17 = vcombine.high %v918_v12, %v920_v13  ;;  %v4136_v19 = vcombine.low %v918_v12, %v920_v13  ;;  %v949_v4 = vld [vmem:[#allocation12] ss:$8 sm:$0xf] }
 0x5ac   : > { %1136 = vmatpush1.bf16.msra.mxu0 %v4154_v38  ;;  %v4914_v38 = vld [vmem:[#allocation9 + $0xe8] sm:$0xff]  }
 0x5ad   : > { %1137 = vmatprep.subr.bf16.mxu0 %v4151_v45  ;;  %1186 = vmatprep.subr.bf16.mxu1 %v4137_v17  ;;  %v4921_v45 = vld [vmem:[#allocation9 + $0x58] sm:$0xff]  }
 0x5ae   : > { %1187 = vmatpush1.bf16.msra.mxu1 %v4136_v19 }
 0x5af   : > { %4449 = vmatprep.subr.bf16.mxu1 %v4906_v21 }
 0x5b0   : > { %1138 = vmatpush1.bf16.msra.mxu0 %v4150_v44  ;;  %v4920_v44 = vld [vmem:[#allocation9 + $0xa0] sm:$0xff]  }
 0x5b1   : > { %1139 = vmatprep.subr.bf16.mxu0 %v4147_v51  ;;  %v4927_v51 = vld [vmem:[#allocation9 + $0x10] sm:$0xff]  }
 0x5b4   : > { %1140 = vmatpush1.bf16.msra.mxu0 %v4146_v59  ;;  %v4935_v59 = vld [vmem:[#allocation9] sm:$0xff]  }
 0x5b5   : > { %1141 = vmatprep.subr.bf16.mxu0 %v4143_v61  ;;  %v951_v61 = vlaneseq }
 0x5b7   : > { %v952_v63 = vshrl.u32 %v951_v61, 7 }
 0x5b8   : > { %1142 = vmatpush1.bf16.msra.mxu0 %v4142_v6 }
 0x5b9   : > { %1143 = vmatprep.subr.bf16.mxu0 %v4139_v8  ;;  %v5549_v1 = vsub.s32 0, %v952_v63  ;;  %v5551_v3 = vsub.s32 2, %v952_v63  ;;  %v5553_v5 = vsub.s32 1, %v952_v63  ;;  %v5555_v6 = vsub.s32 3, %v952_v63  ;;  %v1596_v63 = vld [vmem:[#allocation7 + $0x340] sm:$0xff] }
 0x5bb   : > { %v954_v7 = vrot.slane %v949_v4, %v5549_v1  ;;  %v962_v8 = vrot.slane %v949_v4, %v5551_v3  ;;  %v958_v9 = vrot.slane %v949_v4, %v5553_v5 }
 0x5bc   : > { %1144 = vmatpush1.bf16.msra.mxu0 %v4138_v14 }
 0x631   : > { %v903_v29 = vpop.xlane.xlu1 %902 }
 0x632   : > { %v905_v30 = vmul.f32 0.0078125, %v903_v29 }
 0x634   : > { %v5539_v31 = vsub.f32 %v899_v11, %v905_v30  ;;  %v919_v11 = vld [vmem:[#allocation7 + $0x30] sm:$0xff]  ;;  %v4907_v30 = vld [vmem:[#allocation9 + $0x38] sm:$0xff]  }
 0x635   : > { %v4135_v16 = vcombine.high %v917_v10, %v919_v11  ;;  %v4134_v18 = vcombine.low %v917_v10, %v919_v11  ;;  %v966_v10 = vrot.slane %v949_v4, %v5555_v6  ;;  %v1598_v4 = vld [vmem:[#allocation7 + $0x360] sm:$0xff] }
 0x636   : > { %v907_v32 = vmul.f32 %v5539_v31, %v5539_v31 }
 0x637   : > { %1145 = vmatprep.subr.bf16.mxu0 %v4135_v16 }
 0x638   : > { %908 = vadd.xlane.f32.xlu1 %v907_v32  ;;  %1146 = vmatpush1.bf16.msra.mxu0 %v4134_v18  ;;  %v4908_v32 = vld [vmem:[#allocation9 + $0xb8] sm:$0xff]  }
 0x639   : > { %4427 = vmatprep.subr.bf16.mxu0 %v4905_v20 }
 0x6c1   : > { %v909_v22 = vpop.xlane.xlu1 %908 }
 0x6c2   : > { %v910_v23 = vmul.f32 0.0078125, %v909_v22 }
 0x6c4   : > { %v911_v24 = vadd.f32 1e-05, %v910_v23 }
 0x6c6   : > { %5013 = vrsqrt.f32 %v911_v24 }
 0x6d3   : > { %v5014_v25 = vpop.eup %5013 }
 0x6d4   : > { %v913_v27 = vmul.f32 %v5014_v25, %v5539_v31  ;;  %v4913_v31 = vld [vmem:[#allocation9 + $0x68] sm:$0xff]  }
 0x6d6   : > { %v914_v28 = vmul.f32 %v913_v27, %v900_v26 }
 0x6d8   : > { %v5544_v29 = vadd.f32 %v914_v28, %v901_v2 }
 0x6da   : > { %v916_v33 = vpack.c.bf16 %v5544_v29, %v5544_v29 }
 0x6dc   : > { %1164 = vmatmul.mubr.bf16.vlgmr.msra.gmra.mxu0 %v916_v33  ;;  %1205 = vmatmul.mubr.bf16.vlgmr.msra.gmra.mxu1 %v916_v33 }
 0x6dd   : > { %4428 = vmatpush3.bf16.msra.mxu0 %v4907_v30  ;;  %4450 = vmatpush3.bf16.msra.mxu1 %v4908_v32 }
 0x6de   : > { %4429 = vmatprep.subr.bf16.mxu0 %v4909_v34  ;;  %4451 = vmatprep.subr.bf16.mxu1 %v4910_v35  ;;  %v1285_v34 = vld [vmem:[#allocation12 + $0x7] ss:$0 sm:$0xff] }
 0x6e1   : > { %4430 = vmatpush3.bf16.msra.mxu0 %v4911_v36  ;;  %4452 = vmatpush3.bf16.msra.mxu1 %v4912_v37 }
 0x6e2   : > { %4431 = vmatprep.subr.bf16.mxu0 %v4913_v31  ;;  %4453 = vmatprep.subr.bf16.mxu1 %v4914_v38 }
 0x6e5   : > { %4432 = vmatpush3.bf16.msra.mxu0 %v4915_v39  ;;  %4454 = vmatpush3.bf16.msra.mxu1 %v4916_v40 }
 0x6e6   : > { %4433 = vmatprep.subr.bf16.mxu0 %v4917_v41  ;;  %4455 = vmatprep.subr.bf16.mxu1 %v4918_v42 }
 0x6e9   : > { %4434 = vmatpush3.bf16.msra.mxu0 %v4919_v43  ;;  %4456 = vmatpush3.bf16.msra.mxu1 %v4920_v44 }
 0x6ea   : > { %4435 = vmatprep.subr.bf16.mxu0 %v4921_v45  ;;  %4457 = vmatprep.subr.bf16.mxu1 %v4922_v46  ;;  %v1604_v45 = vld [vmem:[#allocation7 + $0x3c0] sm:$0xff] }
 0x6eb   : > { %v1606_v46 = vld [vmem:[#allocation7 + $0x3e0] sm:$0xff] }
 0x6ed   : > { %4436 = vmatpush3.bf16.msra.mxu0 %v4923_v47  ;;  %4458 = vmatpush3.bf16.msra.mxu1 %v4924_v48  ;;  %v1605_v47 = vld [vmem:[#allocation7 + $0x3c8] sm:$0xf]  ;;  %v4219_v48 = vcombine.low %v1604_v45, %v1606_v46 }
 0x6ee   : > { %4437 = vmatprep.subr.bf16.mxu0 %v4925_v49  ;;  %4459 = vmatprep.subr.bf16.mxu1 %v4926_v50  ;;  %v4220_v49 = vcombine.high %v1604_v45, %v1606_v46  ;;  %v1607_v50 = vld [vmem:[#allocation7 + $0x3e8] sm:$0xf] }
 0x6f1   : > { %4438 = vmatpush3.bf16.msra.mxu0 %v4927_v51  ;;  %4460 = vmatpush3.bf16.msra.mxu1 %v4928_v52  ;;  %v1600_v51 = vld [vmem:[#allocation7 + $0x380] sm:$0xff] }
 0x6f2   : > { %4439 = vmatprep.subr.bf16.mxu0 %v4929_v53  ;;  %4461 = vmatprep.subr.bf16.mxu1 %v4930_v54  ;;  %v1602_v52 = vld [vmem:[#allocation7 + $0x3a0] sm:$0xff]  ;;  %v4221_v53 = vcombine.low %v1605_v47, %v1607_v50 }
 0x6f3   : > { %v4217_v54 = vcombine.high %v1600_v51, %v1602_v52 }
 0x6f5   : > { %4440 = vmatpush3.bf16.msra.mxu0 %v4931_v55  ;;  %4462 = vmatpush3.bf16.msra.mxu1 %v4932_v56  ;;  %v1601_v55 = vld [vmem:[#allocation7 + $0x388] sm:$0xf] }
 0x6f6   : > { %4441 = vmatprep.subr.bf16.mxu0 %v4933_v57  ;;  %4463 = vmatprep.subr.bf16.mxu1 %v4934_v58  ;;  %v1603_v56 = vld [vmem:[#allocation7 + $0x3a8] sm:$0xf]  ;;  %v4216_v57 = vcombine.low %v1600_v51, %v1602_v52  ;;  %v1559_v51 = vld [vmem:[#allocation12 + $0x20] ss:$0 sm:$0xff] }
 0x6f7   : > { %v4218_v58 = vcombine.low %v1601_v55, %v1603_v56 }
 0x6f9   : > { %4442 = vmatpush3.bf16.msra.mxu0 %v4935_v59  ;;  %4464 = vmatpush3.bf16.msra.mxu1 %v4936_v60 }
 0x6fa   : > { %4672 = vmatprep.subr.bf16.mxu1 %v5280_v0  ;;  %1736 = vmatprep.subr.bf16.mxu0 %v4220_v49 }
 0x79c   : > { %v1165_v11 = vpop.f32.mrf.mxu0  ;;  %v1206_v12 = vpop.f32.mrf.mxu1 }
 0x79d   : > { %v1166_v13 = vadd.f32 %v1165_v11, %v954_v7  ;;  %v1207_v14 = vadd.f32 %v1206_v12, %v962_v8  ;;  %v4214_v7 = vcombine.high %v1596_v63, %v1598_v4  ;;  %v1597_v8 = vld [vmem:[#allocation7 + $0x348] sm:$0xf]  ;;  %v1592_v12 = vld [vmem:[#allocation7 + $0x300] sm:$0xff] }
 0x79e   : > { %v1167_v15 = vpop.f32.mrf.mxu0  ;;  %v1208_v16 = vpop.f32.mrf.mxu1 }
 0x79f   : > { %v1168_v17 = vadd.f32 %v1167_v15, %v958_v9  ;;  %v1209_v18 = vadd.f32 %v1208_v16, %v966_v10  ;;  %v1213_v19 = vmax.f32 %v1166_v13, 0.0  ;;  %v1215_v20 = vmax.f32 %v1207_v14, 0.0  ;;  %v1599_v9 = vld [vmem:[#allocation7 + $0x368] sm:$0xf]  ;;  %v1594_v13 = vld [vmem:[#allocation7 + $0x320] sm:$0xff] }
 0x7a0   : > { %v1169_v21 = vpop.f32.mrf.mxu0  ;;  %v1210_v22 = vpop.f32.mrf.mxu1  ;;  %v4213_v10 = vcombine.low %v1596_v63, %v1598_v4  ;;  %v4215_v11 = vcombine.low %v1597_v8, %v1599_v9  ;;  %v4210_v14 = vcombine.low %v1592_v12, %v1594_v13  ;;  %v4211_v15 = vcombine.high %v1592_v12, %v1594_v13  ;;  %v1593_v16 = vld [vmem:[#allocation7 + $0x308] sm:$0xf]  ;;  %v1818_v8 = vld [vmem:[#allocation12 + $0x41] ss:$0 sm:$0xff] }
 0x7a1   : > { %v1214_v23 = vmax.f32 %v1168_v17, 0.0  ;;  %v1216_v24 = vmax.f32 %v1209_v18, 0.0  ;;  %v1217_v28 = vpack.c.bf16 %v1213_v19, %v1213_v19  ;;  %v1219_v30 = vpack.c.bf16 %v1215_v20, %v1215_v20  ;;  %v1595_v17 = vld [vmem:[#allocation7 + $0x328] sm:$0xf]  ;;  %v1588_v18 = vld [vmem:[#allocation7 + $0x2c0] sm:$0xff] }
 0x7a2   : > { %v1170_v25 = vpop.f32.mrf.mxu0  ;;  %v1211_v26 = vpop.f32.mrf.mxu1  ;;  %v4212_v19 = vcombine.low %v1593_v16, %v1595_v17  ;;  %v1590_v20 = vld [vmem:[#allocation7 + $0x2e0] sm:$0xff]  ;;  %v1589_v21 = vld [vmem:[#allocation7 + $0x2c8] sm:$0xf] }
 0x7a3   : > { %v1218_v27 = vpack.c.bf16 %v1214_v23, %v1214_v23  ;;  %v1220_v2 = vpack.c.bf16 %v1216_v24, %v1216_v24  ;;  %v1591_v22 = vld [vmem:[#allocation7 + $0x2e8] sm:$0xf]  ;;  %v4208_v23 = vcombine.high %v1588_v18, %v1590_v20  ;;  %v1584_v24 = vld [vmem:[#allocation7 + $0x280] sm:$0xff]  ;;  %v4207_v26 = vcombine.low %v1588_v18, %v1590_v20 }
 0x7a4   : > { %v1586_v25 = vld [vmem:[#allocation7 + $0x2a0] sm:$0xff] }
 0x7a5   : > { %1510 = vmatprep.mubr.bf16.mxu0 %v1218_v27  ;;  %1550 = vmatprep.mubr.bf16.mxu1 %v1220_v2  ;;  %v4209_v27 = vcombine.low %v1589_v21, %v1591_v22  ;;  %v4205_v2 = vcombine.high %v1584_v24, %v1586_v25 }
 0x7a6   : > { %1511 = vmatmul.mubr.bf16.vlgmr.msra.gmra.mxu0 %v1217_v28  ;;  %1551 = vmatmul.mubr.bf16.vlgmr.msra.gmra.mxu1 %v1219_v30  ;;  %v1585_v28 = vld [vmem:[#allocation7 + $0x288] sm:$0xf] }
 0x7a7   : > { %1768 = vmatprep.mubr.bf16.mxu0 %v5282_v62  ;;  %4688 = vmatprep.mubr.msk.bf16.mxu1 %vm5281_vm0, %v5280_v0  ;;  %v1587_v30 = vld [vmem:[#allocation7 + $0x2a8] sm:$0xf] }
 0x7a8   : > { %1737 = vmatpush1.bf16.msra.mxu0 %v4219_v48  ;;  %4673 = vmatpush3.bf16.msra.mxu1 %v4221_v53  ;;  %v1560_v53 = vld [vmem:[#allocation12 + $0x21] ss:$0 sm:$0xff] }
 0x7a9   : > { %1738 = vmatprep.subr.bf16.mxu0 %v4217_v54  ;;  %4674 = vmatprep.subr.bf16.mxu1 %v5280_v0 }
 0x7ac   : > { %1739 = vmatpush1.bf16.msra.mxu0 %v4216_v57  ;;  %4675 = vmatpush3.bf16.msra.mxu1 %v4218_v58 }
 0x7ad   : > { %4676 = vmatprep.subr.bf16.mxu1 %v5280_v0  ;;  %1740 = vmatprep.subr.bf16.mxu0 %v4214_v7 }
 0x7b0   : > { %1741 = vmatpush1.bf16.msra.mxu0 %v4213_v10  ;;  %4677 = vmatpush3.bf16.msra.mxu1 %v4215_v11 }
 0x7b1   : > { %4678 = vmatprep.subr.bf16.mxu1 %v5280_v0  ;;  %1742 = vmatprep.subr.bf16.mxu0 %v4211_v15 }
 0x7b4   : > { %1743 = vmatpush1.bf16.msra.mxu0 %v4210_v14  ;;  %4679 = vmatpush3.bf16.msra.mxu1 %v4212_v19 }
 0x7b5   : > { %1744 = vmatprep.subr.bf16.mxu0 %v4208_v23  ;;  %4680 = vmatprep.subr.bf16.mxu1 %v5280_v0 }
 0x7b8   : > { %1745 = vmatpush1.bf16.msra.mxu0 %v4207_v26  ;;  %4681 = vmatpush3.bf16.msra.mxu1 %v4209_v27 }
 0x7b9   : > { %1746 = vmatprep.subr.bf16.mxu0 %v4205_v2  ;;  %4682 = vmatprep.subr.bf16.mxu1 %v5280_v0  ;;  %v1940_v2 = vld [vmem:[#allocation7 + $0x3cc] sm:$0xf] }
 0x866   : > { %v4443_v32 = vpop.f32.mrf.mxu0  ;;  %v4465_v33 = vpop.f32.mrf.mxu1 }
 0x868   : > { %v4444_v35 = vpop.f32.mrf.mxu0  ;;  %v4466_v36 = vpop.f32.mrf.mxu1 }
 0x869   : > { %v4445_v37 = vadd.f32 %v4444_v35, %v4443_v32  ;;  %v4467_v40 = vadd.f32 %v4466_v36, %v4465_v33  ;;  %v1580_v32 = vld [vmem:[#allocation7 + $0x240] sm:$0xff]  ;;  %v4206_v35 = vcombine.low %v1585_v28, %v1587_v30  ;;  %v1941_v28 = vld [vmem:[#allocation7 + $0x3ec] sm:$0xf] }
 0x86a   : > { %v4446_v31 = vpop.f32.mrf.mxu0  ;;  %v4468_v38 = vpop.f32.mrf.mxu1  ;;  %v1582_v33 = vld [vmem:[#allocation7 + $0x260] sm:$0xff] }
 0x86b   : > { %v1513_v39 = vadd.f32 %v4445_v37, %v1285_v34  ;;  %v4204_v34 = vcombine.low %v1584_v24, %v1586_v25  ;;  %v4202_v36 = vcombine.high %v1580_v32, %v1582_v33  ;;  %v1581_v37 = vld [vmem:[#allocation7 + $0x248] sm:$0xf]  ;;  %v1576_v38 = vld [vmem:[#allocation7 + $0x200] sm:$0xff]  ;;  %4683 = vmatpush3.bf16.msra.mxu1 %v4206_v35  ;;  %v1938_v35 = vld [vmem:[#allocation7 + $0x38c] sm:$0xf] }
 0x86c   : > { %v4447_v41 = vpop.f32.mrf.mxu0  ;;  %v4469_v42 = vpop.f32.mrf.mxu1  ;;  %v1583_v31 = vld [vmem:[#allocation7 + $0x268] sm:$0xf]  ;;  %4684 = vmatprep.subr.bf16.mxu1 %v5280_v0 }
 0x86d   : > { %v1553_v43 = vadd.f32 %v4467_v40, %v1513_v39  ;;  %v1578_v39 = vld [vmem:[#allocation7 + $0x220] sm:$0xff]  ;;  %1747 = vmatpush1.bf16.msra.mxu0 %v4204_v34  ;;  %v4201_v40 = vcombine.low %v1580_v32, %v1582_v33  ;;  %v4203_v41 = vcombine.low %v1581_v37, %v1583_v31  ;;  %v4230_v33 = vcombine.low %v1940_v2, %v1941_v28  ;;  %v1936_v31 = vld [vmem:[#allocation7 + $0x34c] sm:$0xf]  ;;  %v2068_v28 = vld [vmem:[#allocation7 + $0x350] sm:$0xff] }
 0x86e   : > { %1748 = vmatprep.subr.bf16.mxu0 %v4202_v36  ;;  %v4199_v42 = vcombine.high %v1576_v38, %v1578_v39  ;;  %v4198_v45 = vcombine.low %v1576_v38, %v1578_v39  ;;  %v1939_v36 = vld [vmem:[#allocation7 + $0x3ac] sm:$0xf] }
 0x86f   : > { %v1558_v44 = vadd.f32 %v1553_v43, %v5544_v29  ;;  %v1577_v43 = vld [vmem:[#allocation7 + $0x208] sm:$0xf]  ;;  %4685 = vmatpush3.bf16.msra.mxu1 %v4203_v41  ;;  %v4229_v37 = vcombine.low %v1938_v35, %v1939_v36  ;;  %v1937_v38 = vld [vmem:[#allocation7 + $0x36c] sm:$0xf] }
 0x870   : > { %4686 = vmatprep.subr.bf16.mxu1 %v5280_v0  ;;  %v4228_v39 = vcombine.low %v1936_v31, %v1937_v38  ;;  %v1935_v41 = vld [vmem:[#allocation7 + $0x32c] sm:$0xf]  ;;  %v2064_v31 = vld [vmem:[#allocation7 + $0x310] sm:$0xff] }
 0x871   : > { %1561 = vadd.xlane.f32.xlu0 %v1558_v44  ;;  %1749 = vmatpush1.bf16.msra.mxu0 %v4201_v40  ;;  %v1934_v40 = vld [vmem:[#allocation7 + $0x30c] sm:$0xf]  ;;  %v2066_v38 = vld [vmem:[#allocation7 + $0x330] sm:$0xff] }
 0x872   : > { %1750 = vmatprep.subr.bf16.mxu0 %v4199_v42  ;;  %v4227_v42 = vcombine.low %v1934_v40, %v1935_v41  ;;  %v4247_v40 = vcombine.low %v2064_v31, %v2066_v38  ;;  %v4248_v41 = vcombine.high %v2064_v31, %v2066_v38  ;;  %v4944_v31 = vld [vmem:[#allocation9 + $0x1b0] sm:$0xff]   ;;  %v4946_v38 = vld [vmem:[#allocation9 + $0x1e8] sm:$0xff]  }
 0x875   : > { %1751 = vmatpush1.bf16.msra.mxu0 %v4198_v45 }
 0x876   : > { %4692 = vmatprep.subr.bf16.mxu0 %v5280_v0 }
 0x8fa   : > { %v1562_v29 = vpop.xlane.xlu0 %1561 }
 0x8fb   : > { %v1563_v59 = vmul.f32 0.0078125, %v1562_v29  ;;  %v1820_v29 = vld [vmem:[#allocation12 + $0x42] ss:$0 sm:$0xff] }
 0x8fd   : > { %v5567_v60 = vsub.f32 %v1558_v44, %v1563_v59  ;;  %v1579_v44 = vld [vmem:[#allocation7 + $0x228] sm:$0xf] }
 0x8fe   : > { %v4200_v46 = vcombine.low %v1577_v43, %v1579_v44  ;;  %v1932_v43 = vld [vmem:[#allocation7 + $0x2cc] sm:$0xf] }
 0x8ff   : > { %v1565_v61 = vmul.f32 %v5567_v60, %v5567_v60  ;;  %v1933_v44 = vld [vmem:[#allocation7 + $0x2ec] sm:$0xf] }
 0x900   : > { %4687 = vmatpush3.bf16.msra.mxu1 %v4200_v46  ;;  %v4226_v45 = vcombine.low %v1932_v43, %v1933_v44  ;;  %v1930_v46 = vld [vmem:[#allocation7 + $0x28c] sm:$0xf]  ;;  %v2060_v43 = vld [vmem:[#allocation7 + $0x2d0] sm:$0xff] }
 0x901   : > { %1566 = vadd.xlane.f32.xlu1 %v1565_v61  ;;  %v2062_v44 = vld [vmem:[#allocation7 + $0x2f0] sm:$0xff] }
 0x98a   : > { %v1567_v47 = vpop.xlane.xlu1 %1566 }
 0x98b   : > { %v1568_v48 = vmul.f32 0.0078125, %v1567_v47  ;;  %v1931_v47 = vld [vmem:[#allocation7 + $0x2ac] sm:$0xf] }
 0x98d   : > { %v1569_v49 = vadd.f32 1e-05, %v1568_v48  ;;  %v4225_v48 = vcombine.low %v1930_v46, %v1931_v47  ;;  %v4244_v47 = vcombine.high %v2060_v43, %v2062_v44 }
 0x98f   : > { %5015 = vrsqrt.f32 %v1569_v49  ;;  %v1928_v49 = vld [vmem:[#allocation7 + $0x24c] sm:$0xf] }
 0x99c   : > { %v5016_v50 = vpop.eup %5015 }
 0x99d   : > { %v1571_v52 = vmul.f32 %v5016_v50, %v5567_v60  ;;  %v1822_v60 = vld [vmem:[#allocation12 + $0x43] ss:$0 sm:$0xff]  ;;  %v1929_v50 = vld [vmem:[#allocation7 + $0x26c] sm:$0xf] }
 0x99f   : > { %v1572_v54 = vmul.f32 %v1571_v52, %v1559_v51  ;;  %v4224_v51 = vcombine.low %v1928_v49, %v1929_v50  ;;  %v1926_v52 = vld [vmem:[#allocation7 + $0x20c] sm:$0xf]  ;;  %v2063_v49 = vld [vmem:[#allocation7 + $0x2f8] sm:$0xff]  ;;  %v2056_v50 = vld [vmem:[#allocation7 + $0x290] sm:$0xff] }
 0x9a1   : > { %v5578_v55 = vadd.f32 %v1572_v54, %v1560_v53  ;;  %v1927_v53 = vld [vmem:[#allocation7 + $0x22c] sm:$0xf] }
 0x9a2   : > { %v4223_v54 = vcombine.low %v1926_v52, %v1927_v53  ;;  %v2058_v52 = vld [vmem:[#allocation7 + $0x2b0] sm:$0xff]  ;;  %v2057_v53 = vld [vmem:[#allocation7 + $0x298] sm:$0xff] }
 0x9a3   : > { %v1574_v56 = vpack.c.bf16 %v5578_v55, %v5578_v55 }
 0x9a5   : > { %1769 = vmatmul.mubr.bf16.vlgmr.msra.gmra.mxu0 %v1574_v56  ;;  %4689 = vmatmul.mubr.bf16.vlgmr.msra.gmra.mxu1 %v1574_v56 }
 0x9a6   : > { %4694 = vmatprep.mubr.msk.bf16.mxu0 %vm5281_vm0, %v5280_v0  ;;  %2294 = vmatprep.mubr.bf16.mxu1 %v5282_v62 }
 0xa65   : > { %v1770_v57 = vpop.f32.mrf.mxu0  ;;  %v1811_v58 = vpop.f32.mrf.mxu1 }
 0xa66   : > { %v1823_v10 = vadd.f32 %v1822_v60, %v1811_v58  ;;  %v1819_v13 = vadd.f32 %v1818_v8, %v1770_v57 }
 0xa67   : > { %v1772_v59 = vpop.f32.mrf.mxu0  ;;  %v4690_v61 = vpop.f32.mrf.mxu1 }
 0xa68   : > { %v1821_v63 = vadd.f32 %v1820_v29, %v1772_v59  ;;  %v1878_v14 = vpack.c.bf16 %v1823_v10, %v1823_v10  ;;  %v1824_v15 = vpack.c.bf16 %v1819_v13, %v1819_v13  ;;  %v1942_v61 = vld [vmem:[#allocation12 + $0x44] ss:$0 sm:$0xff]  ;;  %v2076_v10 = vld [vmem:[#allocation7 + $0x3d0] sm:$0xff] }
 0xa69   : > { %v1774_v4 = vpop.f32.mrf.mxu0  ;;  %v1814_v7 = vpop.f32.mrf.mxu1 }
 0xa6a   : > { %v1825_v9 = vpack.c.bf16 %v1821_v63, %v1821_v63  ;;  %v1883_v16 = vsel %vm399_vm1, %v1878_v14, 0 }
 0xa6b   : > { %v1775_v11 = vpop.f32.mrf.mxu0  ;;  %v4691_v12 = vpop.f32.mrf.mxu1 }
 0xa6c   : > { %4693 = vmatpush3.bf16.xpose.msra.mxu0 %v1825_v9  ;;  %v2078_v11 = vld [vmem:[#allocation7 + $0x3f0] sm:$0xff]  ;;  %v2077_v12 = vld [vmem:[#allocation7 + $0x3d8] sm:$0xff] }
 0xa6d   : > { %4698 = vmatprep.subr.bf16.mxu0 %v5280_v0  ;;  %v4259_v13 = vcombine.low %v2076_v10, %v2078_v11  ;;  %v4260_v14 = vcombine.high %v2076_v10, %v2078_v11  ;;  %v2048_v10 = vld [vmem:[#allocation7 + $0x210] sm:$0xff] }
 0xa6e   : > { %v2050_v11 = vld [vmem:[#allocation7 + $0x230] sm:$0xff] }
 0xa6f   : > { %2262 = vmatprep.subr.bf16.mxu1 %v4260_v14 }
 0xa70   : > { %2263 = vmatpush1.bf16.msra.mxu1 %v4259_v13  ;;  %v2051_v13 = vld [vmem:[#allocation7 + $0x238] sm:$0xff] }
 0xa73   : > { %4695 = vmatmul.mubr.bf16.vlgmr.msra.gmra.mxu0 %v1824_v15  ;;  %v2079_v15 = vld [vmem:[#allocation7 + $0x3f8] sm:$0xff] }
 0xa74   : > { %4699 = vmatpush3.bf16.msra.mxu0 %v1883_v16  ;;  %4700 = vmatprep.mubr.msk.bf16.mxu0 %vm5281_vm0, %v5280_v0  ;;  %v2072_v16 = vld [vmem:[#allocation7 + $0x390] sm:$0xff] }
 0xa75   : > { %4704 = vmatprep.subr.bf16.mxu0 %v5280_v0 }
 0xb33   : > { %v1860_v17 = vpop.f32.mrf.mxu0 }
 0xb34   : > { %v1866_v18 = vsel %vm733_vm3, %v1860_v17, -inf }
 0xb35   : > { %1867 = vmax.xlane.f32.xlu0 %v1866_v18  ;;  %v4696_v19 = vpop.f32.mrf.mxu0  ;;  %v4261_v18 = vcombine.low %v2077_v12, %v2079_v15 }
 0xb36   : > { %v4262_v19 = vcombine.high %v2077_v12, %v2079_v15  ;;  %v2049_v12 = vld [vmem:[#allocation7 + $0x218] sm:$0xff] }
 0xb37   : > { %v1863_v20 = vpop.f32.mrf.mxu0 }
 0xb39   : > { %v4697_v21 = vpop.f32.mrf.mxu0 }
 0xb3a   : > { %v2073_v21 = vld [vmem:[#allocation7 + $0x398] sm:$0xff] }
 0xbbe   : > { %v1868_v22 = vpop.xlane.xlu0 %1867 }
 0xbbf   : > { %v1869_v23 = vsub.f32 %v1860_v17, %v1868_v22  ;;  %v2074_v17 = vld [vmem:[#allocation7 + $0x3b0] sm:$0xff]  ;;  %v2075_v22 = vld [vmem:[#allocation7 + $0x3b8] sm:$0xff] }
 0xbc0   : > { %v4256_v20 = vcombine.high %v2072_v16, %v2074_v17 }
 0xbc1   : > { %v1870_v24 = vmul.f32 1.442695, %v1869_v23  ;;  %v4258_v23 = vcombine.high %v2073_v21, %v2075_v22 }
 0xbc2   : > { %2264 = vmatprep.subr.bf16.mxu1 %v4256_v20  ;;  %v4937_v20 = vld [vmem:[#allocation9 + $0x178] sm:$0xff]  }
 0xbc3   : > { %5017 = vpow2.f32 %v1870_v24  ;;  %v4257_v24 = vcombine.low %v2073_v21, %v2075_v22  ;;  %v4938_v21 = vld [vmem:[#allocation9 + $0x1f8] sm:$0xff]  }
 0xbd0   : > { %v5018_v25 = vpop.eup %5017 }
 0xbd1   : > { %v1872_v26 = vsel %vm733_vm3, %v5018_v25, 0.0 }
 0xbd2   : > { %1873 = vadd.xlane.f32.xlu1 %v1872_v26 }
 0xc5b   : > { %v1874_v27 = vpop.xlane.xlu1 %1873 }
 0xc5c   : > { %5019 = vrcp.f32 %v1874_v27 }
 0xc69   : > { %v5020_v30 = vpop.eup %5019 }
 0xc6a   : > { %v1876_v32 = vmul.f32 %v5020_v30, %v5018_v25  ;;  %v2070_v30 = vld [vmem:[#allocation7 + $0x370] sm:$0xff] }
 0xc6b   : > { %v4251_v35 = vcombine.low %v2068_v28, %v2070_v30 }
 0xc6c   : > { %v1877_v34 = vpack.c.bf16 %v1876_v32, %v1876_v32  ;;  %v2069_v32 = vld [vmem:[#allocation7 + $0x358] sm:$0xff] }
 0xc6e   : > { %4701 = vmatmul.mubr.msk.bf16.vlgmr.msra.gmra.mxu0 %vm733_vm3, %v1877_v34  ;;  %v2071_v34 = vld [vmem:[#allocation7 + $0x378] sm:$0xff] }
 0xc6f   : > { %4705 = vmatpush3.bf16.msra.mxu0 %v4230_v33  ;;  %4720 = vmatprep.mubr.msk.bf16.mxu0 %vm5281_vm0, %v5280_v0  ;;  %v4252_v33 = vcombine.high %v2068_v28, %v2070_v30  ;;  %v4253_v36 = vcombine.low %v2069_v32, %v2071_v34 }
 0xc70   : > { %4706 = vmatprep.subr.bf16.mxu0 %v5280_v0 }
 0xc73   : > { %4707 = vmatpush3.bf16.msra.mxu0 %v4229_v37  ;;  %v4254_v37 = vcombine.high %v2069_v32, %v2071_v34  ;;  %v4939_v32 = vld [vmem:[#allocation9 + $0x138] sm:$0xff]  }
 0xc74   : > { %4708 = vmatprep.subr.bf16.mxu0 %v5280_v0 }
 0xc77   : > { %4709 = vmatpush3.bf16.msra.mxu0 %v4228_v39  ;;  %v2065_v39 = vld [vmem:[#allocation7 + $0x318] sm:$0xff] }
 0xc78   : > { %4710 = vmatprep.subr.bf16.mxu0 %v5280_v0 }
 0xc7b   : > { %4711 = vmatpush3.bf16.msra.mxu0 %v4227_v42  ;;  %v2067_v42 = vld [vmem:[#allocation7 + $0x338] sm:$0xff] }
 0xc7c   : > { %4712 = vmatprep.subr.bf16.mxu0 %v5280_v0  ;;  %v4250_v46 = vcombine.high %v2065_v39, %v2067_v42 }
 0xc7f   : > { %4713 = vmatpush3.bf16.msra.mxu0 %v4226_v45  ;;  %v4249_v45 = vcombine.low %v2065_v39, %v2067_v42  ;;  %v4947_v39 = vld [vmem:[#allocation9 + $0x128] sm:$0xff]   ;;  %v4950_v42 = vld [vmem:[#allocation9 + $0x1e0] sm:$0xff]  }
 0xc80   : > { %4714 = vmatprep.subr.bf16.mxu0 %v5280_v0 }
 0xc83   : > { %4715 = vmatpush3.bf16.msra.mxu0 %v4225_v48  ;;  %v2061_v48 = vld [vmem:[#allocation7 + $0x2d8] sm:$0xff] }
 0xc84   : > { %4716 = vmatprep.subr.bf16.mxu0 %v5280_v0 }
 0xc87   : > { %4717 = vmatpush3.bf16.msra.mxu0 %v4224_v51  ;;  %v4246_v51 = vcombine.high %v2061_v48, %v2063_v49 }
 0xc88   : > { %4718 = vmatprep.subr.bf16.mxu0 %v5280_v0 }
 0xc8b   : > { %4719 = vmatpush3.bf16.msra.mxu0 %v4223_v54  ;;  %v2059_v54 = vld [vmem:[#allocation7 + $0x2b8] sm:$0xff] }
 0xc8c   : > { %2303 = vmatprep.subr.bf16.mxu0 %v4262_v19  ;;  %v4233_v19 = vcombine.low %v2049_v12, %v2051_v13 }
 0xd2e   : > { %v1919_v56 = vpop.f32.mrf.mxu0 }
 0xd2f   : > { %v1925_v57 = vpack.c.bf16 %v1919_v56, %v1919_v56  ;;  %v4243_v56 = vcombine.low %v2060_v43, %v2062_v44  ;;  %v4951_v43 = vld [vmem:[#allocation9 + $0x120] sm:$0xff]  }
 0xd30   : > { %v4702_v58 = vpop.f32.mrf.mxu0  ;;  %v4952_v44 = vld [vmem:[#allocation9 + $0x1a0] sm:$0xff]  }
 0xd31   : > { %4721 = vmatmul.mubr.bf16.vlgmr.msra.gmra.mxu0 %v1925_v57  ;;  %v4245_v57 = vcombine.low %v2061_v48, %v2063_v49  ;;  %v4240_v58 = vcombine.high %v2056_v50, %v2058_v52  ;;  %v4956_v48 = vld [vmem:[#allocation9 + $0x198] sm:$0xff]   ;;  %v4957_v49 = vld [vmem:[#allocation9 + $0x150] sm:$0xff]  }
 0xd32   : > { %v1922_v29 = vpop.f32.mrf.mxu0  ;;  %2335 = vmatprep.mubr.bf16.mxu0 %v5282_v62  ;;  %2304 = vmatpush1.bf16.msra.mxu0 %v4261_v18  ;;  %v4231_v18 = vcombine.low %v2048_v10, %v2050_v11 }
 0xd33   : > { %2305 = vmatprep.subr.bf16.mxu0 %v4258_v23  ;;  %v4242_v29 = vcombine.high %v2057_v53, %v2059_v54 }
 0xd34   : > { %v4703_v59 = vpop.f32.mrf.mxu0 }
 0xd35   : > { %v2052_v59 = vld [vmem:[#allocation7 + $0x250] sm:$0xff] }
 0xd36   : > { %2306 = vmatpush1.bf16.msra.mxu0 %v4257_v24 }
 0xd37   : > { %2307 = vmatprep.subr.bf16.mxu0 %v4254_v37  ;;  %v4943_v37 = vld [vmem:[#allocation9 + $0x130] sm:$0xff]  }
 0xd3a   : > { %2308 = vmatpush1.bf16.msra.mxu0 %v4253_v36  ;;  %v4942_v36 = vld [vmem:[#allocation9 + $0x1f0] sm:$0xff]  }
 0xd3b   : > { %2309 = vmatprep.subr.bf16.mxu0 %v4250_v46  ;;  %v4954_v46 = vld [vmem:[#allocation9 + $0x1d8] sm:$0xff]  }
 0xd3e   : > { %2310 = vmatpush1.bf16.msra.mxu0 %v4249_v45  ;;  %v4953_v45 = vld [vmem:[#allocation9 + $0x158] sm:$0xff]  }
 0xd3f   : > { %2311 = vmatprep.subr.bf16.mxu0 %v4246_v51  ;;  %v4959_v51 = vld [vmem:[#allocation9 + $0x110] sm:$0xff]  }
 0xd42   : > { %2312 = vmatpush1.bf16.msra.mxu0 %v4245_v57  ;;  %v4964_v57 = vld [vmem:[#allocation9 + $0x188] sm:$0xff]  }
 0xd43   : > { %2313 = vmatprep.subr.bf16.mxu0 %v4242_v29  ;;  %v4966_v29 = vld [vmem:[#allocation9 + $0x1c0] sm:$0xff]  }
 0xdf1   : > { %v2025_v60 = vpop.f32.mrf.mxu0 }
 0xdf2   : > { %v2026_v63 = vadd.f32 %v2025_v60, %v1942_v61  ;;  %v2054_v61 = vld [vmem:[#allocation7 + $0x270] sm:$0xff]  ;;  %v2053_v60 = vld [vmem:[#allocation7 + $0x258] sm:$0xff] }
 0xdf3   : > { %v4722_v4 = vpop.f32.mrf.mxu0  ;;  %v4235_v14 = vcombine.low %v2052_v59, %v2054_v61 }
 0xdf4   : > { %v2031_v7 = vadd.f32 %v2026_v63, %v5578_v55  ;;  %v4255_v55 = vcombine.low %v2072_v16, %v2074_v17  ;;  %v2055_v63 = vld [vmem:[#allocation7 + $0x278] sm:$0xff]  ;;  %v4239_v4 = vcombine.low %v2056_v50, %v2058_v52  ;;  %v4232_v16 = vcombine.high %v2048_v10, %v2050_v11  ;;  %v4958_v50 = vld [vmem:[#allocation9 + $0x1d0] sm:$0xff]  }
 0xdf5   : > { %v2028_v8 = vpop.f32.mrf.mxu0  ;;  %v4237_v15 = vcombine.low %v2053_v60, %v2055_v63  ;;  %v4234_v17 = vcombine.high %v2049_v12, %v2051_v13  ;;  %v4960_v52 = vld [vmem:[#allocation9 + $0x190] sm:$0xff]  }
 0xdf6   : > { %2034 = vadd.xlane.f32.xlu0 %v2031_v7  ;;  %2265 = vmatpush1.bf16.msra.mxu1 %v4255_v55  ;;  %v4236_v8 = vcombine.high %v2052_v59, %v2054_v61  ;;  %v4967_v59 = vld [vmem:[#allocation9 + $0x100] sm:$0xff]  }
 0xdf7   : > { %v4723_v9 = vpop.f32.mrf.mxu0  ;;  %2266 = vmatprep.subr.bf16.mxu1 %v4252_v33  ;;  %v4940_v33 = vld [vmem:[#allocation9 + $0x1b8] sm:$0xff]   ;;  %v4968_v61 = vld [vmem:[#allocation9 + $0x180] sm:$0xff]  }
 0xdf8   : > { %v4238_v9 = vcombine.high %v2053_v60, %v2055_v63  ;;  %v2080_v60 = vld [vmem:[#allocation12 + $0x40] ss:$8 sm:$0xf] }
 0xdf9   : > { %v2085_v63 = vrot.slane %v2080_v60, %v5549_v1 }
 0xdfa   : > { %2267 = vmatpush1.bf16.msra.mxu1 %v4251_v35  ;;  %v4941_v35 = vld [vmem:[#allocation9 + $0x170] sm:$0xff]  }
 0xdfb   : > { %2268 = vmatprep.subr.bf16.mxu1 %v4248_v41  ;;  %v4949_v41 = vld [vmem:[#allocation9 + $0x160] sm:$0xff]  }
 0xdfe   : > { %2269 = vmatpush1.bf16.msra.mxu1 %v4247_v40  ;;  %v4948_v40 = vld [vmem:[#allocation9 + $0x1a8] sm:$0xff]  }
 0xdff   : > { %2270 = vmatprep.subr.bf16.mxu1 %v4244_v47  ;;  %v4955_v47 = vld [vmem:[#allocation9 + $0x118] sm:$0xff]  }
 0xe02   : > { %2271 = vmatpush1.bf16.msra.mxu1 %v4243_v56  ;;  %v4963_v56 = vld [vmem:[#allocation9 + $0x108] sm:$0xff]  }
 0xe03   : > { %2272 = vmatprep.subr.bf16.mxu1 %v4240_v58  ;;  %v4965_v58 = vld [vmem:[#allocation9 + $0x140] sm:$0xff]  }
 0xe06   : > { %2273 = vmatpush1.bf16.msra.mxu1 %v4239_v4  ;;  %v2093_v4 = vrot.slane %v2080_v60, %v5551_v3 }
 0xe07   : > { %2274 = vmatprep.subr.bf16.mxu1 %v4236_v8  ;;  %v2097_v8 = vrot.slane %v2080_v60, %v5555_v6 }
 0xe0a   : > { %2275 = vmatpush1.bf16.msra.mxu1 %v4235_v14 }
 0xe0b   : > { %2276 = vmatprep.subr.bf16.mxu1 %v4232_v16 }
 0xe0e   : > { %2277 = vmatpush1.bf16.msra.mxu1 %v4231_v18 }
 0xe0f   : > { %4493 = vmatprep.subr.bf16.mxu1 %v4937_v20 }
 0xe7f   : > { %v2035_v25 = vpop.xlane.xlu0 %2034 }
 0xe80   : > { %v2036_v26 = vmul.f32 0.0078125, %v2035_v25  ;;  %v2032_v25 = vld [vmem:[#allocation12 + $0x45] ss:$0 sm:$0xff] }
 0xe82   : > { %v5604_v27 = vsub.f32 %v2031_v7, %v2036_v26  ;;  %v4241_v7 = vcombine.low %v2057_v53, %v2059_v54  ;;  %v4961_v53 = vld [vmem:[#allocation9 + $0x148] sm:$0xff]  }
 0xe83   : > { %v4962_v54 = vld [vmem:[#allocation9 + $0x1c8] sm:$0xff]  }
 0xe84   : > { %v2038_v2 = vmul.f32 %v5604_v27, %v5604_v27  ;;  %2314 = vmatpush1.bf16.msra.mxu0 %v4241_v7  ;;  %v2089_v7 = vrot.slane %v2080_v60, %v5553_v5  ;;  %v2730_v60 = vld [vmem:[#allocation7 + $0x560] sm:$0xff] }
 0xe85   : > { %2315 = vmatprep.subr.bf16.mxu0 %v4238_v9 }
 0xe86   : > { %2039 = vadd.xlane.f32.xlu1 %v2038_v2  ;;  %v2033_v2 = vld [vmem:[#allocation12 + $0x46] ss:$0 sm:$0xff] }
 0xe88   : > { %2316 = vmatpush1.bf16.msra.mxu0 %v4237_v15 }
 0xe89   : > { %2317 = vmatprep.subr.bf16.mxu0 %v4234_v17 }
 0xe8c   : > { %2318 = vmatpush1.bf16.msra.mxu0 %v4233_v19 }
 0xe8d   : > { %4515 = vmatprep.subr.bf16.mxu0 %v4938_v21 }
 0xf0f   : > { %v2040_v22 = vpop.xlane.xlu1 %2039 }
 0xf10   : > { %v2041_v23 = vmul.f32 0.0078125, %v2040_v22 }
 0xf12   : > { %v2042_v55 = vadd.f32 1e-05, %v2041_v23 }
 0xf14   : > { %5021 = vrsqrt.f32 %v2042_v55 }
 0xf21   : > { %v5022_v24 = vpop.eup %5021 }
 0xf22   : > { %v2044_v26 = vmul.f32 %v5022_v24, %v5604_v27  ;;  %v4945_v27 = vld [vmem:[#allocation9 + $0x168] sm:$0xff]  }
 0xf24   : > { %v2045_v28 = vmul.f32 %v2044_v26, %v2032_v25 }
 0xf26   : > { %v5609_v30 = vadd.f32 %v2045_v28, %v2033_v2 }
 0xf28   : > { %v2047_v34 = vpack.c.bf16 %v5609_v30, %v5609_v30 }
 0xf2a   : > { %2295 = vmatmul.mubr.bf16.vlgmr.msra.gmra.mxu1 %v2047_v34  ;;  %2336 = vmatmul.mubr.bf16.vlgmr.msra.gmra.mxu0 %v2047_v34 }
 0xf2b   : > { %4494 = vmatpush3.bf16.msra.mxu1 %v4939_v32  ;;  %4516 = vmatpush3.bf16.msra.mxu0 %v4940_v33  ;;  %v2417_v33 = vld [vmem:[#allocation12 + $0x47] ss:$0 sm:$0xff] }
 0xf2c   : > { %4495 = vmatprep.subr.bf16.mxu1 %v4941_v35  ;;  %4517 = vmatprep.subr.bf16.mxu0 %v4942_v36 }
 0xf2f   : > { %4496 = vmatpush3.bf16.msra.mxu1 %v4943_v37  ;;  %4518 = vmatpush3.bf16.msra.mxu0 %v4944_v31 }
 0xf30   : > { %4497 = vmatprep.subr.bf16.mxu1 %v4945_v27  ;;  %4519 = vmatprep.subr.bf16.mxu0 %v4946_v38 }
 0xf33   : > { %4498 = vmatpush3.bf16.msra.mxu1 %v4947_v39  ;;  %4520 = vmatpush3.bf16.msra.mxu0 %v4948_v40 }
 0xf34   : > { %4499 = vmatprep.subr.bf16.mxu1 %v4949_v41  ;;  %4521 = vmatprep.subr.bf16.mxu0 %v4950_v42 }
 0xf37   : > { %4500 = vmatpush3.bf16.msra.mxu1 %v4951_v43  ;;  %4522 = vmatpush3.bf16.msra.mxu0 %v4952_v44  ;;  %v2736_v43 = vld [vmem:[#allocation7 + $0x5c0] sm:$0xff] }
 0xf38   : > { %4501 = vmatprep.subr.bf16.mxu1 %v4953_v45  ;;  %4523 = vmatprep.subr.bf16.mxu0 %v4954_v46  ;;  %v2738_v44 = vld [vmem:[#allocation7 + $0x5e0] sm:$0xff]  ;;  %v2737_v45 = vld [vmem:[#allocation7 + $0x5c8] sm:$0xf] }
 0xf39   : > { %v4316_v46 = vcombine.low %v2736_v43, %v2738_v44 }
 0xf3b   : > { %4502 = vmatpush3.bf16.msra.mxu1 %v4955_v47  ;;  %4524 = vmatpush3.bf16.msra.mxu0 %v4956_v48  ;;  %v4317_v47 = vcombine.high %v2736_v43, %v2738_v44  ;;  %v2739_v48 = vld [vmem:[#allocation7 + $0x5e8] sm:$0xf] }
 0xf3c   : > { %4503 = vmatprep.subr.bf16.mxu1 %v4957_v49  ;;  %4525 = vmatprep.subr.bf16.mxu0 %v4958_v50  ;;  %v2732_v49 = vld [vmem:[#allocation7 + $0x580] sm:$0xff] }
 0xf3d   : > { %v2734_v50 = vld [vmem:[#allocation7 + $0x5a0] sm:$0xff] }
 0xf3f   : > { %4504 = vmatpush3.bf16.msra.mxu1 %v4959_v51  ;;  %4526 = vmatpush3.bf16.msra.mxu0 %v4960_v52  ;;  %v4318_v51 = vcombine.low %v2737_v45, %v2739_v48  ;;  %v4314_v52 = vcombine.high %v2732_v49, %v2734_v50 }
 0xf40   : > { %4505 = vmatprep.subr.bf16.mxu1 %v4961_v53  ;;  %4527 = vmatprep.subr.bf16.mxu0 %v4962_v54  ;;  %v2733_v53 = vld [vmem:[#allocation7 + $0x588] sm:$0xf] }
 0xf41   : > { %v2735_v54 = vld [vmem:[#allocation7 + $0x5a8] sm:$0xf] }
 0xf43   : > { %4506 = vmatpush3.bf16.msra.mxu1 %v4963_v56  ;;  %4528 = vmatpush3.bf16.msra.mxu0 %v4964_v57  ;;  %v4313_v56 = vcombine.low %v2732_v49, %v2734_v50  ;;  %v4315_v57 = vcombine.low %v2733_v53, %v2735_v54  ;;  %v2691_v49 = vld [vmem:[#allocation12 + $0x60] ss:$0 sm:$0xff] }
 0xf44   : > { %4507 = vmatprep.subr.bf16.mxu1 %v4965_v58  ;;  %4529 = vmatprep.subr.bf16.mxu0 %v4966_v29 }
 0xf47   : > { %4508 = vmatpush3.bf16.msra.mxu1 %v4967_v59  ;;  %4530 = vmatpush3.bf16.msra.mxu0 %v4968_v61  ;;  %v2728_v61 = vld [vmem:[#allocation7 + $0x540] sm:$0xff] }
 0xf48   : > { %4724 = vmatprep.subr.bf16.mxu0 %v5280_v0  ;;  %2868 = vmatprep.subr.bf16.mxu1 %v4317_v47 }
 0xfea   : > { %v2296_v9 = vpop.f32.mrf.mxu1  ;;  %v2337_v10 = vpop.f32.mrf.mxu0 }
 0xfeb   : > { %v2297_v11 = vadd.f32 %v2296_v9, %v2085_v63  ;;  %v2338_v12 = vadd.f32 %v2337_v10, %v2093_v4  ;;  %v4311_v63 = vcombine.high %v2728_v61, %v2730_v60  ;;  %v2729_v4 = vld [vmem:[#allocation7 + $0x548] sm:$0xf]  ;;  %v2724_v10 = vld [vmem:[#allocation7 + $0x500] sm:$0xff] }
 0xfec   : > { %v2298_v13 = vpop.f32.mrf.mxu1  ;;  %v2339_v14 = vpop.f32.mrf.mxu0 }
 0xfed   : > { %v2299_v15 = vadd.f32 %v2298_v13, %v2089_v7  ;;  %v2340_v16 = vadd.f32 %v2339_v14, %v2097_v8  ;;  %v2344_v17 = vmax.f32 %v2297_v11, 0.0  ;;  %v2346_v18 = vmax.f32 %v2338_v12, 0.0  ;;  %v2731_v7 = vld [vmem:[#allocation7 + $0x568] sm:$0xf]  ;;  %v2726_v11 = vld [vmem:[#allocation7 + $0x520] sm:$0xff] }
 0xfee   : > { %v2300_v19 = vpop.f32.mrf.mxu1  ;;  %v2341_v20 = vpop.f32.mrf.mxu0  ;;  %v4310_v8 = vcombine.low %v2728_v61, %v2730_v60  ;;  %v4312_v9 = vcombine.low %v2729_v4, %v2731_v7  ;;  %v4307_v12 = vcombine.low %v2724_v10, %v2726_v11  ;;  %v4308_v13 = vcombine.high %v2724_v10, %v2726_v11  ;;  %v2725_v14 = vld [vmem:[#allocation7 + $0x508] sm:$0xf]  ;;  %v2950_v4 = vld [vmem:[#allocation12 + $0x81] ss:$0 sm:$0xff] }
 0xfef   : > { %v2345_v21 = vmax.f32 %v2299_v15, 0.0  ;;  %v2347_v22 = vmax.f32 %v2340_v16, 0.0  ;;  %v2348_v26 = vpack.c.bf16 %v2344_v17, %v2344_v17  ;;  %v2350_v2 = vpack.c.bf16 %v2346_v18, %v2346_v18  ;;  %v2727_v15 = vld [vmem:[#allocation7 + $0x528] sm:$0xf]  ;;  %v2720_v16 = vld [vmem:[#allocation7 + $0x4c0] sm:$0xff] }
 0xff0   : > { %v2301_v23 = vpop.f32.mrf.mxu1  ;;  %v2342_v55 = vpop.f32.mrf.mxu0  ;;  %v4309_v17 = vcombine.low %v2725_v14, %v2727_v15  ;;  %v2722_v18 = vld [vmem:[#allocation7 + $0x4e0] sm:$0xff]  ;;  %v2721_v19 = vld [vmem:[#allocation7 + $0x4c8] sm:$0xf] }
 0xff1   : > { %v2349_v24 = vpack.c.bf16 %v2345_v21, %v2345_v21  ;;  %v2351_v25 = vpack.c.bf16 %v2347_v22, %v2347_v22  ;;  %v2723_v20 = vld [vmem:[#allocation7 + $0x4e8] sm:$0xf]  ;;  %v4305_v21 = vcombine.high %v2720_v16, %v2722_v18  ;;  %v2716_v22 = vld [vmem:[#allocation7 + $0x480] sm:$0xff]  ;;  %v4304_v55 = vcombine.low %v2720_v16, %v2722_v18 }
 0xff2   : > { %v2718_v23 = vld [vmem:[#allocation7 + $0x4a0] sm:$0xff] }
 0xff3   : > { %2642 = vmatprep.mubr.bf16.mxu1 %v2349_v24  ;;  %2682 = vmatprep.mubr.bf16.mxu0 %v2351_v25  ;;  %v4306_v24 = vcombine.low %v2721_v19, %v2723_v20  ;;  %v4302_v25 = vcombine.high %v2716_v22, %v2718_v23 }
 0xff4   : > { %2643 = vmatmul.mubr.bf16.vlgmr.msra.gmra.mxu1 %v2348_v26  ;;  %2683 = vmatmul.mubr.bf16.vlgmr.msra.gmra.mxu0 %v2350_v2  ;;  %v2717_v26 = vld [vmem:[#allocation7 + $0x488] sm:$0xf] }
 0xff5   : > { %2900 = vmatprep.mubr.bf16.mxu1 %v5282_v62  ;;  %4740 = vmatprep.mubr.msk.bf16.mxu0 %vm5281_vm0, %v5280_v0  ;;  %v2719_v2 = vld [vmem:[#allocation7 + $0x4a8] sm:$0xf] }
 0xff6   : > { %2869 = vmatpush1.bf16.msra.mxu1 %v4316_v46  ;;  %4725 = vmatpush3.bf16.msra.mxu0 %v4318_v51  ;;  %v2692_v51 = vld [vmem:[#allocation12 + $0x61] ss:$0 sm:$0xff] }
 0xff7   : > { %2870 = vmatprep.subr.bf16.mxu1 %v4314_v52  ;;  %4726 = vmatprep.subr.bf16.mxu0 %v5280_v0 }
 0xffa   : > { %2871 = vmatpush1.bf16.msra.mxu1 %v4313_v56  ;;  %4727 = vmatpush3.bf16.msra.mxu0 %v4315_v57 }
 0xffb   : > { %4728 = vmatprep.subr.bf16.mxu0 %v5280_v0  ;;  %2872 = vmatprep.subr.bf16.mxu1 %v4311_v63 }
 0xffe   : > { %2873 = vmatpush1.bf16.msra.mxu1 %v4310_v8  ;;  %4729 = vmatpush3.bf16.msra.mxu0 %v4312_v9 }
 0xfff   : > { %4730 = vmatprep.subr.bf16.mxu0 %v5280_v0  ;;  %2874 = vmatprep.subr.bf16.mxu1 %v4308_v13 }
0x1002   : > { %2875 = vmatpush1.bf16.msra.mxu1 %v4307_v12  ;;  %4731 = vmatpush3.bf16.msra.mxu0 %v4309_v17 }
0x1003   : > { %2876 = vmatprep.subr.bf16.mxu1 %v4305_v21  ;;  %4732 = vmatprep.subr.bf16.mxu0 %v5280_v0 }
0x1006   : > { %2877 = vmatpush1.bf16.msra.mxu1 %v4304_v55  ;;  %4733 = vmatpush3.bf16.msra.mxu0 %v4306_v24 }
0x1007   : > { %2878 = vmatprep.subr.bf16.mxu1 %v4302_v25  ;;  %4734 = vmatprep.subr.bf16.mxu0 %v5280_v0  ;;  %v3072_v25 = vld [vmem:[#allocation7 + $0x5cc] sm:$0xf] }
0x10b4   : > { %v4509_v28 = vpop.f32.mrf.mxu1  ;;  %v4531_v32 = vpop.f32.mrf.mxu0 }
0x10b6   : > { %v4510_v34 = vpop.f32.mrf.mxu1  ;;  %v4532_v35 = vpop.f32.mrf.mxu0 }
0x10b7   : > { %v4511_v36 = vadd.f32 %v4510_v34, %v4509_v28  ;;  %v4533_v38 = vadd.f32 %v4532_v35, %v4531_v32  ;;  %v2712_v28 = vld [vmem:[#allocation7 + $0x440] sm:$0xff]  ;;  %v4303_v34 = vcombine.low %v2717_v26, %v2719_v2  ;;  %v3073_v26 = vld [vmem:[#allocation7 + $0x5ec] sm:$0xf] }
0x10b8   : > { %v4512_v37 = vpop.f32.mrf.mxu1  ;;  %v4534_v31 = vpop.f32.mrf.mxu0  ;;  %v2714_v32 = vld [vmem:[#allocation7 + $0x460] sm:$0xff] }
0x10b9   : > { %v2645_v27 = vadd.f32 %v4511_v36, %v2417_v33  ;;  %v4301_v33 = vcombine.low %v2716_v22, %v2718_v23  ;;  %v4299_v35 = vcombine.high %v2712_v28, %v2714_v32  ;;  %v2713_v36 = vld [vmem:[#allocation7 + $0x448] sm:$0xf]  ;;  %v2708_v31 = vld [vmem:[#allocation7 + $0x400] sm:$0xff]  ;;  %4735 = vmatpush3.bf16.msra.mxu0 %v4303_v34  ;;  %v3070_v34 = vld [vmem:[#allocation7 + $0x58c] sm:$0xf] }
0x10ba   : > { %v4513_v39 = vpop.f32.mrf.mxu1  ;;  %v4535_v40 = vpop.f32.mrf.mxu0  ;;  %v2715_v37 = vld [vmem:[#allocation7 + $0x468] sm:$0xf]  ;;  %4736 = vmatprep.subr.bf16.mxu0 %v5280_v0 }
0x10bb   : > { %v2685_v41 = vadd.f32 %v4533_v38, %v2645_v27  ;;  %v2710_v27 = vld [vmem:[#allocation7 + $0x420] sm:$0xff]  ;;  %2879 = vmatpush1.bf16.msra.mxu1 %v4301_v33  ;;  %v4298_v38 = vcombine.low %v2712_v28, %v2714_v32  ;;  %v4300_v39 = vcombine.low %v2713_v36, %v2715_v37  ;;  %v4327_v32 = vcombine.low %v3072_v25, %v3073_v26  ;;  %v3068_v37 = vld [vmem:[#allocation7 + $0x54c] sm:$0xf]  ;;  %v3200_v25 = vld [vmem:[#allocation7 + $0x550] sm:$0xff] }
0x10bc   : > { %2880 = vmatprep.subr.bf16.mxu1 %v4299_v35  ;;  %v4296_v40 = vcombine.high %v2708_v31, %v2710_v27  ;;  %v4295_v43 = vcombine.low %v2708_v31, %v2710_v27  ;;  %v3071_v35 = vld [vmem:[#allocation7 + $0x5ac] sm:$0xf]  ;;  %v3202_v26 = vld [vmem:[#allocation7 + $0x570] sm:$0xff] }
0x10bd   : > { %v2690_v42 = vadd.f32 %v2685_v41, %v5609_v30  ;;  %v2709_v41 = vld [vmem:[#allocation7 + $0x408] sm:$0xf]  ;;  %4737 = vmatpush3.bf16.msra.mxu0 %v4300_v39  ;;  %v4326_v36 = vcombine.low %v3070_v34, %v3071_v35  ;;  %v3069_v31 = vld [vmem:[#allocation7 + $0x56c] sm:$0xf] }
0x10be   : > { %4738 = vmatprep.subr.bf16.mxu0 %v5280_v0  ;;  %v4325_v27 = vcombine.low %v3068_v37, %v3069_v31  ;;  %v3067_v39 = vld [vmem:[#allocation7 + $0x52c] sm:$0xf]  ;;  %v3198_v37 = vld [vmem:[#allocation7 + $0x530] sm:$0xff]  ;;  %v3197_v31 = vld [vmem:[#allocation7 + $0x518] sm:$0xff] }
0x10bf   : > { %2693 = vadd.xlane.f32.xlu0 %v2690_v42  ;;  %2881 = vmatpush1.bf16.msra.mxu1 %v4298_v38  ;;  %v3066_v38 = vld [vmem:[#allocation7 + $0x50c] sm:$0xf] }
0x10c0   : > { %2882 = vmatprep.subr.bf16.mxu1 %v4296_v40  ;;  %v4324_v40 = vcombine.low %v3066_v38, %v3067_v39  ;;  %v3199_v39 = vld [vmem:[#allocation7 + $0x538] sm:$0xff] }
0x10c3   : > { %2883 = vmatpush1.bf16.msra.mxu1 %v4295_v43 }
0x10c4   : > { %4744 = vmatprep.subr.bf16.mxu1 %v5280_v0 }
0x1148   : > { %v2694_v30 = vpop.xlane.xlu0 %2693 }
0x1149   : > { %v2695_v58 = vmul.f32 0.0078125, %v2694_v30  ;;  %v2952_v30 = vld [vmem:[#allocation12 + $0x82] ss:$0 sm:$0xff] }
0x114b   : > { %v5624_v29 = vsub.f32 %v2690_v42, %v2695_v58  ;;  %v2711_v42 = vld [vmem:[#allocation7 + $0x428] sm:$0xf] }
0x114c   : > { %v4297_v44 = vcombine.low %v2709_v41, %v2711_v42  ;;  %v3064_v41 = vld [vmem:[#allocation7 + $0x4cc] sm:$0xf] }
0x114d   : > { %v2697_v59 = vmul.f32 %v5624_v29, %v5624_v29  ;;  %v3065_v42 = vld [vmem:[#allocation7 + $0x4ec] sm:$0xf] }
0x114e   : > { %4739 = vmatpush3.bf16.msra.mxu0 %v4297_v44  ;;  %v4323_v43 = vcombine.low %v3064_v41, %v3065_v42  ;;  %v3062_v44 = vld [vmem:[#allocation7 + $0x48c] sm:$0xf]  ;;  %v3194_v41 = vld [vmem:[#allocation7 + $0x4f0] sm:$0xff]  ;;  %v4346_v42 = vcombine.low %v3197_v31, %v3199_v39 }
0x114f   : > { %2698 = vadd.xlane.f32.xlu1 %v2697_v59 }
0x11d8   : > { %v2699_v45 = vpop.xlane.xlu1 %2698 }
0x11d9   : > { %v2700_v46 = vmul.f32 0.0078125, %v2699_v45  ;;  %v3063_v45 = vld [vmem:[#allocation7 + $0x4ac] sm:$0xf] }
0x11db   : > { %v2701_v47 = vadd.f32 1e-05, %v2700_v46  ;;  %v4322_v46 = vcombine.low %v3062_v44, %v3063_v45  ;;  %v3193_v45 = vld [vmem:[#allocation7 + $0x4d8] sm:$0xff] }
0x11dd   : > { %5023 = vrsqrt.f32 %v2701_v47  ;;  %v3060_v47 = vld [vmem:[#allocation7 + $0x44c] sm:$0xf] }
0x11ea   : > { %v5024_v48 = vpop.eup %5023 }
0x11eb   : > { %v2703_v50 = vmul.f32 %v5024_v48, %v5624_v29  ;;  %v2954_v29 = vld [vmem:[#allocation12 + $0x83] ss:$0 sm:$0xff]  ;;  %v3061_v48 = vld [vmem:[#allocation7 + $0x46c] sm:$0xf] }
0x11ed   : > { %v2704_v52 = vmul.f32 %v2703_v50, %v2691_v49  ;;  %v4321_v49 = vcombine.low %v3060_v47, %v3061_v48  ;;  %v3058_v50 = vld [vmem:[#allocation7 + $0x40c] sm:$0xf]  ;;  %v3188_v47 = vld [vmem:[#allocation7 + $0x490] sm:$0xff] }
0x11ef   : > { %v5635_v53 = vadd.f32 %v2704_v52, %v2692_v51  ;;  %v3059_v51 = vld [vmem:[#allocation7 + $0x42c] sm:$0xf] }
0x11f0   : > { %v4320_v52 = vcombine.low %v3058_v50, %v3059_v51  ;;  %v3189_v50 = vld [vmem:[#allocation7 + $0x498] sm:$0xff] }
0x11f1   : > { %v2706_v54 = vpack.c.bf16 %v5635_v53, %v5635_v53  ;;  %v3191_v51 = vld [vmem:[#allocation7 + $0x4b8] sm:$0xff] }
0x11f3   : > { %2901 = vmatmul.mubr.bf16.vlgmr.msra.gmra.mxu1 %v2706_v54  ;;  %4741 = vmatmul.mubr.bf16.vlgmr.msra.gmra.mxu0 %v2706_v54 }
0x11f4   : > { %4746 = vmatprep.mubr.msk.bf16.mxu1 %vm5281_vm0, %v5280_v0  ;;  %3426 = vmatprep.mubr.bf16.mxu0 %v5282_v62 }
0x12b3   : > { %v2902_v56 = vpop.f32.mrf.mxu1  ;;  %v2943_v57 = vpop.f32.mrf.mxu0 }
0x12b4   : > { %v2955_v8 = vadd.f32 %v2954_v29, %v2943_v57  ;;  %v2951_v11 = vadd.f32 %v2950_v4, %v2902_v56 }
0x12b5   : > { %v2904_v58 = vpop.f32.mrf.mxu1  ;;  %v4742_v59 = vpop.f32.mrf.mxu0 }
0x12b6   : > { %v2953_v61 = vadd.f32 %v2952_v30, %v2904_v58  ;;  %v3010_v12 = vpack.c.bf16 %v2955_v8, %v2955_v8  ;;  %v2956_v13 = vpack.c.bf16 %v2951_v11, %v2951_v11  ;;  %v3074_v59 = vld [vmem:[#allocation12 + $0x84] ss:$0 sm:$0xff]  ;;  %v3208_v8 = vld [vmem:[#allocation7 + $0x5d0] sm:$0xff] }
0x12b7   : > { %v2906_v60 = vpop.f32.mrf.mxu1  ;;  %v2946_v63 = vpop.f32.mrf.mxu0 }
0x12b8   : > { %v2957_v7 = vpack.c.bf16 %v2953_v61, %v2953_v61  ;;  %v3015_v14 = vsel %vm399_vm1, %v3010_v12, 0 }
0x12b9   : > { %v2907_v9 = vpop.f32.mrf.mxu1  ;;  %v4743_v10 = vpop.f32.mrf.mxu0 }
0x12ba   : > { %4745 = vmatpush3.bf16.xpose.msra.mxu1 %v2957_v7  ;;  %v3210_v9 = vld [vmem:[#allocation7 + $0x5f0] sm:$0xff]  ;;  %v3209_v10 = vld [vmem:[#allocation7 + $0x5d8] sm:$0xff] }
0x12bb   : > { %4750 = vmatprep.subr.bf16.mxu1 %v5280_v0  ;;  %v4356_v11 = vcombine.low %v3208_v8, %v3210_v9  ;;  %v4357_v12 = vcombine.high %v3208_v8, %v3210_v9  ;;  %v3182_v8 = vld [vmem:[#allocation7 + $0x430] sm:$0xff]  ;;  %v3181_v9 = vld [vmem:[#allocation7 + $0x418] sm:$0xff] }
0x12bd   : > { %3394 = vmatprep.subr.bf16.mxu0 %v4357_v12 }
0x12be   : > { %3395 = vmatpush1.bf16.msra.mxu0 %v4356_v11 }
0x12c1   : > { %4747 = vmatmul.mubr.bf16.vlgmr.msra.gmra.mxu1 %v2956_v13  ;;  %v3211_v13 = vld [vmem:[#allocation7 + $0x5f8] sm:$0xff] }
0x12c2   : > { %4751 = vmatpush3.bf16.msra.mxu1 %v3015_v14  ;;  %4752 = vmatprep.mubr.msk.bf16.mxu1 %vm5281_vm0, %v5280_v0  ;;  %v3204_v14 = vld [vmem:[#allocation7 + $0x590] sm:$0xff] }
0x12c3   : > { %4756 = vmatprep.subr.bf16.mxu1 %v5280_v0 }
0x1381   : > { %v2992_v15 = vpop.f32.mrf.mxu1 }
0x1382   : > { %v2998_v16 = vsel %vm733_vm3, %v2992_v15, -inf }
0x1383   : > { %2999 = vmax.xlane.f32.xlu0 %v2998_v16  ;;  %v4748_v17 = vpop.f32.mrf.mxu1  ;;  %v4358_v16 = vcombine.low %v3209_v10, %v3211_v13 }
0x1385   : > { %v2995_v18 = vpop.f32.mrf.mxu1 }
0x1386   : > { %v3205_v18 = vld [vmem:[#allocation7 + $0x598] sm:$0xff] }
0x1387   : > { %v4749_v19 = vpop.f32.mrf.mxu1 }
0x1388   : > { %v3207_v19 = vld [vmem:[#allocation7 + $0x5b8] sm:$0xff] }
0x140c   : > { %v3000_v20 = vpop.xlane.xlu0 %2999 }
0x140d   : > { %v3001_v21 = vsub.f32 %v2992_v15, %v3000_v20  ;;  %v3206_v15 = vld [vmem:[#allocation7 + $0x5b0] sm:$0xff]  ;;  %v4355_v20 = vcombine.high %v3205_v18, %v3207_v19 }
0x140e   : > { %v4353_v17 = vcombine.high %v3204_v14, %v3206_v15 }
0x140f   : > { %v3002_v22 = vmul.f32 1.442695, %v3001_v21  ;;  %v4354_v21 = vcombine.low %v3205_v18, %v3207_v19 }
0x1410   : > { %3396 = vmatprep.subr.bf16.mxu0 %v4353_v17  ;;  %v4970_v17 = vld [vmem:[#allocation9 + $0x2f8] sm:$0xff]  }
0x1411   : > { %5025 = vpow2.f32 %v3002_v22 }
0x141e   : > { %v5026_v23 = vpop.eup %5025 }
0x141f   : > { %v3004_v55 = vsel %vm733_vm3, %v5026_v23, 0.0 }
0x1420   : > { %3005 = vadd.xlane.f32.xlu1 %v3004_v55 }
0x14a9   : > { %v3006_v24 = vpop.xlane.xlu1 %3005 }
0x14aa   : > { %5027 = vrcp.f32 %v3006_v24 }
0x14b7   : > { %v5028_v2 = vpop.eup %5027 }
0x14b8   : > { %v3008_v28 = vmul.f32 %v5028_v2, %v5026_v23  ;;  %v3201_v2 = vld [vmem:[#allocation7 + $0x558] sm:$0xff] }
0x14ba   : > { %v3009_v33 = vpack.c.bf16 %v3008_v28, %v3008_v28  ;;  %v4349_v28 = vcombine.high %v3200_v25, %v3202_v26 }
0x14bc   : > { %4753 = vmatmul.mubr.msk.bf16.vlgmr.msra.gmra.mxu1 %vm733_vm3, %v3009_v33  ;;  %v4348_v33 = vcombine.low %v3200_v25, %v3202_v26  ;;  %v4971_v26 = vld [vmem:[#allocation9 + $0x238] sm:$0xff]  }
0x14bd   : > { %4757 = vmatpush3.bf16.msra.mxu1 %v4327_v32  ;;  %4772 = vmatprep.mubr.msk.bf16.mxu1 %vm5281_vm0, %v5280_v0  ;;  %v3203_v32 = vld [vmem:[#allocation7 + $0x578] sm:$0xff] }
0x14be   : > { %4758 = vmatprep.subr.bf16.mxu1 %v5280_v0  ;;  %v4350_v34 = vcombine.low %v3201_v2, %v3203_v32  ;;  %v4351_v35 = vcombine.high %v3201_v2, %v3203_v32  ;;  %v4972_v2 = vld [vmem:[#allocation9 + $0x2b8] sm:$0xff]   ;;  %v4973_v32 = vld [vmem:[#allocation9 + $0x270] sm:$0xff]  }
0x14c1   : > { %4759 = vmatpush3.bf16.msra.mxu1 %v4326_v36  ;;  %v3196_v36 = vld [vmem:[#allocation7 + $0x510] sm:$0xff] }
0x14c2   : > { %4760 = vmatprep.subr.bf16.mxu1 %v5280_v0  ;;  %v4345_v38 = vcombine.high %v3196_v36, %v3198_v37 }
0x14c5   : > { %4761 = vmatpush3.bf16.msra.mxu1 %v4325_v27  ;;  %v4344_v27 = vcombine.low %v3196_v36, %v3198_v37  ;;  %v4978_v36 = vld [vmem:[#allocation9 + $0x2e8] sm:$0xff]  }
0x14c6   : > { %4762 = vmatprep.subr.bf16.mxu1 %v5280_v0  ;;  %v4979_v37 = vld [vmem:[#allocation9 + $0x228] sm:$0xff]  }
0x14c9   : > { %4763 = vmatpush3.bf16.msra.mxu1 %v4324_v40  ;;  %v3192_v40 = vld [vmem:[#allocation7 + $0x4d0] sm:$0xff] }
0x14ca   : > { %4764 = vmatprep.subr.bf16.mxu1 %v5280_v0  ;;  %v4341_v44 = vcombine.high %v3192_v40, %v3194_v41 }
0x14cd   : > { %4765 = vmatpush3.bf16.msra.mxu1 %v4323_v43  ;;  %v4347_v43 = vcombine.high %v3197_v31, %v3199_v39  ;;  %v4980_v31 = vld [vmem:[#allocation9 + $0x2a8] sm:$0xff]   ;;  %v4983_v39 = vld [vmem:[#allocation9 + $0x220] sm:$0xff]  }
0x14ce   : > { %4766 = vmatprep.subr.bf16.mxu1 %v5280_v0 }
0x14d1   : > { %4767 = vmatpush3.bf16.msra.mxu1 %v4322_v46  ;;  %v3195_v46 = vld [vmem:[#allocation7 + $0x4f8] sm:$0xff] }
0x14d2   : > { %4768 = vmatprep.subr.bf16.mxu1 %v5280_v0  ;;  %v4343_v48 = vcombine.high %v3193_v45, %v3195_v46 }
0x14d5   : > { %4769 = vmatpush3.bf16.msra.mxu1 %v4321_v49  ;;  %v3190_v49 = vld [vmem:[#allocation7 + $0x4b0] sm:$0xff] }
0x14d6   : > { %4770 = vmatprep.subr.bf16.mxu1 %v5280_v0 }
0x14d9   : > { %4771 = vmatpush3.bf16.msra.mxu1 %v4320_v52  ;;  %v4340_v52 = vcombine.low %v3192_v40, %v3194_v41  ;;  %v4984_v40 = vld [vmem:[#allocation9 + $0x2a0] sm:$0xff]   ;;  %v4985_v41 = vld [vmem:[#allocation9 + $0x258] sm:$0xff]  }
0x157c   : > { %v3051_v54 = vpop.f32.mrf.mxu1 }
0x157d   : > { %v3057_v56 = vpack.c.bf16 %v3051_v54, %v3051_v54  ;;  %v4342_v54 = vcombine.low %v3193_v45, %v3195_v46  ;;  %v4989_v45 = vld [vmem:[#allocation9 + $0x250] sm:$0xff]  }
0x157e   : > { %v4754_v57 = vpop.f32.mrf.mxu1  ;;  %v4990_v46 = vld [vmem:[#allocation9 + $0x2d0] sm:$0xff]  }
0x157f   : > { %4773 = vmatmul.mubr.bf16.vlgmr.msra.gmra.mxu1 %v3057_v56  ;;  %v4337_v56 = vcombine.high %v3188_v47, %v3190_v49  ;;  %v4339_v57 = vcombine.high %v3189_v50, %v3191_v51 }
0x1580   : > { %v3054_v30 = vpop.f32.mrf.mxu1  ;;  %3467 = vmatprep.mubr.bf16.mxu1 %v5282_v62  ;;  %v4359_v62 = vcombine.high %v3209_v10, %v3211_v13  ;;  %v3183_v10 = vld [vmem:[#allocation7 + $0x438] sm:$0xff] }
0x1581   : > { %v3184_v30 = vld [vmem:[#allocation7 + $0x450] sm:$0xff] }
0x1582   : > { %v4755_v58 = vpop.f32.mrf.mxu1  ;;  %3435 = vmatprep.subr.bf16.mxu1 %v4359_v62  ;;  %v4969_v62 = vld [vmem:[#allocation9 + $0x278] sm:$0xff]  }
0x1583   : > { %3436 = vmatpush1.bf16.msra.mxu1 %v4358_v16  ;;  %v3186_v58 = vld [vmem:[#allocation7 + $0x470] sm:$0xff]  ;;  %v4330_v16 = vcombine.low %v3181_v9, %v3183_v10 }
0x1584   : > { %3437 = vmatprep.subr.bf16.mxu1 %v4355_v20  ;;  %v4332_v11 = vcombine.low %v3184_v30, %v3186_v58 }
0x1587   : > { %3438 = vmatpush1.bf16.msra.mxu1 %v4354_v21  ;;  %v3164_v21 = vld [vmem:[#allocation12 + $0x85] ss:$0 sm:$0xff] }
0x1588   : > { %3439 = vmatprep.subr.bf16.mxu1 %v4351_v35  ;;  %v4976_v35 = vld [vmem:[#allocation9 + $0x2b0] sm:$0xff]  }
0x158b   : > { %3440 = vmatpush1.bf16.msra.mxu1 %v4350_v34  ;;  %v4975_v34 = vld [vmem:[#allocation9 + $0x230] sm:$0xff]  }
0x158c   : > { %3441 = vmatprep.subr.bf16.mxu1 %v4347_v43  ;;  %v4987_v43 = vld [vmem:[#allocation9 + $0x218] sm:$0xff]  }
0x158f   : > { %3442 = vmatpush1.bf16.msra.mxu1 %v4346_v42  ;;  %v4986_v42 = vld [vmem:[#allocation9 + $0x2d8] sm:$0xff]  }
0x1590   : > { %3443 = vmatprep.subr.bf16.mxu1 %v4343_v48  ;;  %v4992_v48 = vld [vmem:[#allocation9 + $0x290] sm:$0xff]  }
0x1593   : > { %3444 = vmatpush1.bf16.msra.mxu1 %v4342_v54  ;;  %v4997_v54 = vld [vmem:[#allocation9 + $0x240] sm:$0xff]  }
0x1594   : > { %3445 = vmatprep.subr.bf16.mxu1 %v4339_v57  ;;  %v4999_v57 = vld [vmem:[#allocation9 + $0x200] sm:$0xff]  }
0x163f   : > { %v3157_v29 = vpop.f32.mrf.mxu1 }
0x1640   : > { %v3158_v61 = vadd.f32 %v3157_v29, %v3074_v59  ;;  %v3185_v59 = vld [vmem:[#allocation7 + $0x458] sm:$0xff] }
0x1641   : > { %v4774_v60 = vpop.f32.mrf.mxu1  ;;  %v3187_v29 = vld [vmem:[#allocation7 + $0x478] sm:$0xff] }
0x1642   : > { %v3163_v63 = vadd.f32 %v3158_v61, %v5635_v53  ;;  %v4352_v53 = vcombine.low %v3204_v14, %v3206_v15  ;;  %v4336_v61 = vcombine.low %v3188_v47, %v3190_v49  ;;  %v4338_v60 = vcombine.low %v3189_v50, %v3191_v51  ;;  %v4991_v47 = vld [vmem:[#allocation9 + $0x210] sm:$0xff]   ;;  %v4993_v49 = vld [vmem:[#allocation9 + $0x248] sm:$0xff]  }
0x1643   : > { %v3160_v4 = vpop.f32.mrf.mxu1  ;;  %v4334_v12 = vcombine.low %v3185_v59, %v3187_v29  ;;  %v4331_v14 = vcombine.high %v3181_v9, %v3183_v10  ;;  %v4994_v50 = vld [vmem:[#allocation9 + $0x2c8] sm:$0xff]  }
0x1644   : > { %3166 = vadd.xlane.f32.xlu0 %v3163_v63  ;;  %3397 = vmatpush1.bf16.msra.mxu0 %v4352_v53  ;;  %v4335_v4 = vcombine.high %v3185_v59, %v3187_v29  ;;  %v4995_v51 = vld [vmem:[#allocation9 + $0x208] sm:$0xff]  }
0x1645   : > { %v4775_v7 = vpop.f32.mrf.mxu1  ;;  %3398 = vmatprep.subr.bf16.mxu0 %v4349_v28  ;;  %3446 = vmatpush1.bf16.msra.mxu1 %v4338_v60 }
0x1646   : > { %v3180_v7 = vld [vmem:[#allocation7 + $0x410] sm:$0xff]  ;;  %3447 = vmatprep.subr.bf16.mxu1 %v4335_v4 }
0x1647   : > { %v4329_v13 = vcombine.high %v3180_v7, %v3182_v8  ;;  %v4328_v15 = vcombine.low %v3180_v7, %v3182_v8 }
0x1648   : > { %3399 = vmatpush1.bf16.msra.mxu0 %v4348_v33  ;;  %v4974_v33 = vld [vmem:[#allocation9 + $0x2f0] sm:$0xff]  }
0x1649   : > { %3400 = vmatprep.subr.bf16.mxu0 %v4345_v38  ;;  %3448 = vmatpush1.bf16.msra.mxu1 %v4334_v12  ;;  %v4982_v38 = vld [vmem:[#allocation9 + $0x2e0] sm:$0xff]  }
0x164a   : > { %3449 = vmatprep.subr.bf16.mxu1 %v4331_v14 }
0x164c   : > { %3401 = vmatpush1.bf16.msra.mxu0 %v4344_v27  ;;  %v4981_v27 = vld [vmem:[#allocation9 + $0x260] sm:$0xff]  }
0x164d   : > { %3402 = vmatprep.subr.bf16.mxu0 %v4341_v44  ;;  %3450 = vmatpush1.bf16.msra.mxu1 %v4330_v16  ;;  %v4988_v44 = vld [vmem:[#allocation9 + $0x298] sm:$0xff]  }
0x164e   : > { %4581 = vmatprep.subr.bf16.mxu1 %v4970_v17 }
0x1650   : > { %3403 = vmatpush1.bf16.msra.mxu0 %v4340_v52  ;;  %v4996_v52 = vld [vmem:[#allocation9 + $0x288] sm:$0xff]  }
0x1651   : > { %3404 = vmatprep.subr.bf16.mxu0 %v4337_v56  ;;  %v4998_v56 = vld [vmem:[#allocation9 + $0x2c0] sm:$0xff]  }
0x1654   : > { %3405 = vmatpush1.bf16.msra.mxu0 %v4336_v61 }
0x16cd   : > { %v3167_v22 = vpop.xlane.xlu0 %3166 }
0x16ce   : > { %v3168_v23 = vmul.f32 0.0078125, %v3167_v22 }
0x16d0   : > { %v5661_v55 = vsub.f32 %v3163_v63, %v3168_v23  ;;  %v4333_v63 = vcombine.high %v3184_v30, %v3186_v58  ;;  %v3165_v23 = vld [vmem:[#allocation12 + $0x86] ss:$0 sm:$0xff]  ;;  %v3212_v58 = vld [vmem:[#allocation12 + $0x80] ss:$8 sm:$0xf] }
0x16d1   : > { %v5000_v30 = vld [vmem:[#allocation9 + $0x280] sm:$0xff]   ;;  %v3217_v59 = vrot.slane %v3212_v58, %v5549_v1  ;;  %v3225_v29 = vrot.slane %v3212_v58, %v5551_v3  ;;  %v3221_v61 = vrot.slane %v3212_v58, %v5553_v5  ;;  %v3229_v60 = vrot.slane %v3212_v58, %v5555_v6 }
0x16d2   : > { %v3170_v24 = vmul.f32 %v5661_v55, %v5661_v55  ;;  %3406 = vmatprep.subr.bf16.mxu0 %v4333_v63 }
0x16d3   : > { %3407 = vmatpush1.bf16.msra.mxu0 %v4332_v11 }
0x16d4   : > { %3171 = vadd.xlane.f32.xlu1 %v3170_v24  ;;  %3408 = vmatprep.subr.bf16.mxu0 %v4329_v13 }
0x16d7   : > { %3409 = vmatpush1.bf16.msra.mxu0 %v4328_v15 }
0x16d8   : > { %4559 = vmatprep.subr.bf16.mxu0 %v4969_v62 }
0x175d   : > { %v3172_v18 = vpop.xlane.xlu1 %3171 }
0x175e   : > { %v3173_v19 = vmul.f32 0.0078125, %v3172_v18 }
0x1760   : > { %v3174_v20 = vadd.f32 1e-05, %v3173_v19 }
0x1762   : > { %5029 = vrsqrt.f32 %v3174_v20 }
0x176f   : > { %v5030_v53 = vpop.eup %5029 }
0x1770   : > { %v3176_v22 = vmul.f32 %v5030_v53, %v5661_v55  ;;  %v4977_v55 = vld [vmem:[#allocation9 + $0x268] sm:$0xff]  }
0x1772   : > { %v3177_v24 = vmul.f32 %v3176_v22, %v3164_v21  ;;  %v3549_v21 = vld [vmem:[#allocation12 + $0x87] ss:$0 sm:$0xff] }
0x1774   : > { %v5666_v25 = vadd.f32 %v3177_v24, %v3165_v23 }
0x1776   : > { %v3179_v28 = vpack.c.bf16 %v5666_v25, %v5666_v25 }
0x1778   : > { %3427 = vmatmul.mubr.bf16.vlgmr.msra.gmra.mxu0 %v3179_v28  ;;  %3468 = vmatmul.mubr.bf16.vlgmr.msra.gmra.mxu1 %v3179_v28 }
0x1779   : > { %4560 = vmatpush3.bf16.msra.mxu0 %v4971_v26  ;;  %4582 = vmatpush3.bf16.msra.mxu1 %v4972_v2 }
0x177a   : > { %4561 = vmatprep.subr.bf16.mxu0 %v4973_v32  ;;  %4583 = vmatprep.subr.bf16.mxu1 %v4974_v33 }
0x177d   : > { %4562 = vmatpush3.bf16.msra.mxu0 %v4975_v34  ;;  %4584 = vmatpush3.bf16.msra.mxu1 %v4976_v35 }
0x177e   : > { %4563 = vmatprep.subr.bf16.mxu0 %v4977_v55  ;;  %4585 = vmatprep.subr.bf16.mxu1 %v4978_v36  ;;  %v5001_v36 = vld [vmem:[#allocation10 + $0x38] sm:$0xff]  }
0x1781   : > { %4564 = vmatpush3.bf16.msra.mxu0 %v4979_v37  ;;  %4586 = vmatpush3.bf16.msra.mxu1 %v4980_v31  ;;  %v5002_v37 = vld [vmem:[#allocation10 + $0x30] sm:$0xff]  }
0x1782   : > { %4565 = vmatprep.subr.bf16.mxu0 %v4981_v27  ;;  %4587 = vmatprep.subr.bf16.mxu1 %v4982_v38 }
0x1785   : > { %4566 = vmatpush3.bf16.msra.mxu0 %v4983_v39  ;;  %4588 = vmatpush3.bf16.msra.mxu1 %v4984_v40  ;;  %v5003_v40 = vld [vmem:[#allocation10 + $0x28] sm:$0xff]  }
0x1786   : > { %4567 = vmatprep.subr.bf16.mxu0 %v4985_v41  ;;  %4589 = vmatprep.subr.bf16.mxu1 %v4986_v42  ;;  %v5004_v41 = vld [vmem:[#allocation10 + $0x20] sm:$0xff]   ;;  %v5006_v42 = vld [vmem:[#allocation10 + $0x10] sm:$0xff]  }
0x1789   : > { %4568 = vmatpush3.bf16.msra.mxu0 %v4987_v43  ;;  %4590 = vmatpush3.bf16.msra.mxu1 %v4988_v44  ;;  %v5007_v43 = vld [vmem:[#allocation10 + $0x8] sm:$0xff]   ;;  %v5008_v44 = vld [vmem:[#allocation10] sm:$0xff]  }
0x178a   : > { %4569 = vmatprep.subr.bf16.mxu0 %v4989_v45  ;;  %4591 = vmatprep.subr.bf16.mxu1 %v4990_v46 }
0x178d   : > { %4570 = vmatpush3.bf16.msra.mxu0 %v4991_v47  ;;  %4592 = vmatpush3.bf16.msra.mxu1 %v4992_v48 }
0x178e   : > { %4571 = vmatprep.subr.bf16.mxu0 %v4993_v49  ;;  %4593 = vmatprep.subr.bf16.mxu1 %v4994_v50  ;;  %v3823_v49 = vld [vmem:[#allocation12 + $0xa0] ss:$0 sm:$0xff] }
0x1791   : > { %4572 = vmatpush3.bf16.msra.mxu0 %v4995_v51  ;;  %4594 = vmatpush3.bf16.msra.mxu1 %v4996_v52  ;;  %v3824_v51 = vld [vmem:[#allocation12 + $0xa1] ss:$0 sm:$0xff] }
0x1792   : > { %4573 = vmatprep.subr.bf16.mxu0 %v4997_v54  ;;  %4595 = vmatprep.subr.bf16.mxu1 %v4998_v56 }
0x1795   : > { %4574 = vmatpush3.bf16.msra.mxu0 %v4999_v57  ;;  %4596 = vmatpush3.bf16.msra.mxu1 %v5000_v30  ;;  %v3855_v57 = vld [vmem:[#allocation12 + $0x22] ss:$0 sm:$0xff] }
0x1796   : > { %4776 = vmatprep.subr.bf16.mxu0 %v5280_v0 }
0x1838   : > { %v3428_v63 = vpop.f32.mrf.mxu0  ;;  %v3469_v4 = vpop.f32.mrf.mxu1 }
0x1839   : > { %v3429_v7 = vadd.f32 %v3428_v63, %v3217_v59  ;;  %v3470_v8 = vadd.f32 %v3469_v4, %v3225_v29 }
0x183a   : > { %v3430_v9 = vpop.f32.mrf.mxu0  ;;  %v3471_v10 = vpop.f32.mrf.mxu1 }
0x183b   : > { %v3431_v11 = vadd.f32 %v3430_v9, %v3221_v61  ;;  %v3472_v12 = vadd.f32 %v3471_v10, %v3229_v60  ;;  %v3476_v13 = vmax.f32 %v3429_v7, 0.0  ;;  %v3478_v14 = vmax.f32 %v3470_v8, 0.0 }
0x183c   : > { %v3432_v15 = vpop.f32.mrf.mxu0  ;;  %v3473_v16 = vpop.f32.mrf.mxu1 }
0x183d   : > { %v3477_v62 = vmax.f32 %v3431_v11, 0.0  ;;  %v3479_v1 = vmax.f32 %v3472_v12, 0.0  ;;  %v3480_v19 = vpack.c.bf16 %v3476_v13, %v3476_v13  ;;  %v3482_v6 = vpack.c.bf16 %v3478_v14, %v3478_v14 }
0x183e   : > { %v3433_v17 = vpop.f32.mrf.mxu0  ;;  %v3474_v3 = vpop.f32.mrf.mxu1 }
0x183f   : > { %v3481_v18 = vpack.c.bf16 %v3477_v62, %v3477_v62  ;;  %v3483_v5 = vpack.c.bf16 %v3479_v1, %v3479_v1 }
0x1841   : > { %3774 = vmatprep.mubr.bf16.mxu0 %v3481_v18  ;;  %3814 = vmatprep.mubr.bf16.mxu1 %v3483_v5 }
0x1842   : > { %3775 = vmatmul.mubr.bf16.vlgmr.msra.gmra.mxu0 %v3480_v19  ;;  %3815 = vmatmul.mubr.bf16.vlgmr.msra.gmra.mxu1 %v3482_v6 }
0x1843   : > { %4792 = vmatprep.mubr.msk.bf16.mxu0 %vm5281_vm0, %v5280_v0  ;;  %4777 = vmatpush3.bf16.msra.mxu0 %v5001_v36 }
0x1844   : > { %4778 = vmatprep.subr.bf16.mxu0 %v5280_v0 }
0x1847   : > { %4779 = vmatpush3.bf16.msra.mxu0 %v5002_v37 }
0x1848   : > { %4780 = vmatprep.subr.bf16.mxu0 %v5280_v0 }
0x184b   : > { %4781 = vmatpush3.bf16.msra.mxu0 %v5003_v40 }
0x184c   : > { %4782 = vmatprep.subr.bf16.mxu0 %v5280_v0 }
0x184f   : > { %4783 = vmatpush3.bf16.msra.mxu0 %v5004_v41 }
0x1850   : > { %4784 = vmatprep.subr.bf16.mxu0 %v5280_v0 }
0x1902   : > { %v4575_v20 = vpop.f32.mrf.mxu0  ;;  %v4597_v53 = vpop.f32.mrf.mxu1 }
0x1904   : > { %v4576_v22 = vpop.f32.mrf.mxu0  ;;  %v4598_v23 = vpop.f32.mrf.mxu1 }
0x1905   : > { %v4577_v24 = vadd.f32 %v4576_v22, %v4575_v20  ;;  %v4599_v32 = vadd.f32 %v4598_v23, %v4597_v53 }
0x1906   : > { %v4578_v26 = vpop.f32.mrf.mxu0  ;;  %v4600_v2 = vpop.f32.mrf.mxu1 }
0x1907   : > { %v3777_v28 = vadd.f32 %v4577_v24, %v3549_v21 }
0x1908   : > { %v4579_v33 = vpop.f32.mrf.mxu0  ;;  %v4601_v34 = vpop.f32.mrf.mxu1 }
0x1909   : > { %v3817_v35 = vadd.f32 %v4599_v32, %v3777_v28 }
0x190b   : > { %v3822_v55 = vadd.f32 %v3817_v35, %v5666_v25  ;;  %v5005_v25 = vld [vmem:[#allocation10 + $0x18] sm:$0xff]  }
0x190c   : > { %4785 = vmatpush3.bf16.msra.mxu0 %v5005_v25 }
0x190d   : > { %3825 = vadd.xlane.f32.xlu0 %v3822_v55  ;;  %4786 = vmatprep.subr.bf16.mxu0 %v5280_v0 }
0x1910   : > { %4787 = vmatpush3.bf16.msra.mxu0 %v5006_v42 }
0x1911   : > { %4788 = vmatprep.subr.bf16.mxu0 %v5280_v0 }
0x1914   : > { %4789 = vmatpush3.bf16.msra.mxu0 %v5007_v43 }
0x1915   : > { %4790 = vmatprep.subr.bf16.mxu0 %v5280_v0 }
0x1918   : > { %4791 = vmatpush3.bf16.msra.mxu0 %v5008_v44 }
0x1996   : > { %v3826_v31 = vpop.xlane.xlu0 %3825 }
0x1997   : > { %v3827_v27 = vmul.f32 0.0078125, %v3826_v31 }
0x1999   : > { %v3828_v38 = vsub.f32 %v3822_v55, %v3827_v27 }
0x199b   : > { %v3829_v39 = vmul.f32 %v3828_v38, %v3828_v38 }
0x199d   : > { %3830 = vadd.xlane.f32.xlu1 %v3829_v39 }
0x1a26   : > { %v3831_v45 = vpop.xlane.xlu1 %3830 }
0x1a27   : > { %v3832_v46 = vmul.f32 0.0078125, %v3831_v45 }
0x1a29   : > { %v3833_v47 = vadd.f32 1e-05, %v3832_v46 }
0x1a2b   : > { %5031 = vrsqrt.f32 %v3833_v47 }
0x1a38   : > { %v5032_v48 = vpop.eup %5031 }
0x1a39   : > { %v3835_v50 = vmul.f32 %v5032_v48, %v3828_v38 }
0x1a3b   : > { %v3836_v52 = vmul.f32 %v3835_v50, %v3823_v49 }
0x1a3d   : > { %v3837_v54 = vadd.f32 %v3836_v52, %v3824_v51 }
0x1a3f   : > { %v3838_v56 = vpack.c.bf16 %v3837_v54, %v3837_v54 }
0x1a41   : > { %4793 = vmatmul.mubr.bf16.vlgmr.msra.gmra.mxu0 %v3838_v56 }
0x1b01   : > { %v3938_v30 = vpop.f32.mrf.mxu0 }
0x1b02   : > { %v3939_v58 = vadd.f32 %v3938_v30, %v3855_v57 }
0x1b03   : > { %v4794_v59 = vpop.f32.mrf.mxu0 }
0x1b04   : > { %3944 = vmax.xlane.f32.xlu0 %v3939_v58 }
0x1b05   : > { %v3941_v0 = vpop.f32.mrf.mxu0 }
0x1b07   : > { %v4795_v29 = vpop.f32.mrf.mxu0 }
0x1b8d   : > { %v3945_v61 = vpop.xlane.xlu0 %3944 }
0x1b8e   : > { %v3946_v60 = vsub.f32 %v3939_v58, %v3945_v61 }
0x1b90   : > { %v3947_v63 = vmul.f32 1.442695, %v3946_v60 }
0x1b92   : > { %5033 = vpow2.f32 %v3947_v63 }
0x1b9f   : > { %v5034_v4 = vpop.eup %5033 }
0x1ba0   : > { %3949 = vadd.xlane.f32.xlu1 %v5034_v4 }
0x1c29   : > { %v3950_v7 = vpop.xlane.xlu1 %3949 }
0x1c2a   : > { %5035 = vlog2.f32 %v3950_v7 }
0x1c37   : > { %v5036_v8 = vpop.eup %5035 }
0x1c38   : > { %v3952_v9 = vmul.f32 0.6931472, %v5036_v8 }
0x1c3a   : > { %v3953_v10 = vadd.f32 %v3952_v9, %v3945_v61 }
0x1c3c   : > { %v3954_v11 = vsub.f32 %v3939_v58, %v3953_v10 }
0x1c3e   : > { %3955 = vst [vmem:[%s378_s9] sm:$0xff] %v3954_v11 }
0x1c3f PF: > { %p20_p11 = scmp.ge.s32.totalorder %s5432_s11, 4   ;;  %s5727_s24 = smov %s5259_s25 }
0x1c40   : > { %s5728_s25 = smov %s5263_s26  ;;  %s5729_s26 = smov %s5444_s17 }
0x1c41   : > { %s5730_s27 = smov %s5432_s11  ;;  %22 = sbr.rel (!%p20_p11) target bundleno = 6 (0x6), region = 118 }
0x1c46   :  { %3975 = vsyncpa [#allocation3], 1 }
0x1c47   :  { %3977 = vsyncpa [#allocation3 + $0x1], 1 }
0x1c48   :  { %3978 = vsyncpa [#allocation5], 1 }
0x1c49   :  { %3979 = vsyncpa [#allocation8], 1 }
0x1c4a   :  { %3980 = vsyncpa [#allocation11], 1 }

</bundles_post_ra>
